<compile_context>
chip_gen: v7x
topology: tpu7x:2x2x1
jax: 0.10.0
libtpu: 0.0.40
codegen_flags: <defaults>
</compile_context>

<pallas_src>
import functools
import numpy as np
import jax
import jax.numpy as jnp
from jax import lax
from jax.experimental import pallas as pl
from jax.experimental.pallas import tpu as pltpu

LANE = 128      # lane granule (last dim)
SUBLANE = 8     # sublane granule (second-to-last dim)


def _round_up(n, m):
    return ((n + m - 1) // m) * m


# -----------------------------------------------------------------------------
# Pallas kernel: LSTM h-recurrence (the only sequential part of the LSTM).
# -----------------------------------------------------------------------------
def _lstm_recurrence_kernel(xproj_ref, whh_ref, out_ref, h_scr, c_scr, *,
                            broadcast_x):
    """Full T-step LSTM recurrence in a single grid step.

    xproj_ref : (T, Bp, 4*Hp) precomputed x @ W_ih^T + (b_ih + b_hh), or
                (Bp, 4*Hp) when broadcast_x (same input at every timestep).
    whh_ref   : (Hp, 4*Hp) recurrent weights (pre-transposed, gate-padded).
    out_ref   : (T, Bp, Hp) hidden state for every timestep.
    h_scr/c_scr : (Bp, Hp) VMEM-resident recurrent state.
    """
    T = out_ref.shape[0]
    Hp = h_scr.shape[-1]

    h_scr[...] = jnp.zeros_like(h_scr)
    c_scr[...] = jnp.zeros_like(c_scr)

    whh = whh_ref[...]                                   # loop-invariant load
    x_bcast = xproj_ref[...] if broadcast_x else None    # decoder layer 0

    @pl.loop(0, T, unroll=(T <= 16))
    def _(t):
        xp = x_bcast if broadcast_x else xproj_ref[t]
        gates = xp + jnp.dot(h_scr[...], whh,
                             preferred_element_type=jnp.float32)  # (Bp, 4Hp)
        # Gate slices are 128-lane aligned (each gate block padded to Hp).
        i_g = jax.nn.sigmoid(gates[:, 0 * Hp:1 * Hp])
        f_g = jax.nn.sigmoid(gates[:, 1 * Hp:2 * Hp])
        g_g = jnp.tanh(gates[:, 2 * Hp:3 * Hp])
        o_g = jax.nn.sigmoid(gates[:, 3 * Hp:4 * Hp])
        c_new = f_g * c_scr[...] + i_g * g_g
        h_new = o_g * jnp.tanh(c_new)
        c_scr[...] = c_new
        h_scr[...] = h_new
        out_ref[t] = h_new.astype(out_ref.dtype)   # VMEM store; one lane-dense
                                                   # HBM writeback at the end.


def _lstm_recurrence_pallas(xproj, whh, seq_len, broadcast_x):
    """pallas_call wrapper.  xproj: (T,Bp,4Hp) or (Bp,4Hp); whh: (Hp,4Hp)."""
    Hp, G = whh.shape
    if broadcast_x:
        Bp = xproj.shape[0]
        xproj_spec = pl.BlockSpec((Bp, G), lambda i: (0, 0))
    else:
        Bp = xproj.shape[1]
        xproj_spec = pl.BlockSpec((seq_len, Bp, G), lambda i: (0, 0, 0))

    kernel = functools.partial(_lstm_recurrence_kernel, broadcast_x=broadcast_x)
    return pl.pallas_call(
        kernel,
        out_shape=jax.ShapeDtypeStruct((seq_len, Bp, Hp), jnp.float32),
        grid_spec=pltpu.PrefetchScalarGridSpec(
            num_scalar_prefetch=0,
            grid=(1,),                       # whole recurrence = one grid step
            in_specs=[xproj_spec,
                      pl.BlockSpec((Hp, G), lambda i: (0, 0))],
            out_specs=pl.BlockSpec((seq_len, Bp, Hp), lambda i: (0, 0, 0)),
            scratch_shapes=[pltpu.VMEM((Bp, Hp), jnp.float32),
                            pltpu.VMEM((Bp, Hp), jnp.float32)],
        ),
        compiler_params=pltpu.CompilerParams(
            dimension_semantics=("arbitrary",),
        ),
    )(xproj, whh)


def _lstm_recurrence_ref(xproj, whh, seq_len, broadcast_x):
    """Pure-JAX (lax.scan) reference of the same recurrence for checking."""
    Hp = whh.shape[0]
    xs = jnp.broadcast_to(xproj, (seq_len,) + xproj.shape) if broadcast_x else xproj
    Bp = xs.shape[1]

    def step(carry, xp):
        h, c = carry
        gates = xp + h @ whh
        i_g = jax.nn.sigmoid(gates[:, 0 * Hp:1 * Hp])
        f_g = jax.nn.sigmoid(gates[:, 1 * Hp:2 * Hp])
        g_g = jnp.tanh(gates[:, 2 * Hp:3 * Hp])
        o_g = jax.nn.sigmoid(gates[:, 3 * Hp:4 * Hp])
        c = f_g * c + i_g * g_g
        h = o_g * jnp.tanh(c)
        return (h, c), h

    init = (jnp.zeros((Bp, Hp), jnp.float32), jnp.zeros((Bp, Hp), jnp.float32))
    _, hs = lax.scan(step, init, xs)
    return hs


# -----------------------------------------------------------------------------
# Parameter preparation (PyTorch nn.LSTM layout -> padded kernel layout).
# -----------------------------------------------------------------------------
def _prep_lstm_weights(w_ih, w_hh, b_ih, b_hh, in_pad, hid_pad):
    """(4H,in)/(4H,H)/(4H,) -> (in_pad,4*Hp)/(Hp,4*Hp)/(1,4*Hp), gate-padded.

    Gate order (i, f, g, o) preserved; each gate block zero-padded from H to
    hid_pad so the i/f/g/o slices in the kernel are 128-lane aligned.  Zero
    padding keeps padded hidden columns exactly zero through the recurrence.
    """
    four_h = w_ih.shape[0]
    H = four_h // 4

    def pad_gates_t(w, rows_pad):
        rows = w.shape[1]
        w4 = w.reshape(4, H, rows)                  # gate-blocked rows
        w4 = jnp.transpose(w4, (2, 0, 1))           # (rows, 4, H) == W^T / gate
        w4 = jnp.pad(w4, ((0, rows_pad - rows), (0, 0), (0, hid_pad - H)))
        return w4.reshape(rows_pad, 4 * hid_pad)

    wih_p = pad_gates_t(w_ih, in_pad)
    whh_p = pad_gates_t(w_hh, hid_pad)
    b = (b_ih + b_hh).reshape(4, H)
    b_p = jnp.pad(b, ((0, 0), (0, hid_pad - H))).reshape(1, 4 * hid_pad)
    return wih_p, whh_p, b_p


def _make_lstm_params(key, input_size, hidden_size, num_layers, in_pad0, hid_pad):
    """nn.LSTM-shaped params; layer-0 weights orthogonal(gain=sqrt(2)) as in
    the PyTorch module, the rest uniform(-1/sqrt(H), 1/sqrt(H))."""
    ortho = jax.nn.initializers.orthogonal(scale=float(np.sqrt(2.0)))
    k = 1.0 / np.sqrt(hidden_size)
    layers = []
    for layer in range(num_layers):
        in_dim = input_size if layer == 0 else hidden_size
        in_pad = in_pad0 if layer == 0 else hid_pad
        key, k1, k2, k3, k4 = jax.random.split(key, 5)
        if layer == 0:
            w_ih = ortho(k1, (4 * hidden_size, in_dim), jnp.float32)
            w_hh = ortho(k2, (4 * hidden_size, hidden_size), jnp.float32)
        else:
            w_ih = jax.random.uniform(k1, (4 * hidden_size, in_dim),
                                      jnp.float32, -k, k)
            w_hh = jax.random.uniform(k2, (4 * hidden_size, hidden_size),
                                      jnp.float32, -k, k)
        b_ih = jax.random.uniform(k3, (4 * hidden_size,), jnp.float32, -k, k)
        b_hh = jax.random.uniform(k4, (4 * hidden_size,), jnp.float32, -k, k)
        wih_p, whh_p, b_p = _prep_lstm_weights(w_ih, w_hh, b_ih, b_hh,
                                               in_pad, hid_pad)
        layers.append({"wih": wih_p, "whh": whh_p, "b": b_p})
    return layers, key


def init_autoencoder_params(key, input_size, hidden_size, num_layers):
    Hp = _round_up(hidden_size, LANE)
    Dp = _round_up(input_size, LANE)
    enc, key = _make_lstm_params(key, input_size, hidden_size, num_layers,
                                 in_pad0=Dp, hid_pad=Hp)
    dec, key = _make_lstm_params(key, hidden_size, input_size, num_layers,
                                 in_pad0=Hp, hid_pad=Dp)
    return {"encoder": enc, "decoder": dec}


# -----------------------------------------------------------------------------
# Forward pass (AutoEncoderRNN.forward).
# -----------------------------------------------------------------------------
def _forward_impl(params, x_btd, sequence_length, hidden_size, input_size,
                  recurrence):
    B, T, D = x_btd.shape
    Bp = _round_up(B, SUBLANE)
    enc_layers = params["encoder"]
    dec_layers = params["decoder"]
    Din_pad = enc_layers[0]["wih"].shape[0]

    # Pad batch (sublanes) and feature (lanes) once.
    x_pad = jnp.pad(x_btd, ((0, Bp - B), (0, 0), (0, Din_pad - D)))

    # -------- Encoder: take out[:, -1, :] of the (stacked) LSTM --------
    seq = None
    for li, layer in enumerate(enc_layers):
        # Hoisted input projection: one big MXU matmul over all timesteps
        # (also folds the batch_first -> time-major layout change).
        if li == 0:
            xproj = jnp.einsum("btd,dg->tbg", x_pad, layer["wih"],
                               preferred_element_type=jnp.float32) + layer["b"]
        else:
            # TODO(synk): inter-layer dropout (p=0.2) in training mode.
            xproj = jnp.einsum("tbd,dg->tbg", seq, layer["wih"],
                               preferred_element_type=jnp.float32) + layer["b"]
        seq = recurrence(xproj, layer["whh"], T, False)          # (T, Bp, Hp)
    enc_last = seq[-1]                                           # (Bp, Hp)

    # encoded_x = encoder(x).expand(-1, sequence_length, -1)
    encoded_x = jnp.broadcast_to(
        enc_last[:B, None, :hidden_size], (B, sequence_length, hidden_size))

    # -------- Decoder: same code vector at every timestep --------
    d0 = dec_layers[0]
    xproj0 = jnp.dot(enc_last, d0["wih"],
                     preferred_element_type=jnp.float32) + d0["b"]  # (Bp, 4*Op)
    dseq = recurrence(xproj0, d0["whh"], sequence_length, True)
    for layer in dec_layers[1:]:
        # TODO(synk): inter-layer dropout (p=0.2) in training mode.
        xproj = jnp.einsum("tbd,dg->tbg", dseq, layer["wih"],
                           preferred_element_type=jnp.float32) + layer["b"]
        dseq = recurrence(xproj, layer["whh"], sequence_length, False)

    decoded_x = jnp.transpose(dseq, (1, 0, 2))[:B, :, :input_size]
    return encoded_x, decoded_x


@functools.partial(jax.jit,
                   static_argnames=("sequence_length", "hidden_size",
                                    "input_size"))
def autoencoder_rnn_forward(params, x_btd, *, sequence_length, hidden_size,
                            input_size):
    return _forward_impl(params, x_btd, sequence_length, hidden_size,
                         input_size, _lstm_recurrence_pallas)


if __name__ == "__main__":
    batch, seq_len = 2, 8
    input_size, hidden_size, num_layers = 16, 32, 1

    key = jax.random.PRNGKey(0)
    key, pkey, xkey = jax.random.split(key, 3)

    params = init_autoencoder_params(pkey, input_size, hidden_size, num_layers)
    x = jax.random.normal(xkey, (batch, seq_len, input_size), jnp.float32)

    encoded_x, decoded_x = autoencoder_rnn_forward(
        params, x, sequence_length=seq_len, hidden_size=hidden_size,
        input_size=input_size)
    jax.block_until_ready((encoded_x, decoded_x))

    assert encoded_x.shape == (batch, seq_len, hidden_size), encoded_x.shape
    assert decoded_x.shape == (batch, seq_len, input_size), decoded_x.shape
    assert encoded_x.dtype == jnp.float32 and decoded_x.dtype == jnp.float32
    assert bool(jnp.all(jnp.isfinite(encoded_x)))
    assert bool(jnp.all(jnp.isfinite(decoded_x)))

    # Cross-check the Pallas recurrence against a pure-JAX lax.scan reference.
    ref_enc, ref_dec = _forward_impl(params, x, seq_len, hidden_size,
                                     input_size, _lstm_recurrence_ref)
    np.testing.assert_allclose(np.asarray(encoded_x), np.asarray(ref_enc),
                               rtol=1e-3, atol=1e-3)
    np.testing.assert_allclose(np.asarray(decoded_x), np.asarray(ref_dec),
                               rtol=1e-3, atol=1e-3)

    print("KERNEL_OK")
</pallas_src>

<mosaic_0001>
module attributes {stable_mosaic.version = 11 : i64} {
  func.func @_lstm_recurrence_kernel(%arg0: i32, %arg1: memref<8x8x512xf32, #tpu.memory_space<vmem>>, %arg2: memref<128x512xf32, #tpu.memory_space<vmem>>, %arg3: memref<8x8x128xf32, #tpu.memory_space<vmem>>, %arg4: memref<8x128xf32, #tpu.memory_space<vmem>>, %arg5: memref<8x128xf32, #tpu.memory_space<vmem>>) attributes {dimension_semantics = [#tpu.dimension_semantics<arbitrary>], iteration_bounds = array<i64: 1>, scalar_prefetch = 0 : i64, scratch_operands = 2 : i64, tpu.core_type = #tpu.core_type<tc>, window_params = [{pipeline_mode = #tpu.pipeline_mode<synchronous>, transform_indices = @transform_0, window_bounds = array<i64: 8, 8, 512>}, {pipeline_mode = #tpu.pipeline_mode<synchronous>, transform_indices = @transform_1, window_bounds = array<i64: 128, 512>}, {pipeline_mode = #tpu.pipeline_mode<synchronous>, transform_indices = @transform_2, window_bounds = array<i64: 8, 8, 128>}]} {
    %cst = arith.constant 0.000000e+00 : f32
    %0 = vector.broadcast %cst : f32 to vector<8x128xf32>
    %c0 = arith.constant 0 : index
    %c0_0 = arith.constant 0 : index
    %1 = vector.load %arg4[%c0, %c0_0] : memref<8x128xf32, #tpu.memory_space<vmem>>, vector<8x128xf32>
    tpu.vector_store %arg4[%c0, %c0_0], %0 {strides = array<i32>} : memref<8x128xf32, #tpu.memory_space<vmem>>, vector<8x128xf32>,
    %cst_1 = arith.constant 0.000000e+00 : f32
    %2 = vector.broadcast %cst_1 : f32 to vector<8x128xf32>
    %c0_2 = arith.constant 0 : index
    %c0_3 = arith.constant 0 : index
    %3 = vector.load %arg5[%c0_2, %c0_3] : memref<8x128xf32, #tpu.memory_space<vmem>>, vector<8x128xf32>
    tpu.vector_store %arg5[%c0_2, %c0_3], %2 {strides = array<i32>} : memref<8x128xf32, #tpu.memory_space<vmem>>, vector<8x128xf32>,
    %c0_4 = arith.constant 0 : index
    %c0_5 = arith.constant 0 : index
    %4 = vector.load %arg2[%c0_4, %c0_5] : memref<128x512xf32, #tpu.memory_space<vmem>>, vector<128x512xf32>
    %c0_i32 = arith.constant 0 : i32
    %c1_i32 = arith.constant 1 : i32
    %5 = arith.muli %c0_i32, %c1_i32 : i32
    %c0_i32_6 = arith.constant 0 : i32
    %6 = arith.addi %c0_i32_6, %5 : i32
    %7 = arith.index_cast %6 : i32 to index
    %c0_7 = arith.constant 0 : index
    %c0_8 = arith.constant 0 : index
    %8 = vector.load %arg1[%7, %c0_7, %c0_8] : memref<8x8x512xf32, #tpu.memory_space<vmem>>, vector<1x8x512xf32>
    %9 = vector.shape_cast %8 : vector<1x8x512xf32> to vector<8x512xf32>
    %c0_9 = arith.constant 0 : index
    %c0_10 = arith.constant 0 : index
    %10 = vector.load %arg4[%c0_9, %c0_10] : memref<8x128xf32, #tpu.memory_space<vmem>>, vector<8x128xf32>
    %cst_11 = arith.constant dense<0.000000e+00> : vector<8x512xf32>
    %11 = tpu.matmul %10, %4, %cst_11 {dimension_numbers = #tpu.dot_dimension_numbers<[1], [0], [0], [1], [0, 0, 1, 1], [], []>} : vector<8x128xf32>, vector<128x512xf32>, vector<8x512xf32> -> vector<8x512xf32>
    %12 = arith.addf %9, %11 : vector<8x512xf32>
    %13 = vector.extract_strided_slice %12 {offsets = [0, 0], sizes = [8, 128], strides = [1, 1]} : vector<8x512xf32> to vector<8x128xf32>
    %14 = arith.negf %13 : vector<8x128xf32>
    %15 = math.exp %14 : vector<8x128xf32>
    %cst_12 = arith.constant 1.000000e+00 : f32
    %16 = vector.broadcast %cst_12 : f32 to vector<8x128xf32>
    %17 = arith.addf %16, %15 : vector<8x128xf32>
    %18 = arith.divf %16, %17 : vector<8x128xf32>
    %19 = vector.extract_strided_slice %12 {offsets = [0, 128], sizes = [8, 128], strides = [1, 1]} : vector<8x512xf32> to vector<8x128xf32>
    %20 = arith.negf %19 : vector<8x128xf32>
    %21 = math.exp %20 : vector<8x128xf32>
    %cst_13 = arith.constant 1.000000e+00 : f32
    %22 = vector.broadcast %cst_13 : f32 to vector<8x128xf32>
    %23 = arith.addf %22, %21 : vector<8x128xf32>
    %24 = arith.divf %22, %23 : vector<8x128xf32>
    %25 = vector.extract_strided_slice %12 {offsets = [0, 256], sizes = [8, 128], strides = [1, 1]} : vector<8x512xf32> to vector<8x128xf32>
    %26 = math.tanh %25 : vector<8x128xf32>
    %27 = vector.extract_strided_slice %12 {offsets = [0, 384], sizes = [8, 128], strides = [1, 1]} : vector<8x512xf32> to vector<8x128xf32>
    %28 = arith.negf %27 : vector<8x128xf32>
    %29 = math.exp %28 : vector<8x128xf32>
    %cst_14 = arith.constant 1.000000e+00 : f32
    %30 = vector.broadcast %cst_14 : f32 to vector<8x128xf32>
    %31 = arith.addf %30, %29 : vector<8x128xf32>
    %32 = arith.divf %30, %31 : vector<8x128xf32>
    %c0_15 = arith.constant 0 : index
    %c0_16 = arith.constant 0 : index
    %33 = vector.load %arg5[%c0_15, %c0_16] : memref<8x128xf32, #tpu.memory_space<vmem>>, vector<8x128xf32>
    %34 = arith.mulf %24, %33 : vector<8x128xf32>
    %35 = arith.mulf %18, %26 : vector<8x128xf32>
    %36 = arith.addf %34, %35 : vector<8x128xf32>
    %37 = math.tanh %36 : vector<8x128xf32>
    %38 = arith.mulf %32, %37 : vector<8x128xf32>
    %c0_17 = arith.constant 0 : index
    %c0_18 = arith.constant 0 : index
    %39 = vector.load %arg5[%c0_17, %c0_18] : memref<8x128xf32, #tpu.memory_space<vmem>>, vector<8x128xf32>
    tpu.vector_store %arg5[%c0_17, %c0_18], %36 {strides = array<i32>} : memref<8x128xf32, #tpu.memory_space<vmem>>, vector<8x128xf32>,
    %c0_19 = arith.constant 0 : index
    %c0_20 = arith.constant 0 : index
    %40 = vector.load %arg4[%c0_19, %c0_20] : memref<8x128xf32, #tpu.memory_space<vmem>>, vector<8x128xf32>
    tpu.vector_store %arg4[%c0_19, %c0_20], %38 {strides = array<i32>} : memref<8x128xf32, #tpu.memory_space<vmem>>, vector<8x128xf32>,
    %41 = arith.index_cast %6 : i32 to index
    %c0_21 = arith.constant 0 : index
    %c0_22 = arith.constant 0 : index
    %42 = vector.load %arg3[%41, %c0_21, %c0_22] : memref<8x8x128xf32, #tpu.memory_space<vmem>>, vector<1x8x128xf32>
    %43 = vector.shape_cast %42 : vector<1x8x128xf32> to vector<8x128xf32>
    %44 = vector.shape_cast %38 : vector<8x128xf32> to vector<1x8x128xf32>
    tpu.vector_store %arg3[%41, %c0_21, %c0_22], %44 {strides = array<i32>} : memref<8x8x128xf32, #tpu.memory_space<vmem>>, vector<1x8x128xf32>,
    %c1_i32_23 = arith.constant 1 : i32
    %c1_i32_24 = arith.constant 1 : i32
    %45 = arith.muli %c1_i32_23, %c1_i32_24 : i32
    %c0_i32_25 = arith.constant 0 : i32
    %46 = arith.addi %c0_i32_25, %45 : i32
    %47 = arith.index_cast %46 : i32 to index
    %c0_26 = arith.constant 0 : index
    %c0_27 = arith.constant 0 : index
    %48 = vector.load %arg1[%47, %c0_26, %c0_27] : memref<8x8x512xf32, #tpu.memory_space<vmem>>, vector<1x8x512xf32>
    %49 = vector.shape_cast %48 : vector<1x8x512xf32> to vector<8x512xf32>
    %c0_28 = arith.constant 0 : index
    %c0_29 = arith.constant 0 : index
    %50 = vector.load %arg4[%c0_28, %c0_29] : memref<8x128xf32, #tpu.memory_space<vmem>>, vector<8x128xf32>
    %cst_30 = arith.constant dense<0.000000e+00> : vector<8x512xf32>
    %51 = tpu.matmul %50, %4, %cst_30 {dimension_numbers = #tpu.dot_dimension_numbers<[1], [0], [0], [1], [0, 0, 1, 1], [], []>} : vector<8x128xf32>, vector<128x512xf32>, vector<8x512xf32> -> vector<8x512xf32>
    %52 = arith.addf %49, %51 : vector<8x512xf32>
    %53 = vector.extract_strided_slice %52 {offsets = [0, 0], sizes = [8, 128], strides = [1, 1]} : vector<8x512xf32> to vector<8x128xf32>
    %54 = arith.negf %53 : vector<8x128xf32>
    %55 = math.exp %54 : vector<8x128xf32>
    %cst_31 = arith.constant 1.000000e+00 : f32
    %56 = vector.broadcast %cst_31 : f32 to vector<8x128xf32>
    %57 = arith.addf %56, %55 : vector<8x128xf32>
    %58 = arith.divf %56, %57 : vector<8x128xf32>
    %59 = vector.extract_strided_slice %52 {offsets = [0, 128], sizes = [8, 128], strides = [1, 1]} : vector<8x512xf32> to vector<8x128xf32>
    %60 = arith.negf %59 : vector<8x128xf32>
    %61 = math.exp %60 : vector<8x128xf32>
    %cst_32 = arith.constant 1.000000e+00 : f32
    %62 = vector.broadcast %cst_32 : f32 to vector<8x128xf32>
    %63 = arith.addf %62, %61 : vector<8x128xf32>
    %64 = arith.divf %62, %63 : vector<8x128xf32>
    %65 = vector.extract_strided_slice %52 {offsets = [0, 256], sizes = [8, 128], strides = [1, 1]} : vector<8x512xf32> to vector<8x128xf32>
    %66 = math.tanh %65 : vector<8x128xf32>
    %67 = vector.extract_strided_slice %52 {offsets = [0, 384], sizes = [8, 128], strides = [1, 1]} : vector<8x512xf32> to vector<8x128xf32>
    %68 = arith.negf %67 : vector<8x128xf32>
    %69 = math.exp %68 : vector<8x128xf32>
    %cst_33 = arith.constant 1.000000e+00 : f32
    %70 = vector.broadcast %cst_33 : f32 to vector<8x128xf32>
    %71 = arith.addf %70, %69 : vector<8x128xf32>
    %72 = arith.divf %70, %71 : vector<8x128xf32>
    %c0_34 = arith.constant 0 : index
    %c0_35 = arith.constant 0 : index
    %73 = vector.load %arg5[%c0_34, %c0_35] : memref<8x128xf32, #tpu.memory_space<vmem>>, vector<8x128xf32>
    %74 = arith.mulf %64, %73 : vector<8x128xf32>
    %75 = arith.mulf %58, %66 : vector<8x128xf32>
    %76 = arith.addf %74, %75 : vector<8x128xf32>
    %77 = math.tanh %76 : vector<8x128xf32>
    %78 = arith.mulf %72, %77 : vector<8x128xf32>
    %c0_36 = arith.constant 0 : index
    %c0_37 = arith.constant 0 : index
    %79 = vector.load %arg5[%c0_36, %c0_37] : memref<8x128xf32, #tpu.memory_space<vmem>>, vector<8x128xf32>
    tpu.vector_store %arg5[%c0_36, %c0_37], %76 {strides = array<i32>} : memref<8x128xf32, #tpu.memory_space<vmem>>, vector<8x128xf32>,
    %c0_38 = arith.constant 0 : index
    %c0_39 = arith.constant 0 : index
    %80 = vector.load %arg4[%c0_38, %c0_39] : memref<8x128xf32, #tpu.memory_space<vmem>>, vector<8x128xf32>
    tpu.vector_store %arg4[%c0_38, %c0_39], %78 {strides = array<i32>} : memref<8x128xf32, #tpu.memory_space<vmem>>, vector<8x128xf32>,
    %81 = arith.index_cast %46 : i32 to index
    %c0_40 = arith.constant 0 : index
    %c0_41 = arith.constant 0 : index
    %82 = vector.load %arg3[%81, %c0_40, %c0_41] : memref<8x8x128xf32, #tpu.memory_space<vmem>>, vector<1x8x128xf32>
    %83 = vector.shape_cast %82 : vector<1x8x128xf32> to vector<8x128xf32>
    %84 = vector.shape_cast %78 : vector<8x128xf32> to vector<1x8x128xf32>
    tpu.vector_store %arg3[%81, %c0_40, %c0_41], %84 {strides = array<i32>} : memref<8x8x128xf32, #tpu.memory_space<vmem>>, vector<1x8x128xf32>,
    %c2_i32 = arith.constant 2 : i32
    %c1_i32_42 = arith.constant 1 : i32
    %85 = arith.muli %c2_i32, %c1_i32_42 : i32
    %c0_i32_43 = arith.constant 0 : i32
    %86 = arith.addi %c0_i32_43, %85 : i32
    %87 = arith.index_cast %86 : i32 to index
    %c0_44 = arith.constant 0 : index
    %c0_45 = arith.constant 0 : index
    %88 = vector.load %arg1[%87, %c0_44, %c0_45] : memref<8x8x512xf32, #tpu.memory_space<vmem>>, vector<1x8x512xf32>
    %89 = vector.shape_cast %88 : vector<1x8x512xf32> to vector<8x512xf32>
    %c0_46 = arith.constant 0 : index
    %c0_47 = arith.constant 0 : index
    %90 = vector.load %arg4[%c0_46, %c0_47] : memref<8x128xf32, #tpu.memory_space<vmem>>, vector<8x128xf32>
    %cst_48 = arith.constant dense<0.000000e+00> : vector<8x512xf32>
    %91 = tpu.matmul %90, %4, %cst_48 {dimension_numbers = #tpu.dot_dimension_numbers<[1], [0], [0], [1], [0, 0, 1, 1], [], []>} : vector<8x128xf32>, vector<128x512xf32>, vector<8x512xf32> -> vector<8x512xf32>
    %92 = arith.addf %89, %91 : vector<8x512xf32>
    %93 = vector.extract_strided_slice %92 {offsets = [0, 0], sizes = [8, 128], strides = [1, 1]} : vector<8x512xf32> to vector<8x128xf32>
    %94 = arith.negf %93 : vector<8x128xf32>
    %95 = math.exp %94 : vector<8x128xf32>
    %cst_49 = arith.constant 1.000000e+00 : f32
    %96 = vector.broadcast %cst_49 : f32 to vector<8x128xf32>
    %97 = arith.addf %96, %95 : vector<8x128xf32>
    %98 = arith.divf %96, %97 : vector<8x128xf32>
    %99 = vector.extract_strided_slice %92 {offsets = [0, 128], sizes = [8, 128], strides = [1, 1]} : vector<8x512xf32> to vector<8x128xf32>
    %100 = arith.negf %99 : vector<8x128xf32>
    %101 = math.exp %100 : vector<8x128xf32>
    %cst_50 = arith.constant 1.000000e+00 : f32
    %102 = vector.broadcast %cst_50 : f32 to vector<8x128xf32>
    %103 = arith.addf %102, %101 : vector<8x128xf32>
    %104 = arith.divf %102, %103 : vector<8x128xf32>
    %105 = vector.extract_strided_slice %92 {offsets = [0, 256], sizes = [8, 128], strides = [1, 1]} : vector<8x512xf32> to vector<8x128xf32>
    %106 = math.tanh %105 : vector<8x128xf32>
    %107 = vector.extract_strided_slice %92 {offsets = [0, 384], sizes = [8, 128], strides = [1, 1]} : vector<8x512xf32> to vector<8x128xf32>
    %108 = arith.negf %107 : vector<8x128xf32>
    %109 = math.exp %108 : vector<8x128xf32>
    %cst_51 = arith.constant 1.000000e+00 : f32
    %110 = vector.broadcast %cst_51 : f32 to vector<8x128xf32>
    %111 = arith.addf %110, %109 : vector<8x128xf32>
    %112 = arith.divf %110, %111 : vector<8x128xf32>
    %c0_52 = arith.constant 0 : index
    %c0_53 = arith.constant 0 : index
    %113 = vector.load %arg5[%c0_52, %c0_53] : memref<8x128xf32, #tpu.memory_space<vmem>>, vector<8x128xf32>
    %114 = arith.mulf %104, %113 : vector<8x128xf32>
    %115 = arith.mulf %98, %106 : vector<8x128xf32>
    %116 = arith.addf %114, %115 : vector<8x128xf32>
    %117 = math.tanh %116 : vector<8x128xf32>
    %118 = arith.mulf %112, %117 : vector<8x128xf32>
    %c0_54 = arith.constant 0 : index
    %c0_55 = arith.constant 0 : index
    %119 = vector.load %arg5[%c0_54, %c0_55] : memref<8x128xf32, #tpu.memory_space<vmem>>, vector<8x128xf32>
    tpu.vector_store %arg5[%c0_54, %c0_55], %116 {strides = array<i32>} : memref<8x128xf32, #tpu.memory_space<vmem>>, vector<8x128xf32>,
    %c0_56 = arith.constant 0 : index
    %c0_57 = arith.constant 0 : index
    %120 = vector.load %arg4[%c0_56, %c0_57] : memref<8x128xf32, #tpu.memory_space<vmem>>, vector<8x128xf32>
    tpu.vector_store %arg4[%c0_56, %c0_57], %118 {strides = array<i32>} : memref<8x128xf32, #tpu.memory_space<vmem>>, vector<8x128xf32>,
    %121 = arith.index_cast %86 : i32 to index
    %c0_58 = arith.constant 0 : index
    %c0_59 = arith.constant 0 : index
    %122 = vector.load %arg3[%121, %c0_58, %c0_59] : memref<8x8x128xf32, #tpu.memory_space<vmem>>, vector<1x8x128xf32>
    %123 = vector.shape_cast %122 : vector<1x8x128xf32> to vector<8x128xf32>
    %124 = vector.shape_cast %118 : vector<8x128xf32> to vector<1x8x128xf32>
    tpu.vector_store %arg3[%121, %c0_58, %c0_59], %124 {strides = array<i32>} : memref<8x8x128xf32, #tpu.memory_space<vmem>>, vector<1x8x128xf32>,
    %c3_i32 = arith.constant 3 : i32
    %c1_i32_60 = arith.constant 1 : i32
    %125 = arith.muli %c3_i32, %c1_i32_60 : i32
    %c0_i32_61 = arith.constant 0 : i32
    %126 = arith.addi %c0_i32_61, %125 : i32
    %127 = arith.index_cast %126 : i32 to index
    %c0_62 = arith.constant 0 : index
    %c0_63 = arith.constant 0 : index
    %128 = vector.load %arg1[%127, %c0_62, %c0_63] : memref<8x8x512xf32, #tpu.memory_space<vmem>>, vector<1x8x512xf32>
    %129 = vector.shape_cast %128 : vector<1x8x512xf32> to vector<8x512xf32>
    %c0_64 = arith.constant 0 : index
    %c0_65 = arith.constant 0 : index
    %130 = vector.load %arg4[%c0_64, %c0_65] : memref<8x128xf32, #tpu.memory_space<vmem>>, vector<8x128xf32>
    %cst_66 = arith.constant dense<0.000000e+00> : vector<8x512xf32>
    %131 = tpu.matmul %130, %4, %cst_66 {dimension_numbers = #tpu.dot_dimension_numbers<[1], [0], [0], [1], [0, 0, 1, 1], [], []>} : vector<8x128xf32>, vector<128x512xf32>, vector<8x512xf32> -> vector<8x512xf32>
    %132 = arith.addf %129, %131 : vector<8x512xf32>
    %133 = vector.extract_strided_slice %132 {offsets = [0, 0], sizes = [8, 128], strides = [1, 1]} : vector<8x512xf32> to vector<8x128xf32>
    %134 = arith.negf %133 : vector<8x128xf32>
    %135 = math.exp %134 : vector<8x128xf32>
    %cst_67 = arith.constant 1.000000e+00 : f32
    %136 = vector.broadcast %cst_67 : f32 to vector<8x128xf32>
    %137 = arith.addf %136, %135 : vector<8x128xf32>
    %138 = arith.divf %136, %137 : vector<8x128xf32>
    %139 = vector.extract_strided_slice %132 {offsets = [0, 128], sizes = [8, 128], strides = [1, 1]} : vector<8x512xf32> to vector<8x128xf32>
    %140 = arith.negf %139 : vector<8x128xf32>
    %141 = math.exp %140 : vector<8x128xf32>
    %cst_68 = arith.constant 1.000000e+00 : f32
    %142 = vector.broadcast %cst_68 : f32 to vector<8x128xf32>
    %143 = arith.addf %142, %141 : vector<8x128xf32>
    %144 = arith.divf %142, %143 : vector<8x128xf32>
    %145 = vector.extract_strided_slice %132 {offsets = [0, 256], sizes = [8, 128], strides = [1, 1]} : vector<8x512xf32> to vector<8x128xf32>
    %146 = math.tanh %145 : vector<8x128xf32>
    %147 = vector.extract_strided_slice %132 {offsets = [0, 384], sizes = [8, 128], strides = [1, 1]} : vector<8x512xf32> to vector<8x128xf32>
    %148 = arith.negf %147 : vector<8x128xf32>
    %149 = math.exp %148 : vector<8x128xf32>
    %cst_69 = arith.constant 1.000000e+00 : f32
    %150 = vector.broadcast %cst_69 : f32 to vector<8x128xf32>
    %151 = arith.addf %150, %149 : vector<8x128xf32>
    %152 = arith.divf %150, %151 : vector<8x128xf32>
    %c0_70 = arith.constant 0 : index
    %c0_71 = arith.constant 0 : index
    %153 = vector.load %arg5[%c0_70, %c0_71] : memref<8x128xf32, #tpu.memory_space<vmem>>, vector<8x128xf32>
    %154 = arith.mulf %144, %153 : vector<8x128xf32>
    %155 = arith.mulf %138, %146 : vector<8x128xf32>
    %156 = arith.addf %154, %155 : vector<8x128xf32>
    %157 = math.tanh %156 : vector<8x128xf32>
    %158 = arith.mulf %152, %157 : vector<8x128xf32>
    %c0_72 = arith.constant 0 : index
    %c0_73 = arith.constant 0 : index
    %159 = vector.load %arg5[%c0_72, %c0_73] : memref<8x128xf32, #tpu.memory_space<vmem>>, vector<8x128xf32>
    tpu.vector_store %arg5[%c0_72, %c0_73], %156 {strides = array<i32>} : memref<8x128xf32, #tpu.memory_space<vmem>>, vector<8x128xf32>,
    %c0_74 = arith.constant 0 : index
    %c0_75 = arith.constant 0 : index
    %160 = vector.load %arg4[%c0_74, %c0_75] : memref<8x128xf32, #tpu.memory_space<vmem>>, vector<8x128xf32>
    tpu.vector_store %arg4[%c0_74, %c0_75], %158 {strides = array<i32>} : memref<8x128xf32, #tpu.memory_space<vmem>>, vector<8x128xf32>,
    %161 = arith.index_cast %126 : i32 to index
    %c0_76 = arith.constant 0 : index
    %c0_77 = arith.constant 0 : index
    %162 = vector.load %arg3[%161, %c0_76, %c0_77] : memref<8x8x128xf32, #tpu.memory_space<vmem>>, vector<1x8x128xf32>
    %163 = vector.shape_cast %162 : vector<1x8x128xf32> to vector<8x128xf32>
    %164 = vector.shape_cast %158 : vector<8x128xf32> to vector<1x8x128xf32>
    tpu.vector_store %arg3[%161, %c0_76, %c0_77], %164 {strides = array<i32>} : memref<8x8x128xf32, #tpu.memory_space<vmem>>, vector<1x8x128xf32>,
    %c4_i32 = arith.constant 4 : i32
    %c1_i32_78 = arith.constant 1 : i32
    %165 = arith.muli %c4_i32, %c1_i32_78 : i32
    %c0_i32_79 = arith.constant 0 : i32
    %166 = arith.addi %c0_i32_79, %165 : i32
    %167 = arith.index_cast %166 : i32 to index
    %c0_80 = arith.constant 0 : index
    %c0_81 = arith.constant 0 : index
    %168 = vector.load %arg1[%167, %c0_80, %c0_81] : memref<8x8x512xf32, #tpu.memory_space<vmem>>, vector<1x8x512xf32>
    %169 = vector.shape_cast %168 : vector<1x8x512xf32> to vector<8x512xf32>
    %c0_82 = arith.constant 0 : index
    %c0_83 = arith.constant 0 : index
    %170 = vector.load %arg4[%c0_82, %c0_83] : memref<8x128xf32, #tpu.memory_space<vmem>>, vector<8x128xf32>
    %cst_84 = arith.constant dense<0.000000e+00> : vector<8x512xf32>
    %171 = tpu.matmul %170, %4, %cst_84 {dimension_numbers = #tpu.dot_dimension_numbers<[1], [0], [0], [1], [0, 0, 1, 1], [], []>} : vector<8x128xf32>, vector<128x512xf32>, vector<8x512xf32> -> vector<8x512xf32>
    %172 = arith.addf %169, %171 : vector<8x512xf32>
    %173 = vector.extract_strided_slice %172 {offsets = [0, 0], sizes = [8, 128], strides = [1, 1]} : vector<8x512xf32> to vector<8x128xf32>
    %174 = arith.negf %173 : vector<8x128xf32>
    %175 = math.exp %174 : vector<8x128xf32>
    %cst_85 = arith.constant 1.000000e+00 : f32
    %176 = vector.broadcast %cst_85 : f32 to vector<8x128xf32>
    %177 = arith.addf %176, %175 : vector<8x128xf32>
    %178 = arith.divf %176, %177 : vector<8x128xf32>
    %179 = vector.extract_strided_slice %172 {offsets = [0, 128], sizes = [8, 128], strides = [1, 1]} : vector<8x512xf32> to vector<8x128xf32>
    %180 = arith.negf %179 : vector<8x128xf32>
    %181 = math.exp %180 : vector<8x128xf32>
    %cst_86 = arith.constant 1.000000e+00 : f32
    %182 = vector.broadcast %cst_86 : f32 to vector<8x128xf32>
    %183 = arith.addf %182, %181 : vector<8x128xf32>
    %184 = arith.divf %182, %183 : vector<8x128xf32>
    %185 = vector.extract_strided_slice %172 {offsets = [0, 256], sizes = [8, 128], strides = [1, 1]} : vector<8x512xf32> to vector<8x128xf32>
    %186 = math.tanh %185 : vector<8x128xf32>
    %187 = vector.extract_strided_slice %172 {offsets = [0, 384], sizes = [8, 128], strides = [1, 1]} : vector<8x512xf32> to vector<8x128xf32>
    %188 = arith.negf %187 : vector<8x128xf32>
    %189 = math.exp %188 : vector<8x128xf32>
    %cst_87 = arith.constant 1.000000e+00 : f32
    %190 = vector.broadcast %cst_87 : f32 to vector<8x128xf32>
    %191 = arith.addf %190, %189 : vector<8x128xf32>
    %192 = arith.divf %190, %191 : vector<8x128xf32>
    %c0_88 = arith.constant 0 : index
    %c0_89 = arith.constant 0 : index
    %193 = vector.load %arg5[%c0_88, %c0_89] : memref<8x128xf32, #tpu.memory_space<vmem>>, vector<8x128xf32>
    %194 = arith.mulf %184, %193 : vector<8x128xf32>
    %195 = arith.mulf %178, %186 : vector<8x128xf32>
    %196 = arith.addf %194, %195 : vector<8x128xf32>
    %197 = math.tanh %196 : vector<8x128xf32>
    %198 = arith.mulf %192, %197 : vector<8x128xf32>
    %c0_90 = arith.constant 0 : index
    %c0_91 = arith.constant 0 : index
    %199 = vector.load %arg5[%c0_90, %c0_91] : memref<8x128xf32, #tpu.memory_space<vmem>>, vector<8x128xf32>
    tpu.vector_store %arg5[%c0_90, %c0_91], %196 {strides = array<i32>} : memref<8x128xf32, #tpu.memory_space<vmem>>, vector<8x128xf32>,
    %c0_92 = arith.constant 0 : index
    %c0_93 = arith.constant 0 : index
    %200 = vector.load %arg4[%c0_92, %c0_93] : memref<8x128xf32, #tpu.memory_space<vmem>>, vector<8x128xf32>
    tpu.vector_store %arg4[%c0_92, %c0_93], %198 {strides = array<i32>} : memref<8x128xf32, #tpu.memory_space<vmem>>, vector<8x128xf32>,
    %201 = arith.index_cast %166 : i32 to index
    %c0_94 = arith.constant 0 : index
    %c0_95 = arith.constant 0 : index
    %202 = vector.load %arg3[%201, %c0_94, %c0_95] : memref<8x8x128xf32, #tpu.memory_space<vmem>>, vector<1x8x128xf32>
    %203 = vector.shape_cast %202 : vector<1x8x128xf32> to vector<8x128xf32>
    %204 = vector.shape_cast %198 : vector<8x128xf32> to vector<1x8x128xf32>
    tpu.vector_store %arg3[%201, %c0_94, %c0_95], %204 {strides = array<i32>} : memref<8x8x128xf32, #tpu.memory_space<vmem>>, vector<1x8x128xf32>,
    %c5_i32 = arith.constant 5 : i32
    %c1_i32_96 = arith.constant 1 : i32
    %205 = arith.muli %c5_i32, %c1_i32_96 : i32
    %c0_i32_97 = arith.constant 0 : i32
    %206 = arith.addi %c0_i32_97, %205 : i32
    %207 = arith.index_cast %206 : i32 to index
    %c0_98 = arith.constant 0 : index
    %c0_99 = arith.constant 0 : index
    %208 = vector.load %arg1[%207, %c0_98, %c0_99] : memref<8x8x512xf32, #tpu.memory_space<vmem>>, vector<1x8x512xf32>
    %209 = vector.shape_cast %208 : vector<1x8x512xf32> to vector<8x512xf32>
    %c0_100 = arith.constant 0 : index
    %c0_101 = arith.constant 0 : index
    %210 = vector.load %arg4[%c0_100, %c0_101] : memref<8x128xf32, #tpu.memory_space<vmem>>, vector<8x128xf32>
    %cst_102 = arith.constant dense<0.000000e+00> : vector<8x512xf32>
    %211 = tpu.matmul %210, %4, %cst_102 {dimension_numbers = #tpu.dot_dimension_numbers<[1], [0], [0], [1], [0, 0, 1, 1], [], []>} : vector<8x128xf32>, vector<128x512xf32>, vector<8x512xf32> -> vector<8x512xf32>
    %212 = arith.addf %209, %211 : vector<8x512xf32>
    %213 = vector.extract_strided_slice %212 {offsets = [0, 0], sizes = [8, 128], strides = [1, 1]} : vector<8x512xf32> to vector<8x128xf32>
    %214 = arith.negf %213 : vector<8x128xf32>
    %215 = math.exp %214 : vector<8x128xf32>
    %cst_103 = arith.constant 1.000000e+00 : f32
    %216 = vector.broadcast %cst_103 : f32 to vector<8x128xf32>
    %217 = arith.addf %216, %215 : vector<8x128xf32>
    %218 = arith.divf %216, %217 : vector<8x128xf32>
    %219 = vector.extract_strided_slice %212 {offsets = [0, 128], sizes = [8, 128], strides = [1, 1]} : vector<8x512xf32> to vector<8x128xf32>
    %220 = arith.negf %219 : vector<8x128xf32>
    %221 = math.exp %220 : vector<8x128xf32>
    %cst_104 = arith.constant 1.000000e+00 : f32
    %222 = vector.broadcast %cst_104 : f32 to vector<8x128xf32>
    %223 = arith.addf %222, %221 : vector<8x128xf32>
    %224 = arith.divf %222, %223 : vector<8x128xf32>
    %225 = vector.extract_strided_slice %212 {offsets = [0, 256], sizes = [8, 128], strides = [1, 1]} : vector<8x512xf32> to vector<8x128xf32>
    %226 = math.tanh %225 : vector<8x128xf32>
    %227 = vector.extract_strided_slice %212 {offsets = [0, 384], sizes = [8, 128], strides = [1, 1]} : vector<8x512xf32> to vector<8x128xf32>
    %228 = arith.negf %227 : vector<8x128xf32>
    %229 = math.exp %228 : vector<8x128xf32>
    %cst_105 = arith.constant 1.000000e+00 : f32
    %230 = vector.broadcast %cst_105 : f32 to vector<8x128xf32>
    %231 = arith.addf %230, %229 : vector<8x128xf32>
    %232 = arith.divf %230, %231 : vector<8x128xf32>
    %c0_106 = arith.constant 0 : index
    %c0_107 = arith.constant 0 : index
    %233 = vector.load %arg5[%c0_106, %c0_107] : memref<8x128xf32, #tpu.memory_space<vmem>>, vector<8x128xf32>
    %234 = arith.mulf %224, %233 : vector<8x128xf32>
    %235 = arith.mulf %218, %226 : vector<8x128xf32>
    %236 = arith.addf %234, %235 : vector<8x128xf32>
    %237 = math.tanh %236 : vector<8x128xf32>
    %238 = arith.mulf %232, %237 : vector<8x128xf32>
    %c0_108 = arith.constant 0 : index
    %c0_109 = arith.constant 0 : index
    %239 = vector.load %arg5[%c0_108, %c0_109] : memref<8x128xf32, #tpu.memory_space<vmem>>, vector<8x128xf32>
    tpu.vector_store %arg5[%c0_108, %c0_109], %236 {strides = array<i32>} : memref<8x128xf32, #tpu.memory_space<vmem>>, vector<8x128xf32>,
    %c0_110 = arith.constant 0 : index
    %c0_111 = arith.constant 0 : index
    %240 = vector.load %arg4[%c0_110, %c0_111] : memref<8x128xf32, #tpu.memory_space<vmem>>, vector<8x128xf32>
    tpu.vector_store %arg4[%c0_110, %c0_111], %238 {strides = array<i32>} : memref<8x128xf32, #tpu.memory_space<vmem>>, vector<8x128xf32>,
    %241 = arith.index_cast %206 : i32 to index
    %c0_112 = arith.constant 0 : index
    %c0_113 = arith.constant 0 : index
    %242 = vector.load %arg3[%241, %c0_112, %c0_113] : memref<8x8x128xf32, #tpu.memory_space<vmem>>, vector<1x8x128xf32>
    %243 = vector.shape_cast %242 : vector<1x8x128xf32> to vector<8x128xf32>
    %244 = vector.shape_cast %238 : vector<8x128xf32> to vector<1x8x128xf32>
    tpu.vector_store %arg3[%241, %c0_112, %c0_113], %244 {strides = array<i32>} : memref<8x8x128xf32, #tpu.memory_space<vmem>>, vector<1x8x128xf32>,
    %c6_i32 = arith.constant 6 : i32
    %c1_i32_114 = arith.constant 1 : i32
    %245 = arith.muli %c6_i32, %c1_i32_114 : i32
    %c0_i32_115 = arith.constant 0 : i32
    %246 = arith.addi %c0_i32_115, %245 : i32
    %247 = arith.index_cast %246 : i32 to index
    %c0_116 = arith.constant 0 : index
    %c0_117 = arith.constant 0 : index
    %248 = vector.load %arg1[%247, %c0_116, %c0_117] : memref<8x8x512xf32, #tpu.memory_space<vmem>>, vector<1x8x512xf32>
    %249 = vector.shape_cast %248 : vector<1x8x512xf32> to vector<8x512xf32>
    %c0_118 = arith.constant 0 : index
    %c0_119 = arith.constant 0 : index
    %250 = vector.load %arg4[%c0_118, %c0_119] : memref<8x128xf32, #tpu.memory_space<vmem>>, vector<8x128xf32>
    %cst_120 = arith.constant dense<0.000000e+00> : vector<8x512xf32>
    %251 = tpu.matmul %250, %4, %cst_120 {dimension_numbers = #tpu.dot_dimension_numbers<[1], [0], [0], [1], [0, 0, 1, 1], [], []>} : vector<8x128xf32>, vector<128x512xf32>, vector<8x512xf32> -> vector<8x512xf32>
    %252 = arith.addf %249, %251 : vector<8x512xf32>
    %253 = vector.extract_strided_slice %252 {offsets = [0, 0], sizes = [8, 128], strides = [1, 1]} : vector<8x512xf32> to vector<8x128xf32>
    %254 = arith.negf %253 : vector<8x128xf32>
    %255 = math.exp %254 : vector<8x128xf32>
    %cst_121 = arith.constant 1.000000e+00 : f32
    %256 = vector.broadcast %cst_121 : f32 to vector<8x128xf32>
    %257 = arith.addf %256, %255 : vector<8x128xf32>
    %258 = arith.divf %256, %257 : vector<8x128xf32>
    %259 = vector.extract_strided_slice %252 {offsets = [0, 128], sizes = [8, 128], strides = [1, 1]} : vector<8x512xf32> to vector<8x128xf32>
    %260 = arith.negf %259 : vector<8x128xf32>
    %261 = math.exp %260 : vector<8x128xf32>
    %cst_122 = arith.constant 1.000000e+00 : f32
    %262 = vector.broadcast %cst_122 : f32 to vector<8x128xf32>
    %263 = arith.addf %262, %261 : vector<8x128xf32>
    %264 = arith.divf %262, %263 : vector<8x128xf32>
    %265 = vector.extract_strided_slice %252 {offsets = [0, 256], sizes = [8, 128], strides = [1, 1]} : vector<8x512xf32> to vector<8x128xf32>
    %266 = math.tanh %265 : vector<8x128xf32>
    %267 = vector.extract_strided_slice %252 {offsets = [0, 384], sizes = [8, 128], strides = [1, 1]} : vector<8x512xf32> to vector<8x128xf32>
    %268 = arith.negf %267 : vector<8x128xf32>
    %269 = math.exp %268 : vector<8x128xf32>
    %cst_123 = arith.constant 1.000000e+00 : f32
    %270 = vector.broadcast %cst_123 : f32 to vector<8x128xf32>
    %271 = arith.addf %270, %269 : vector<8x128xf32>
    %272 = arith.divf %270, %271 : vector<8x128xf32>
    %c0_124 = arith.constant 0 : index
    %c0_125 = arith.constant 0 : index
    %273 = vector.load %arg5[%c0_124, %c0_125] : memref<8x128xf32, #tpu.memory_space<vmem>>, vector<8x128xf32>
    %274 = arith.mulf %264, %273 : vector<8x128xf32>
    %275 = arith.mulf %258, %266 : vector<8x128xf32>
    %276 = arith.addf %274, %275 : vector<8x128xf32>
    %277 = math.tanh %276 : vector<8x128xf32>
    %278 = arith.mulf %272, %277 : vector<8x128xf32>
    %c0_126 = arith.constant 0 : index
    %c0_127 = arith.constant 0 : index
    %279 = vector.load %arg5[%c0_126, %c0_127] : memref<8x128xf32, #tpu.memory_space<vmem>>, vector<8x128xf32>
    tpu.vector_store %arg5[%c0_126, %c0_127], %276 {strides = array<i32>} : memref<8x128xf32, #tpu.memory_space<vmem>>, vector<8x128xf32>,
    %c0_128 = arith.constant 0 : index
    %c0_129 = arith.constant 0 : index
    %280 = vector.load %arg4[%c0_128, %c0_129] : memref<8x128xf32, #tpu.memory_space<vmem>>, vector<8x128xf32>
    tpu.vector_store %arg4[%c0_128, %c0_129], %278 {strides = array<i32>} : memref<8x128xf32, #tpu.memory_space<vmem>>, vector<8x128xf32>,
    %281 = arith.index_cast %246 : i32 to index
    %c0_130 = arith.constant 0 : index
    %c0_131 = arith.constant 0 : index
    %282 = vector.load %arg3[%281, %c0_130, %c0_131] : memref<8x8x128xf32, #tpu.memory_space<vmem>>, vector<1x8x128xf32>
    %283 = vector.shape_cast %282 : vector<1x8x128xf32> to vector<8x128xf32>
    %284 = vector.shape_cast %278 : vector<8x128xf32> to vector<1x8x128xf32>
    tpu.vector_store %arg3[%281, %c0_130, %c0_131], %284 {strides = array<i32>} : memref<8x8x128xf32, #tpu.memory_space<vmem>>, vector<1x8x128xf32>,
    %c7_i32 = arith.constant 7 : i32
    %c1_i32_132 = arith.constant 1 : i32
    %285 = arith.muli %c7_i32, %c1_i32_132 : i32
    %c0_i32_133 = arith.constant 0 : i32
    %286 = arith.addi %c0_i32_133, %285 : i32
    %287 = arith.index_cast %286 : i32 to index
    %c0_134 = arith.constant 0 : index
    %c0_135 = arith.constant 0 : index
    %288 = vector.load %arg1[%287, %c0_134, %c0_135] : memref<8x8x512xf32, #tpu.memory_space<vmem>>, vector<1x8x512xf32>
    %289 = vector.shape_cast %288 : vector<1x8x512xf32> to vector<8x512xf32>
    %c0_136 = arith.constant 0 : index
    %c0_137 = arith.constant 0 : index
    %290 = vector.load %arg4[%c0_136, %c0_137] : memref<8x128xf32, #tpu.memory_space<vmem>>, vector<8x128xf32>
    %cst_138 = arith.constant dense<0.000000e+00> : vector<8x512xf32>
    %291 = tpu.matmul %290, %4, %cst_138 {dimension_numbers = #tpu.dot_dimension_numbers<[1], [0], [0], [1], [0, 0, 1, 1], [], []>} : vector<8x128xf32>, vector<128x512xf32>, vector<8x512xf32> -> vector<8x512xf32>
    %292 = arith.addf %289, %291 : vector<8x512xf32>
    %293 = vector.extract_strided_slice %292 {offsets = [0, 0], sizes = [8, 128], strides = [1, 1]} : vector<8x512xf32> to vector<8x128xf32>
    %294 = arith.negf %293 : vector<8x128xf32>
    %295 = math.exp %294 : vector<8x128xf32>
    %cst_139 = arith.constant 1.000000e+00 : f32
    %296 = vector.broadcast %cst_139 : f32 to vector<8x128xf32>
    %297 = arith.addf %296, %295 : vector<8x128xf32>
    %298 = arith.divf %296, %297 : vector<8x128xf32>
    %299 = vector.extract_strided_slice %292 {offsets = [0, 128], sizes = [8, 128], strides = [1, 1]} : vector<8x512xf32> to vector<8x128xf32>
    %300 = arith.negf %299 : vector<8x128xf32>
    %301 = math.exp %300 : vector<8x128xf32>
    %cst_140 = arith.constant 1.000000e+00 : f32
    %302 = vector.broadcast %cst_140 : f32 to vector<8x128xf32>
    %303 = arith.addf %302, %301 : vector<8x128xf32>
    %304 = arith.divf %302, %303 : vector<8x128xf32>
    %305 = vector.extract_strided_slice %292 {offsets = [0, 256], sizes = [8, 128], strides = [1, 1]} : vector<8x512xf32> to vector<8x128xf32>
    %306 = math.tanh %305 : vector<8x128xf32>
    %307 = vector.extract_strided_slice %292 {offsets = [0, 384], sizes = [8, 128], strides = [1, 1]} : vector<8x512xf32> to vector<8x128xf32>
    %308 = arith.negf %307 : vector<8x128xf32>
    %309 = math.exp %308 : vector<8x128xf32>
    %cst_141 = arith.constant 1.000000e+00 : f32
    %310 = vector.broadcast %cst_141 : f32 to vector<8x128xf32>
    %311 = arith.addf %310, %309 : vector<8x128xf32>
    %312 = arith.divf %310, %311 : vector<8x128xf32>
    %c0_142 = arith.constant 0 : index
    %c0_143 = arith.constant 0 : index
    %313 = vector.load %arg5[%c0_142, %c0_143] : memref<8x128xf32, #tpu.memory_space<vmem>>, vector<8x128xf32>
    %314 = arith.mulf %304, %313 : vector<8x128xf32>
    %315 = arith.mulf %298, %306 : vector<8x128xf32>
    %316 = arith.addf %314, %315 : vector<8x128xf32>
    %317 = math.tanh %316 : vector<8x128xf32>
    %318 = arith.mulf %312, %317 : vector<8x128xf32>
    %c0_144 = arith.constant 0 : index
    %c0_145 = arith.constant 0 : index
    %319 = vector.load %arg5[%c0_144, %c0_145] : memref<8x128xf32, #tpu.memory_space<vmem>>, vector<8x128xf32>
    tpu.vector_store %arg5[%c0_144, %c0_145], %316 {strides = array<i32>} : memref<8x128xf32, #tpu.memory_space<vmem>>, vector<8x128xf32>,
    %c0_146 = arith.constant 0 : index
    %c0_147 = arith.constant 0 : index
    %320 = vector.load %arg4[%c0_146, %c0_147] : memref<8x128xf32, #tpu.memory_space<vmem>>, vector<8x128xf32>
    tpu.vector_store %arg4[%c0_146, %c0_147], %318 {strides = array<i32>} : memref<8x128xf32, #tpu.memory_space<vmem>>, vector<8x128xf32>,
    %321 = arith.index_cast %286 : i32 to index
    %c0_148 = arith.constant 0 : index
    %c0_149 = arith.constant 0 : index
    %322 = vector.load %arg3[%321, %c0_148, %c0_149] : memref<8x8x128xf32, #tpu.memory_space<vmem>>, vector<1x8x128xf32>
    %323 = vector.shape_cast %322 : vector<1x8x128xf32> to vector<8x128xf32>
    %324 = vector.shape_cast %318 : vector<8x128xf32> to vector<1x8x128xf32>
    tpu.vector_store %arg3[%321, %c0_148, %c0_149], %324 {strides = array<i32>} : memref<8x8x128xf32, #tpu.memory_space<vmem>>, vector<1x8x128xf32>,
    %c8_i32 = arith.constant 8 : i32
    return
  }
  func.func @transform_0(%arg0: i32) -> (i32, i32, i32) {
    %c0_i32 = arith.constant 0 : i32
    %c0_i32_0 = arith.constant 0 : i32
    %c0_i32_1 = arith.constant 0 : i32
    %c0_i32_2 = arith.constant 0 : i32
    return %c0_i32, %c0_i32_0, %c0_i32_1 : i32, i32, i32
  }
  func.func @transform_1(%arg0: i32) -> (i32, i32) {
    %c0_i32 = arith.constant 0 : i32
    %c0_i32_0 = arith.constant 0 : i32
    %c0_i32_1 = arith.constant 0 : i32
    return %c0_i32, %c0_i32_0 : i32, i32
  }
  func.func @transform_2(%arg0: i32) -> (i32, i32, i32) {
    %c0_i32 = arith.constant 0 : i32
    %c0_i32_0 = arith.constant 0 : i32
    %c0_i32_1 = arith.constant 0 : i32
    %c0_i32_2 = arith.constant 0 : i32
    return %c0_i32, %c0_i32_0, %c0_i32_1 : i32, i32, i32
  }
}

module attributes {stable_mosaic.version = 11 : i64} {
  func.func @_lstm_recurrence_kernel(%arg0: i32, %arg1: memref<8x512xf32, #tpu.memory_space<vmem>>, %arg2: memref<128x512xf32, #tpu.memory_space<vmem>>, %arg3: memref<8x8x128xf32, #tpu.memory_space<vmem>>, %arg4: memref<8x128xf32, #tpu.memory_space<vmem>>, %arg5: memref<8x128xf32, #tpu.memory_space<vmem>>) attributes {dimension_semantics = [#tpu.dimension_semantics<arbitrary>], iteration_bounds = array<i64: 1>, scalar_prefetch = 0 : i64, scratch_operands = 2 : i64, tpu.core_type = #tpu.core_type<tc>, window_params = [{pipeline_mode = #tpu.pipeline_mode<synchronous>, transform_indices = @transform_0, window_bounds = array<i64: 8, 512>}, {pipeline_mode = #tpu.pipeline_mode<synchronous>, transform_indices = @transform_1, window_bounds = array<i64: 128, 512>}, {pipeline_mode = #tpu.pipeline_mode<synchronous>, transform_indices = @transform_2, window_bounds = array<i64: 8, 8, 128>}]} {
    %cst = arith.constant 0.000000e+00 : f32
    %0 = vector.broadcast %cst : f32 to vector<8x128xf32>
    %c0 = arith.constant 0 : index
    %c0_0 = arith.constant 0 : index
    %1 = vector.load %arg4[%c0, %c0_0] : memref<8x128xf32, #tpu.memory_space<vmem>>, vector<8x128xf32>
    tpu.vector_store %arg4[%c0, %c0_0], %0 {strides = array<i32>} : memref<8x128xf32, #tpu.memory_space<vmem>>, vector<8x128xf32>,
    %cst_1 = arith.constant 0.000000e+00 : f32
    %2 = vector.broadcast %cst_1 : f32 to vector<8x128xf32>
    %c0_2 = arith.constant 0 : index
    %c0_3 = arith.constant 0 : index
    %3 = vector.load %arg5[%c0_2, %c0_3] : memref<8x128xf32, #tpu.memory_space<vmem>>, vector<8x128xf32>
    tpu.vector_store %arg5[%c0_2, %c0_3], %2 {strides = array<i32>} : memref<8x128xf32, #tpu.memory_space<vmem>>, vector<8x128xf32>,
    %c0_4 = arith.constant 0 : index
    %c0_5 = arith.constant 0 : index
    %4 = vector.load %arg2[%c0_4, %c0_5] : memref<128x512xf32, #tpu.memory_space<vmem>>, vector<128x512xf32>
    %c0_6 = arith.constant 0 : index
    %c0_7 = arith.constant 0 : index
    %5 = vector.load %arg1[%c0_6, %c0_7] : memref<8x512xf32, #tpu.memory_space<vmem>>, vector<8x512xf32>
    %c0_i32 = arith.constant 0 : i32
    %c1_i32 = arith.constant 1 : i32
    %6 = arith.muli %c0_i32, %c1_i32 : i32
    %c0_i32_8 = arith.constant 0 : i32
    %7 = arith.addi %c0_i32_8, %6 : i32
    %c0_9 = arith.constant 0 : index
    %c0_10 = arith.constant 0 : index
    %8 = vector.load %arg4[%c0_9, %c0_10] : memref<8x128xf32, #tpu.memory_space<vmem>>, vector<8x128xf32>
    %cst_11 = arith.constant dense<0.000000e+00> : vector<8x512xf32>
    %9 = tpu.matmul %8, %4, %cst_11 {dimension_numbers = #tpu.dot_dimension_numbers<[1], [0], [0], [1], [0, 0, 1, 1], [], []>} : vector<8x128xf32>, vector<128x512xf32>, vector<8x512xf32> -> vector<8x512xf32>
    %10 = arith.addf %5, %9 : vector<8x512xf32>
    %11 = vector.extract_strided_slice %10 {offsets = [0, 0], sizes = [8, 128], strides = [1, 1]} : vector<8x512xf32> to vector<8x128xf32>
    %12 = arith.negf %11 : vector<8x128xf32>
    %13 = math.exp %12 : vector<8x128xf32>
    %cst_12 = arith.constant 1.000000e+00 : f32
    %14 = vector.broadcast %cst_12 : f32 to vector<8x128xf32>
    %15 = arith.addf %14, %13 : vector<8x128xf32>
    %16 = arith.divf %14, %15 : vector<8x128xf32>
    %17 = vector.extract_strided_slice %10 {offsets = [0, 128], sizes = [8, 128], strides = [1, 1]} : vector<8x512xf32> to vector<8x128xf32>
    %18 = arith.negf %17 : vector<8x128xf32>
    %19 = math.exp %18 : vector<8x128xf32>
    %cst_13 = arith.constant 1.000000e+00 : f32
    %20 = vector.broadcast %cst_13 : f32 to vector<8x128xf32>
    %21 = arith.addf %20, %19 : vector<8x128xf32>
    %22 = arith.divf %20, %21 : vector<8x128xf32>
    %23 = vector.extract_strided_slice %10 {offsets = [0, 256], sizes = [8, 128], strides = [1, 1]} : vector<8x512xf32> to vector<8x128xf32>
    %24 = math.tanh %23 : vector<8x128xf32>
    %25 = vector.extract_strided_slice %10 {offsets = [0, 384], sizes = [8, 128], strides = [1, 1]} : vector<8x512xf32> to vector<8x128xf32>
    %26 = arith.negf %25 : vector<8x128xf32>
    %27 = math.exp %26 : vector<8x128xf32>
    %cst_14 = arith.constant 1.000000e+00 : f32
    %28 = vector.broadcast %cst_14 : f32 to vector<8x128xf32>
    %29 = arith.addf %28, %27 : vector<8x128xf32>
    %30 = arith.divf %28, %29 : vector<8x128xf32>
    %c0_15 = arith.constant 0 : index
    %c0_16 = arith.constant 0 : index
    %31 = vector.load %arg5[%c0_15, %c0_16] : memref<8x128xf32, #tpu.memory_space<vmem>>, vector<8x128xf32>
    %32 = arith.mulf %22, %31 : vector<8x128xf32>
    %33 = arith.mulf %16, %24 : vector<8x128xf32>
    %34 = arith.addf %32, %33 : vector<8x128xf32>
    %35 = math.tanh %34 : vector<8x128xf32>
    %36 = arith.mulf %30, %35 : vector<8x128xf32>
    %c0_17 = arith.constant 0 : index
    %c0_18 = arith.constant 0 : index
    %37 = vector.load %arg5[%c0_17, %c0_18] : memref<8x128xf32, #tpu.memory_space<vmem>>, vector<8x128xf32>
    tpu.vector_store %arg5[%c0_17, %c0_18], %34 {strides = array<i32>} : memref<8x128xf32, #tpu.memory_space<vmem>>, vector<8x128xf32>,
    %c0_19 = arith.constant 0 : index
    %c0_20 = arith.constant 0 : index
    %38 = vector.load %arg4[%c0_19, %c0_20] : memref<8x128xf32, #tpu.memory_space<vmem>>, vector<8x128xf32>
    tpu.vector_store %arg4[%c0_19, %c0_20], %36 {strides = array<i32>} : memref<8x128xf32, #tpu.memory_space<vmem>>, vector<8x128xf32>,
    %39 = arith.index_cast %7 : i32 to index
    %c0_21 = arith.constant 0 : index
    %c0_22 = arith.constant 0 : index
    %40 = vector.load %arg3[%39, %c0_21, %c0_22] : memref<8x8x128xf32, #tpu.memory_space<vmem>>, vector<1x8x128xf32>
    %41 = vector.shape_cast %40 : vector<1x8x128xf32> to vector<8x128xf32>
    %42 = vector.shape_cast %36 : vector<8x128xf32> to vector<1x8x128xf32>
    tpu.vector_store %arg3[%39, %c0_21, %c0_22], %42 {strides = array<i32>} : memref<8x8x128xf32, #tpu.memory_space<vmem>>, vector<1x8x128xf32>,
    %c1_i32_23 = arith.constant 1 : i32
    %c1_i32_24 = arith.constant 1 : i32
    %43 = arith.muli %c1_i32_23, %c1_i32_24 : i32
    %c0_i32_25 = arith.constant 0 : i32
    %44 = arith.addi %c0_i32_25, %43 : i32
    %c0_26 = arith.constant 0 : index
    %c0_27 = arith.constant 0 : index
    %45 = vector.load %arg4[%c0_26, %c0_27] : memref<8x128xf32, #tpu.memory_space<vmem>>, vector<8x128xf32>
    %cst_28 = arith.constant dense<0.000000e+00> : vector<8x512xf32>
    %46 = tpu.matmul %45, %4, %cst_28 {dimension_numbers = #tpu.dot_dimension_numbers<[1], [0], [0], [1], [0, 0, 1, 1], [], []>} : vector<8x128xf32>, vector<128x512xf32>, vector<8x512xf32> -> vector<8x512xf32>
    %47 = arith.addf %5, %46 : vector<8x512xf32>
    %48 = vector.extract_strided_slice %47 {offsets = [0, 0], sizes = [8, 128], strides = [1, 1]} : vector<8x512xf32> to vector<8x128xf32>
    %49 = arith.negf %48 : vector<8x128xf32>
    %50 = math.exp %49 : vector<8x128xf32>
    %cst_29 = arith.constant 1.000000e+00 : f32
    %51 = vector.broadcast %cst_29 : f32 to vector<8x128xf32>
    %52 = arith.addf %51, %50 : vector<8x128xf32>
    %53 = arith.divf %51, %52 : vector<8x128xf32>
    %54 = vector.extract_strided_slice %47 {offsets = [0, 128], sizes = [8, 128], strides = [1, 1]} : vector<8x512xf32> to vector<8x128xf32>
    %55 = arith.negf %54 : vector<8x128xf32>
    %56 = math.exp %55 : vector<8x128xf32>
    %cst_30 = arith.constant 1.000000e+00 : f32
    %57 = vector.broadcast %cst_30 : f32 to vector<8x128xf32>
    %58 = arith.addf %57, %56 : vector<8x128xf32>
    %59 = arith.divf %57, %58 : vector<8x128xf32>
    %60 = vector.extract_strided_slice %47 {offsets = [0, 256], sizes = [8, 128], strides = [1, 1]} : vector<8x512xf32> to vector<8x128xf32>
    %61 = math.tanh %60 : vector<8x128xf32>
    %62 = vector.extract_strided_slice %47 {offsets = [0, 384], sizes = [8, 128], strides = [1, 1]} : vector<8x512xf32> to vector<8x128xf32>
    %63 = arith.negf %62 : vector<8x128xf32>
    %64 = math.exp %63 : vector<8x128xf32>
    %cst_31 = arith.constant 1.000000e+00 : f32
    %65 = vector.broadcast %cst_31 : f32 to vector<8x128xf32>
    %66 = arith.addf %65, %64 : vector<8x128xf32>
    %67 = arith.divf %65, %66 : vector<8x128xf32>
    %c0_32 = arith.constant 0 : index
    %c0_33 = arith.constant 0 : index
    %68 = vector.load %arg5[%c0_32, %c0_33] : memref<8x128xf32, #tpu.memory_space<vmem>>, vector<8x128xf32>
    %69 = arith.mulf %59, %68 : vector<8x128xf32>
    %70 = arith.mulf %53, %61 : vector<8x128xf32>
    %71 = arith.addf %69, %70 : vector<8x128xf32>
    %72 = math.tanh %71 : vector<8x128xf32>
    %73 = arith.mulf %67, %72 : vector<8x128xf32>
    %c0_34 = arith.constant 0 : index
    %c0_35 = arith.constant 0 : index
    %74 = vector.load %arg5[%c0_34, %c0_35] : memref<8x128xf32, #tpu.memory_space<vmem>>, vector<8x128xf32>
    tpu.vector_store %arg5[%c0_34, %c0_35], %71 {strides = array<i32>} : memref<8x128xf32, #tpu.memory_space<vmem>>, vector<8x128xf32>,
    %c0_36 = arith.constant 0 : index
    %c0_37 = arith.constant 0 : index
    %75 = vector.load %arg4[%c0_36, %c0_37] : memref<8x128xf32, #tpu.memory_space<vmem>>, vector<8x128xf32>
    tpu.vector_store %arg4[%c0_36, %c0_37], %73 {strides = array<i32>} : memref<8x128xf32, #tpu.memory_space<vmem>>, vector<8x128xf32>,
    %76 = arith.index_cast %44 : i32 to index
    %c0_38 = arith.constant 0 : index
    %c0_39 = arith.constant 0 : index
    %77 = vector.load %arg3[%76, %c0_38, %c0_39] : memref<8x8x128xf32, #tpu.memory_space<vmem>>, vector<1x8x128xf32>
    %78 = vector.shape_cast %77 : vector<1x8x128xf32> to vector<8x128xf32>
    %79 = vector.shape_cast %73 : vector<8x128xf32> to vector<1x8x128xf32>
    tpu.vector_store %arg3[%76, %c0_38, %c0_39], %79 {strides = array<i32>} : memref<8x8x128xf32, #tpu.memory_space<vmem>>, vector<1x8x128xf32>,
    %c2_i32 = arith.constant 2 : i32
    %c1_i32_40 = arith.constant 1 : i32
    %80 = arith.muli %c2_i32, %c1_i32_40 : i32
    %c0_i32_41 = arith.constant 0 : i32
    %81 = arith.addi %c0_i32_41, %80 : i32
    %c0_42 = arith.constant 0 : index
    %c0_43 = arith.constant 0 : index
    %82 = vector.load %arg4[%c0_42, %c0_43] : memref<8x128xf32, #tpu.memory_space<vmem>>, vector<8x128xf32>
    %cst_44 = arith.constant dense<0.000000e+00> : vector<8x512xf32>
    %83 = tpu.matmul %82, %4, %cst_44 {dimension_numbers = #tpu.dot_dimension_numbers<[1], [0], [0], [1], [0, 0, 1, 1], [], []>} : vector<8x128xf32>, vector<128x512xf32>, vector<8x512xf32> -> vector<8x512xf32>
    %84 = arith.addf %5, %83 : vector<8x512xf32>
    %85 = vector.extract_strided_slice %84 {offsets = [0, 0], sizes = [8, 128], strides = [1, 1]} : vector<8x512xf32> to vector<8x128xf32>
    %86 = arith.negf %85 : vector<8x128xf32>
    %87 = math.exp %86 : vector<8x128xf32>
    %cst_45 = arith.constant 1.000000e+00 : f32
    %88 = vector.broadcast %cst_45 : f32 to vector<8x128xf32>
    %89 = arith.addf %88, %87 : vector<8x128xf32>
    %90 = arith.divf %88, %89 : vector<8x128xf32>
    %91 = vector.extract_strided_slice %84 {offsets = [0, 128], sizes = [8, 128], strides = [1, 1]} : vector<8x512xf32> to vector<8x128xf32>
    %92 = arith.negf %91 : vector<8x128xf32>
    %93 = math.exp %92 : vector<8x128xf32>
    %cst_46 = arith.constant 1.000000e+00 : f32
    %94 = vector.broadcast %cst_46 : f32 to vector<8x128xf32>
    %95 = arith.addf %94, %93 : vector<8x128xf32>
    %96 = arith.divf %94, %95 : vector<8x128xf32>
    %97 = vector.extract_strided_slice %84 {offsets = [0, 256], sizes = [8, 128], strides = [1, 1]} : vector<8x512xf32> to vector<8x128xf32>
    %98 = math.tanh %97 : vector<8x128xf32>
    %99 = vector.extract_strided_slice %84 {offsets = [0, 384], sizes = [8, 128], strides = [1, 1]} : vector<8x512xf32> to vector<8x128xf32>
    %100 = arith.negf %99 : vector<8x128xf32>
    %101 = math.exp %100 : vector<8x128xf32>
    %cst_47 = arith.constant 1.000000e+00 : f32
    %102 = vector.broadcast %cst_47 : f32 to vector<8x128xf32>
    %103 = arith.addf %102, %101 : vector<8x128xf32>
    %104 = arith.divf %102, %103 : vector<8x128xf32>
    %c0_48 = arith.constant 0 : index
    %c0_49 = arith.constant 0 : index
    %105 = vector.load %arg5[%c0_48, %c0_49] : memref<8x128xf32, #tpu.memory_space<vmem>>, vector<8x128xf32>
    %106 = arith.mulf %96, %105 : vector<8x128xf32>
    %107 = arith.mulf %90, %98 : vector<8x128xf32>
    %108 = arith.addf %106, %107 : vector<8x128xf32>
    %109 = math.tanh %108 : vector<8x128xf32>
    %110 = arith.mulf %104, %109 : vector<8x128xf32>
    %c0_50 = arith.constant 0 : index
    %c0_51 = arith.constant 0 : index
    %111 = vector.load %arg5[%c0_50, %c0_51] : memref<8x128xf32, #tpu.memory_space<vmem>>, vector<8x128xf32>
    tpu.vector_store %arg5[%c0_50, %c0_51], %108 {strides = array<i32>} : memref<8x128xf32, #tpu.memory_space<vmem>>, vector<8x128xf32>,
    %c0_52 = arith.constant 0 : index
    %c0_53 = arith.constant 0 : index
    %112 = vector.load %arg4[%c0_52, %c0_53] : memref<8x128xf32, #tpu.memory_space<vmem>>, vector<8x128xf32>
    tpu.vector_store %arg4[%c0_52, %c0_53], %110 {strides = array<i32>} : memref<8x128xf32, #tpu.memory_space<vmem>>, vector<8x128xf32>,
    %113 = arith.index_cast %81 : i32 to index
    %c0_54 = arith.constant 0 : index
    %c0_55 = arith.constant 0 : index
    %114 = vector.load %arg3[%113, %c0_54, %c0_55] : memref<8x8x128xf32, #tpu.memory_space<vmem>>, vector<1x8x128xf32>
    %115 = vector.shape_cast %114 : vector<1x8x128xf32> to vector<8x128xf32>
    %116 = vector.shape_cast %110 : vector<8x128xf32> to vector<1x8x128xf32>
    tpu.vector_store %arg3[%113, %c0_54, %c0_55], %116 {strides = array<i32>} : memref<8x8x128xf32, #tpu.memory_space<vmem>>, vector<1x8x128xf32>,
    %c3_i32 = arith.constant 3 : i32
    %c1_i32_56 = arith.constant 1 : i32
    %117 = arith.muli %c3_i32, %c1_i32_56 : i32
    %c0_i32_57 = arith.constant 0 : i32
    %118 = arith.addi %c0_i32_57, %117 : i32
    %c0_58 = arith.constant 0 : index
    %c0_59 = arith.constant 0 : index
    %119 = vector.load %arg4[%c0_58, %c0_59] : memref<8x128xf32, #tpu.memory_space<vmem>>, vector<8x128xf32>
    %cst_60 = arith.constant dense<0.000000e+00> : vector<8x512xf32>
    %120 = tpu.matmul %119, %4, %cst_60 {dimension_numbers = #tpu.dot_dimension_numbers<[1], [0], [0], [1], [0, 0, 1, 1], [], []>} : vector<8x128xf32>, vector<128x512xf32>, vector<8x512xf32> -> vector<8x512xf32>
    %121 = arith.addf %5, %120 : vector<8x512xf32>
    %122 = vector.extract_strided_slice %121 {offsets = [0, 0], sizes = [8, 128], strides = [1, 1]} : vector<8x512xf32> to vector<8x128xf32>
    %123 = arith.negf %122 : vector<8x128xf32>
    %124 = math.exp %123 : vector<8x128xf32>
    %cst_61 = arith.constant 1.000000e+00 : f32
    %125 = vector.broadcast %cst_61 : f32 to vector<8x128xf32>
    %126 = arith.addf %125, %124 : vector<8x128xf32>
    %127 = arith.divf %125, %126 : vector<8x128xf32>
    %128 = vector.extract_strided_slice %121 {offsets = [0, 128], sizes = [8, 128], strides = [1, 1]} : vector<8x512xf32> to vector<8x128xf32>
    %129 = arith.negf %128 : vector<8x128xf32>
    %130 = math.exp %129 : vector<8x128xf32>
    %cst_62 = arith.constant 1.000000e+00 : f32
    %131 = vector.broadcast %cst_62 : f32 to vector<8x128xf32>
    %132 = arith.addf %131, %130 : vector<8x128xf32>
    %133 = arith.divf %131, %132 : vector<8x128xf32>
    %134 = vector.extract_strided_slice %121 {offsets = [0, 256], sizes = [8, 128], strides = [1, 1]} : vector<8x512xf32> to vector<8x128xf32>
    %135 = math.tanh %134 : vector<8x128xf32>
    %136 = vector.extract_strided_slice %121 {offsets = [0, 384], sizes = [8, 128], strides = [1, 1]} : vector<8x512xf32> to vector<8x128xf32>
    %137 = arith.negf %136 : vector<8x128xf32>
    %138 = math.exp %137 : vector<8x128xf32>
    %cst_63 = arith.constant 1.000000e+00 : f32
    %139 = vector.broadcast %cst_63 : f32 to vector<8x128xf32>
    %140 = arith.addf %139, %138 : vector<8x128xf32>
    %141 = arith.divf %139, %140 : vector<8x128xf32>
    %c0_64 = arith.constant 0 : index
    %c0_65 = arith.constant 0 : index
    %142 = vector.load %arg5[%c0_64, %c0_65] : memref<8x128xf32, #tpu.memory_space<vmem>>, vector<8x128xf32>
    %143 = arith.mulf %133, %142 : vector<8x128xf32>
    %144 = arith.mulf %127, %135 : vector<8x128xf32>
    %145 = arith.addf %143, %144 : vector<8x128xf32>
    %146 = math.tanh %145 : vector<8x128xf32>
    %147 = arith.mulf %141, %146 : vector<8x128xf32>
    %c0_66 = arith.constant 0 : index
    %c0_67 = arith.constant 0 : index
    %148 = vector.load %arg5[%c0_66, %c0_67] : memref<8x128xf32, #tpu.memory_space<vmem>>, vector<8x128xf32>
    tpu.vector_store %arg5[%c0_66, %c0_67], %145 {strides = array<i32>} : memref<8x128xf32, #tpu.memory_space<vmem>>, vector<8x128xf32>,
    %c0_68 = arith.constant 0 : index
    %c0_69 = arith.constant 0 : index
    %149 = vector.load %arg4[%c0_68, %c0_69] : memref<8x128xf32, #tpu.memory_space<vmem>>, vector<8x128xf32>
    tpu.vector_store %arg4[%c0_68, %c0_69], %147 {strides = array<i32>} : memref<8x128xf32, #tpu.memory_space<vmem>>, vector<8x128xf32>,
    %150 = arith.index_cast %118 : i32 to index
    %c0_70 = arith.constant 0 : index
    %c0_71 = arith.constant 0 : index
    %151 = vector.load %arg3[%150, %c0_70, %c0_71] : memref<8x8x128xf32, #tpu.memory_space<vmem>>, vector<1x8x128xf32>
    %152 = vector.shape_cast %151 : vector<1x8x128xf32> to vector<8x128xf32>
    %153 = vector.shape_cast %147 : vector<8x128xf32> to vector<1x8x128xf32>
    tpu.vector_store %arg3[%150, %c0_70, %c0_71], %153 {strides = array<i32>} : memref<8x8x128xf32, #tpu.memory_space<vmem>>, vector<1x8x128xf32>,
    %c4_i32 = arith.constant 4 : i32
    %c1_i32_72 = arith.constant 1 : i32
    %154 = arith.muli %c4_i32, %c1_i32_72 : i32
    %c0_i32_73 = arith.constant 0 : i32
    %155 = arith.addi %c0_i32_73, %154 : i32
    %c0_74 = arith.constant 0 : index
    %c0_75 = arith.constant 0 : index
    %156 = vector.load %arg4[%c0_74, %c0_75] : memref<8x128xf32, #tpu.memory_space<vmem>>, vector<8x128xf32>
    %cst_76 = arith.constant dense<0.000000e+00> : vector<8x512xf32>
    %157 = tpu.matmul %156, %4, %cst_76 {dimension_numbers = #tpu.dot_dimension_numbers<[1], [0], [0], [1], [0, 0, 1, 1], [], []>} : vector<8x128xf32>, vector<128x512xf32>, vector<8x512xf32> -> vector<8x512xf32>
    %158 = arith.addf %5, %157 : vector<8x512xf32>
    %159 = vector.extract_strided_slice %158 {offsets = [0, 0], sizes = [8, 128], strides = [1, 1]} : vector<8x512xf32> to vector<8x128xf32>
    %160 = arith.negf %159 : vector<8x128xf32>
    %161 = math.exp %160 : vector<8x128xf32>
    %cst_77 = arith.constant 1.000000e+00 : f32
    %162 = vector.broadcast %cst_77 : f32 to vector<8x128xf32>
    %163 = arith.addf %162, %161 : vector<8x128xf32>
    %164 = arith.divf %162, %163 : vector<8x128xf32>
    %165 = vector.extract_strided_slice %158 {offsets = [0, 128], sizes = [8, 128], strides = [1, 1]} : vector<8x512xf32> to vector<8x128xf32>
    %166 = arith.negf %165 : vector<8x128xf32>
    %167 = math.exp %166 : vector<8x128xf32>
    %cst_78 = arith.constant 1.000000e+00 : f32
    %168 = vector.broadcast %cst_78 : f32 to vector<8x128xf32>
    %169 = arith.addf %168, %167 : vector<8x128xf32>
    %170 = arith.divf %168, %169 : vector<8x128xf32>
    %171 = vector.extract_strided_slice %158 {offsets = [0, 256], sizes = [8, 128], strides = [1, 1]} : vector<8x512xf32> to vector<8x128xf32>
    %172 = math.tanh %171 : vector<8x128xf32>
    %173 = vector.extract_strided_slice %158 {offsets = [0, 384], sizes = [8, 128], strides = [1, 1]} : vector<8x512xf32> to vector<8x128xf32>
    %174 = arith.negf %173 : vector<8x128xf32>
    %175 = math.exp %174 : vector<8x128xf32>
    %cst_79 = arith.constant 1.000000e+00 : f32
    %176 = vector.broadcast %cst_79 : f32 to vector<8x128xf32>
    %177 = arith.addf %176, %175 : vector<8x128xf32>
    %178 = arith.divf %176, %177 : vector<8x128xf32>
    %c0_80 = arith.constant 0 : index
    %c0_81 = arith.constant 0 : index
    %179 = vector.load %arg5[%c0_80, %c0_81] : memref<8x128xf32, #tpu.memory_space<vmem>>, vector<8x128xf32>
    %180 = arith.mulf %170, %179 : vector<8x128xf32>
    %181 = arith.mulf %164, %172 : vector<8x128xf32>
    %182 = arith.addf %180, %181 : vector<8x128xf32>
    %183 = math.tanh %182 : vector<8x128xf32>
    %184 = arith.mulf %178, %183 : vector<8x128xf32>
    %c0_82 = arith.constant 0 : index
    %c0_83 = arith.constant 0 : index
    %185 = vector.load %arg5[%c0_82, %c0_83] : memref<8x128xf32, #tpu.memory_space<vmem>>, vector<8x128xf32>
    tpu.vector_store %arg5[%c0_82, %c0_83], %182 {strides = array<i32>} : memref<8x128xf32, #tpu.memory_space<vmem>>, vector<8x128xf32>,
    %c0_84 = arith.constant 0 : index
    %c0_85 = arith.constant 0 : index
    %186 = vector.load %arg4[%c0_84, %c0_85] : memref<8x128xf32, #tpu.memory_space<vmem>>, vector<8x128xf32>
    tpu.vector_store %arg4[%c0_84, %c0_85], %184 {strides = array<i32>} : memref<8x128xf32, #tpu.memory_space<vmem>>, vector<8x128xf32>,
    %187 = arith.index_cast %155 : i32 to index
    %c0_86 = arith.constant 0 : index
    %c0_87 = arith.constant 0 : index
    %188 = vector.load %arg3[%187, %c0_86, %c0_87] : memref<8x8x128xf32, #tpu.memory_space<vmem>>, vector<1x8x128xf32>
    %189 = vector.shape_cast %188 : vector<1x8x128xf32> to vector<8x128xf32>
    %190 = vector.shape_cast %184 : vector<8x128xf32> to vector<1x8x128xf32>
    tpu.vector_store %arg3[%187, %c0_86, %c0_87], %190 {strides = array<i32>} : memref<8x8x128xf32, #tpu.memory_space<vmem>>, vector<1x8x128xf32>,
    %c5_i32 = arith.constant 5 : i32
    %c1_i32_88 = arith.constant 1 : i32
    %191 = arith.muli %c5_i32, %c1_i32_88 : i32
    %c0_i32_89 = arith.constant 0 : i32
    %192 = arith.addi %c0_i32_89, %191 : i32
    %c0_90 = arith.constant 0 : index
    %c0_91 = arith.constant 0 : index
    %193 = vector.load %arg4[%c0_90, %c0_91] : memref<8x128xf32, #tpu.memory_space<vmem>>, vector<8x128xf32>
    %cst_92 = arith.constant dense<0.000000e+00> : vector<8x512xf32>
    %194 = tpu.matmul %193, %4, %cst_92 {dimension_numbers = #tpu.dot_dimension_numbers<[1], [0], [0], [1], [0, 0, 1, 1], [], []>} : vector<8x128xf32>, vector<128x512xf32>, vector<8x512xf32> -> vector<8x512xf32>
    %195 = arith.addf %5, %194 : vector<8x512xf32>
    %196 = vector.extract_strided_slice %195 {offsets = [0, 0], sizes = [8, 128], strides = [1, 1]} : vector<8x512xf32> to vector<8x128xf32>
    %197 = arith.negf %196 : vector<8x128xf32>
    %198 = math.exp %197 : vector<8x128xf32>
    %cst_93 = arith.constant 1.000000e+00 : f32
    %199 = vector.broadcast %cst_93 : f32 to vector<8x128xf32>
    %200 = arith.addf %199, %198 : vector<8x128xf32>
    %201 = arith.divf %199, %200 : vector<8x128xf32>
    %202 = vector.extract_strided_slice %195 {offsets = [0, 128], sizes = [8, 128], strides = [1, 1]} : vector<8x512xf32> to vector<8x128xf32>
    %203 = arith.negf %202 : vector<8x128xf32>
    %204 = math.exp %203 : vector<8x128xf32>
    %cst_94 = arith.constant 1.000000e+00 : f32
    %205 = vector.broadcast %cst_94 : f32 to vector<8x128xf32>
    %206 = arith.addf %205, %204 : vector<8x128xf32>
    %207 = arith.divf %205, %206 : vector<8x128xf32>
    %208 = vector.extract_strided_slice %195 {offsets = [0, 256], sizes = [8, 128], strides = [1, 1]} : vector<8x512xf32> to vector<8x128xf32>
    %209 = math.tanh %208 : vector<8x128xf32>
    %210 = vector.extract_strided_slice %195 {offsets = [0, 384], sizes = [8, 128], strides = [1, 1]} : vector<8x512xf32> to vector<8x128xf32>
    %211 = arith.negf %210 : vector<8x128xf32>
    %212 = math.exp %211 : vector<8x128xf32>
    %cst_95 = arith.constant 1.000000e+00 : f32
    %213 = vector.broadcast %cst_95 : f32 to vector<8x128xf32>
    %214 = arith.addf %213, %212 : vector<8x128xf32>
    %215 = arith.divf %213, %214 : vector<8x128xf32>
    %c0_96 = arith.constant 0 : index
    %c0_97 = arith.constant 0 : index
    %216 = vector.load %arg5[%c0_96, %c0_97] : memref<8x128xf32, #tpu.memory_space<vmem>>, vector<8x128xf32>
    %217 = arith.mulf %207, %216 : vector<8x128xf32>
    %218 = arith.mulf %201, %209 : vector<8x128xf32>
    %219 = arith.addf %217, %218 : vector<8x128xf32>
    %220 = math.tanh %219 : vector<8x128xf32>
    %221 = arith.mulf %215, %220 : vector<8x128xf32>
    %c0_98 = arith.constant 0 : index
    %c0_99 = arith.constant 0 : index
    %222 = vector.load %arg5[%c0_98, %c0_99] : memref<8x128xf32, #tpu.memory_space<vmem>>, vector<8x128xf32>
    tpu.vector_store %arg5[%c0_98, %c0_99], %219 {strides = array<i32>} : memref<8x128xf32, #tpu.memory_space<vmem>>, vector<8x128xf32>,
    %c0_100 = arith.constant 0 : index
    %c0_101 = arith.constant 0 : index
    %223 = vector.load %arg4[%c0_100, %c0_101] : memref<8x128xf32, #tpu.memory_space<vmem>>, vector<8x128xf32>
    tpu.vector_store %arg4[%c0_100, %c0_101], %221 {strides = array<i32>} : memref<8x128xf32, #tpu.memory_space<vmem>>, vector<8x128xf32>,
    %224 = arith.index_cast %192 : i32 to index
    %c0_102 = arith.constant 0 : index
    %c0_103 = arith.constant 0 : index
    %225 = vector.load %arg3[%224, %c0_102, %c0_103] : memref<8x8x128xf32, #tpu.memory_space<vmem>>, vector<1x8x128xf32>
    %226 = vector.shape_cast %225 : vector<1x8x128xf32> to vector<8x128xf32>
    %227 = vector.shape_cast %221 : vector<8x128xf32> to vector<1x8x128xf32>
    tpu.vector_store %arg3[%224, %c0_102, %c0_103], %227 {strides = array<i32>} : memref<8x8x128xf32, #tpu.memory_space<vmem>>, vector<1x8x128xf32>,
    %c6_i32 = arith.constant 6 : i32
    %c1_i32_104 = arith.constant 1 : i32
    %228 = arith.muli %c6_i32, %c1_i32_104 : i32
    %c0_i32_105 = arith.constant 0 : i32
    %229 = arith.addi %c0_i32_105, %228 : i32
    %c0_106 = arith.constant 0 : index
    %c0_107 = arith.constant 0 : index
    %230 = vector.load %arg4[%c0_106, %c0_107] : memref<8x128xf32, #tpu.memory_space<vmem>>, vector<8x128xf32>
    %cst_108 = arith.constant dense<0.000000e+00> : vector<8x512xf32>
    %231 = tpu.matmul %230, %4, %cst_108 {dimension_numbers = #tpu.dot_dimension_numbers<[1], [0], [0], [1], [0, 0, 1, 1], [], []>} : vector<8x128xf32>, vector<128x512xf32>, vector<8x512xf32> -> vector<8x512xf32>
    %232 = arith.addf %5, %231 : vector<8x512xf32>
    %233 = vector.extract_strided_slice %232 {offsets = [0, 0], sizes = [8, 128], strides = [1, 1]} : vector<8x512xf32> to vector<8x128xf32>
    %234 = arith.negf %233 : vector<8x128xf32>
    %235 = math.exp %234 : vector<8x128xf32>
    %cst_109 = arith.constant 1.000000e+00 : f32
    %236 = vector.broadcast %cst_109 : f32 to vector<8x128xf32>
    %237 = arith.addf %236, %235 : vector<8x128xf32>
    %238 = arith.divf %236, %237 : vector<8x128xf32>
    %239 = vector.extract_strided_slice %232 {offsets = [0, 128], sizes = [8, 128], strides = [1, 1]} : vector<8x512xf32> to vector<8x128xf32>
    %240 = arith.negf %239 : vector<8x128xf32>
    %241 = math.exp %240 : vector<8x128xf32>
    %cst_110 = arith.constant 1.000000e+00 : f32
    %242 = vector.broadcast %cst_110 : f32 to vector<8x128xf32>
    %243 = arith.addf %242, %241 : vector<8x128xf32>
    %244 = arith.divf %242, %243 : vector<8x128xf32>
    %245 = vector.extract_strided_slice %232 {offsets = [0, 256], sizes = [8, 128], strides = [1, 1]} : vector<8x512xf32> to vector<8x128xf32>
    %246 = math.tanh %245 : vector<8x128xf32>
    %247 = vector.extract_strided_slice %232 {offsets = [0, 384], sizes = [8, 128], strides = [1, 1]} : vector<8x512xf32> to vector<8x128xf32>
    %248 = arith.negf %247 : vector<8x128xf32>
    %249 = math.exp %248 : vector<8x128xf32>
    %cst_111 = arith.constant 1.000000e+00 : f32
    %250 = vector.broadcast %cst_111 : f32 to vector<8x128xf32>
    %251 = arith.addf %250, %249 : vector<8x128xf32>
    %252 = arith.divf %250, %251 : vector<8x128xf32>
    %c0_112 = arith.constant 0 : index
    %c0_113 = arith.constant 0 : index
    %253 = vector.load %arg5[%c0_112, %c0_113] : memref<8x128xf32, #tpu.memory_space<vmem>>, vector<8x128xf32>
    %254 = arith.mulf %244, %253 : vector<8x128xf32>
    %255 = arith.mulf %238, %246 : vector<8x128xf32>
    %256 = arith.addf %254, %255 : vector<8x128xf32>
    %257 = math.tanh %256 : vector<8x128xf32>
    %258 = arith.mulf %252, %257 : vector<8x128xf32>
    %c0_114 = arith.constant 0 : index
    %c0_115 = arith.constant 0 : index
    %259 = vector.load %arg5[%c0_114, %c0_115] : memref<8x128xf32, #tpu.memory_space<vmem>>, vector<8x128xf32>
    tpu.vector_store %arg5[%c0_114, %c0_115], %256 {strides = array<i32>} : memref<8x128xf32, #tpu.memory_space<vmem>>, vector<8x128xf32>,
    %c0_116 = arith.constant 0 : index
    %c0_117 = arith.constant 0 : index
    %260 = vector.load %arg4[%c0_116, %c0_117] : memref<8x128xf32, #tpu.memory_space<vmem>>, vector<8x128xf32>
    tpu.vector_store %arg4[%c0_116, %c0_117], %258 {strides = array<i32>} : memref<8x128xf32, #tpu.memory_space<vmem>>, vector<8x128xf32>,
    %261 = arith.index_cast %229 : i32 to index
    %c0_118 = arith.constant 0 : index
    %c0_119 = arith.constant 0 : index
    %262 = vector.load %arg3[%261, %c0_118, %c0_119] : memref<8x8x128xf32, #tpu.memory_space<vmem>>, vector<1x8x128xf32>
    %263 = vector.shape_cast %262 : vector<1x8x128xf32> to vector<8x128xf32>
    %264 = vector.shape_cast %258 : vector<8x128xf32> to vector<1x8x128xf32>
    tpu.vector_store %arg3[%261, %c0_118, %c0_119], %264 {strides = array<i32>} : memref<8x8x128xf32, #tpu.memory_space<vmem>>, vector<1x8x128xf32>,
    %c7_i32 = arith.constant 7 : i32
    %c1_i32_120 = arith.constant 1 : i32
    %265 = arith.muli %c7_i32, %c1_i32_120 : i32
    %c0_i32_121 = arith.constant 0 : i32
    %266 = arith.addi %c0_i32_121, %265 : i32
    %c0_122 = arith.constant 0 : index
    %c0_123 = arith.constant 0 : index
    %267 = vector.load %arg4[%c0_122, %c0_123] : memref<8x128xf32, #tpu.memory_space<vmem>>, vector<8x128xf32>
    %cst_124 = arith.constant dense<0.000000e+00> : vector<8x512xf32>
    %268 = tpu.matmul %267, %4, %cst_124 {dimension_numbers = #tpu.dot_dimension_numbers<[1], [0], [0], [1], [0, 0, 1, 1], [], []>} : vector<8x128xf32>, vector<128x512xf32>, vector<8x512xf32> -> vector<8x512xf32>
    %269 = arith.addf %5, %268 : vector<8x512xf32>
    %270 = vector.extract_strided_slice %269 {offsets = [0, 0], sizes = [8, 128], strides = [1, 1]} : vector<8x512xf32> to vector<8x128xf32>
    %271 = arith.negf %270 : vector<8x128xf32>
    %272 = math.exp %271 : vector<8x128xf32>
    %cst_125 = arith.constant 1.000000e+00 : f32
    %273 = vector.broadcast %cst_125 : f32 to vector<8x128xf32>
    %274 = arith.addf %273, %272 : vector<8x128xf32>
    %275 = arith.divf %273, %274 : vector<8x128xf32>
    %276 = vector.extract_strided_slice %269 {offsets = [0, 128], sizes = [8, 128], strides = [1, 1]} : vector<8x512xf32> to vector<8x128xf32>
    %277 = arith.negf %276 : vector<8x128xf32>
    %278 = math.exp %277 : vector<8x128xf32>
    %cst_126 = arith.constant 1.000000e+00 : f32
    %279 = vector.broadcast %cst_126 : f32 to vector<8x128xf32>
    %280 = arith.addf %279, %278 : vector<8x128xf32>
    %281 = arith.divf %279, %280 : vector<8x128xf32>
    %282 = vector.extract_strided_slice %269 {offsets = [0, 256], sizes = [8, 128], strides = [1, 1]} : vector<8x512xf32> to vector<8x128xf32>
    %283 = math.tanh %282 : vector<8x128xf32>
    %284 = vector.extract_strided_slice %269 {offsets = [0, 384], sizes = [8, 128], strides = [1, 1]} : vector<8x512xf32> to vector<8x128xf32>
    %285 = arith.negf %284 : vector<8x128xf32>
    %286 = math.exp %285 : vector<8x128xf32>
    %cst_127 = arith.constant 1.000000e+00 : f32
    %287 = vector.broadcast %cst_127 : f32 to vector<8x128xf32>
    %288 = arith.addf %287, %286 : vector<8x128xf32>
    %289 = arith.divf %287, %288 : vector<8x128xf32>
    %c0_128 = arith.constant 0 : index
    %c0_129 = arith.constant 0 : index
    %290 = vector.load %arg5[%c0_128, %c0_129] : memref<8x128xf32, #tpu.memory_space<vmem>>, vector<8x128xf32>
    %291 = arith.mulf %281, %290 : vector<8x128xf32>
    %292 = arith.mulf %275, %283 : vector<8x128xf32>
    %293 = arith.addf %291, %292 : vector<8x128xf32>
    %294 = math.tanh %293 : vector<8x128xf32>
    %295 = arith.mulf %289, %294 : vector<8x128xf32>
    %c0_130 = arith.constant 0 : index
    %c0_131 = arith.constant 0 : index
    %296 = vector.load %arg5[%c0_130, %c0_131] : memref<8x128xf32, #tpu.memory_space<vmem>>, vector<8x128xf32>
    tpu.vector_store %arg5[%c0_130, %c0_131], %293 {strides = array<i32>} : memref<8x128xf32, #tpu.memory_space<vmem>>, vector<8x128xf32>,
    %c0_132 = arith.constant 0 : index
    %c0_133 = arith.constant 0 : index
    %297 = vector.load %arg4[%c0_132, %c0_133] : memref<8x128xf32, #tpu.memory_space<vmem>>, vector<8x128xf32>
    tpu.vector_store %arg4[%c0_132, %c0_133], %295 {strides = array<i32>} : memref<8x128xf32, #tpu.memory_space<vmem>>, vector<8x128xf32>,
    %298 = arith.index_cast %266 : i32 to index
    %c0_134 = arith.constant 0 : index
    %c0_135 = arith.constant 0 : index
    %299 = vector.load %arg3[%298, %c0_134, %c0_135] : memref<8x8x128xf32, #tpu.memory_space<vmem>>, vector<1x8x128xf32>
    %300 = vector.shape_cast %299 : vector<1x8x128xf32> to vector<8x128xf32>
    %301 = vector.shape_cast %295 : vector<8x128xf32> to vector<1x8x128xf32>
    tpu.vector_store %arg3[%298, %c0_134, %c0_135], %301 {strides = array<i32>} : memref<8x8x128xf32, #tpu.memory_space<vmem>>, vector<1x8x128xf32>,
    %c8_i32 = arith.constant 8 : i32
    return
  }
  func.func @transform_0(%arg0: i32) -> (i32, i32) {
    %c0_i32 = arith.constant 0 : i32
    %c0_i32_0 = arith.constant 0 : i32
    %c0_i32_1 = arith.constant 0 : i32
    return %c0_i32, %c0_i32_0 : i32, i32
  }
  func.func @transform_1(%arg0: i32) -> (i32, i32) {
    %c0_i32 = arith.constant 0 : i32
    %c0_i32_0 = arith.constant 0 : i32
    %c0_i32_1 = arith.constant 0 : i32
    return %c0_i32, %c0_i32_0 : i32, i32
  }
  func.func @transform_2(%arg0: i32) -> (i32, i32, i32) {
    %c0_i32 = arith.constant 0 : i32
    %c0_i32_0 = arith.constant 0 : i32
    %c0_i32_1 = arith.constant 0 : i32
    %c0_i32_2 = arith.constant 0 : i32
    return %c0_i32, %c0_i32_0, %c0_i32_1 : i32, i32, i32
  }
}

</mosaic_0001>

<bundles_post_ra>
// kernel: autoencoder_rnn_forward.2
= control target key start
LH: loop header
LB: loop body
LE: loop exit
PB: predicated region body
PF: predicated region fallthrough
CT: control target
= control target key end

     0   :  { %v2227_v3 = vmov 0.0   ;;  %s2917_s1 = inlined_call_operand.vmem [shape: f32[128,512], index: 1, kind: input, shape index: {}]   ;;  %s2918_s0 = inlined_call_operand.vmem [shape: f32[8,8,512], index: 0, kind: input, shape index: {}]   ;;  %s2919_s2 = inlined_call_operand.vmem [shape: f32[8,8,128], index: 2, kind: output, shape index: {}]  }
   0x1   :  { %v14_v0 = vld [vmem:[%s2917_s1 + $0x8] sm:$0xff]  ;;  %v13_v2 = vld [vmem:[%s2917_s1] sm:$0xff]  ;;  %146 = vmatprep.mubr.f32.mxu0 %v2227_v3  ;;  %217 = vmatprep.mubr.f32.mxu1 %v2227_v3  ;;  %v16_v19 = vld [vmem:[%s2917_s1 + $0x18] sm:$0xff] }
   0x2   :  { %v18_v1 = vld [vmem:[%s2917_s1 + $0x28] sm:$0xff]  ;;  %v17_v5 = vld [vmem:[%s2917_s1 + $0x20] sm:$0xff]  ;;  %v20_v20 = vld [vmem:[%s2917_s1 + $0x38] sm:$0xff] }
   0x3   :  { %v2254_v4 = vpack.c.bf16 %v18_v1, %v14_v0  ;;  %v22_v6 = vld [vmem:[%s2917_s1 + $0x48] sm:$0xff]  ;;  %v2265_v8 = vpack.c.bf16 %v17_v5, %v13_v2  ;;  %v21_v10 = vld [vmem:[%s2917_s1 + $0x40] sm:$0xff]  ;;  %v2306_v22 = vpack.c.bf16 %v20_v20, %v16_v19  ;;  %v15_v23 = vld [vmem:[%s2917_s1 + $0x10] sm:$0xff] }
   0x4   :  { %v26_v7 = vld [vmem:[%s2917_s1 + $0x68] sm:$0xff]  ;;  %v25_v11 = vld [vmem:[%s2917_s1 + $0x60] sm:$0xff]  ;;  %v19_v24 = vld [vmem:[%s2917_s1 + $0x30] sm:$0xff] }
   0x5   :  { %v2267_v9 = vpack.c.bf16 %v26_v7, %v22_v6  ;;  %v30_v12 = vld [vmem:[%s2917_s1 + $0x88] sm:$0xff]  ;;  %1587 = vmatprep.subr.bf16.mxu0 %v2254_v4  ;;  %v2283_v14 = vpack.c.bf16 %v25_v11, %v21_v10  ;;  %v29_v15 = vld [vmem:[%s2917_s1 + $0x80] sm:$0xff]  ;;  %v2314_v25 = vpack.c.bf16 %v19_v24, %v15_v23  ;;  %1619 = vmatprep.subr.bf16.mxu1 %v2306_v22  ;;  %v24_v27 = vld [vmem:[%s2917_s1 + $0x58] sm:$0xff] }
   0x6   :  { %v34_v13 = vld [vmem:[%s2917_s1 + $0xa8] sm:$0xff]  ;;  %1589 = vmatpush1.bf16.msra.mxu0 %v2265_v8  ;;  %v33_v16 = vld [vmem:[%s2917_s1 + $0xa0] sm:$0xff]  ;;  %v28_v28 = vld [vmem:[%s2917_s1 + $0x78] sm:$0xff] }
   0x7   :  { %1591 = vmatprep.subr.bf16.mxu0 %v2267_v9  ;;  %v2292_v17 = vpack.c.bf16 %v34_v13, %v30_v12  ;;  %v38_v18 = vld [vmem:[%s2917_s1 + $0xc8] sm:$0xff]  ;;  %v2317_v26 = vpack.c.bf16 %v33_v16, %v29_v15  ;;  %v23_v29 = vld [vmem:[%s2917_s1 + $0x50] sm:$0xff]  ;;  %v37_v31 = vld [vmem:[%s2917_s1 + $0xc0] sm:$0xff]  ;;  %1621 = vmatpush1.bf16.msra.mxu1 %v2314_v25  ;;  %v2339_v33 = vpack.c.bf16 %v28_v28, %v24_v27 }
   0x8   :  { %v42_v21 = vld [vmem:[%s2917_s1 + $0xe8] sm:$0xff]  ;;  %v41_v32 = vld [vmem:[%s2917_s1 + $0xe0] sm:$0xff]  ;;  %v27_v34 = vld [vmem:[%s2917_s1 + $0x70] sm:$0xff] }
   0x9   :  { %v2330_v30 = vpack.c.bf16 %v42_v21, %v38_v18  ;;  %v46_v35 = vld [vmem:[%s2917_s1 + $0x108] sm:$0xff]  ;;  %v2350_v37 = vpack.c.bf16 %v27_v34, %v23_v29  ;;  %v32_v38 = vld [vmem:[%s2917_s1 + $0x98] sm:$0xff]  ;;  %1623 = vmatprep.subr.bf16.mxu1 %v2339_v33  ;;  %v31_v40 = vld [vmem:[%s2917_s1 + $0x90] sm:$0xff]  ;;  %v2366_v42 = vpack.c.bf16 %v41_v32, %v37_v31 }
   0xa   :  { %1593 = vmatpush1.bf16.msra.mxu0 %v2283_v14  ;;  %v50_v36 = vld [vmem:[%s2917_s1 + $0x128] sm:$0xff]  ;;  %v36_v39 = vld [vmem:[%s2917_s1 + $0xb8] sm:$0xff]  ;;  %v35_v41 = vld [vmem:[%s2917_s1 + $0xb0] sm:$0xff] }
   0xb   :  { %1595 = vmatprep.subr.bf16.mxu0 %v2292_v17  ;;  %v45_v43 = vld [vmem:[%s2917_s1 + $0x100] sm:$0xff]  ;;  %v2374_v45 = vpack.c.bf16 %v36_v39, %v32_v38  ;;  %v2377_v46 = vpack.c.bf16 %v50_v36, %v46_v35  ;;  %1625 = vmatpush1.bf16.msra.mxu1 %v2350_v37  ;;  %v54_v47 = vld [vmem:[%s2917_s1 + $0x148] sm:$0xff]  ;;  %v2383_v48 = vpack.c.bf16 %v35_v41, %v31_v40  ;;  %v40_v49 = vld [vmem:[%s2917_s1 + $0xd8] sm:$0xff] }
   0xc   :  { %v49_v44 = vld [vmem:[%s2917_s1 + $0x120] sm:$0xff]  ;;  %v44_v50 = vld [vmem:[%s2917_s1 + $0xf8] sm:$0xff]  ;;  %v58_v51 = vld [vmem:[%s2917_s1 + $0x168] sm:$0xff] }
   0xd   :  { %1627 = vmatprep.subr.bf16.mxu1 %v2374_v45  ;;  %v2395_v52 = vpack.c.bf16 %v44_v50, %v40_v49  ;;  %v39_v53 = vld [vmem:[%s2917_s1 + $0xd0] sm:$0xff]  ;;  %v2404_v55 = vpack.c.bf16 %v49_v44, %v45_v43  ;;  %v48_v56 = vld [vmem:[%s2917_s1 + $0x118] sm:$0xff]  ;;  %v2413_v58 = vpack.c.bf16 %v58_v51, %v54_v47  ;;  %v53_v59 = vld [vmem:[%s2917_s1 + $0x140] sm:$0xff] }
   0xe   :  { %1597 = vmatpush1.bf16.msra.mxu0 %v2317_v26  ;;  %v43_v54 = vld [vmem:[%s2917_s1 + $0xf0] sm:$0xff]  ;;  %v52_v57 = vld [vmem:[%s2917_s1 + $0x138] sm:$0xff]  ;;  %v57_v60 = vld [vmem:[%s2917_s1 + $0x160] sm:$0xff] }
   0xf   :  { %1599 = vmatprep.subr.bf16.mxu0 %v2330_v30  ;;  %1629 = vmatpush1.bf16.msra.mxu1 %v2383_v48  ;;  %v62_v61 = vld [vmem:[%s2917_s1 + $0x188] sm:$0xff]  ;;  %v2425_v62 = vpack.c.bf16 %v43_v54, %v39_v53  ;;  %v2431_v0 = vpack.c.bf16 %v52_v57, %v48_v56  ;;  %v47_v1 = vld [vmem:[%s2917_s1 + $0x110] sm:$0xff]  ;;  %v56_v5 = vld [vmem:[%s2917_s1 + $0x158] sm:$0xff]  ;;  %v2446_v7 = vpack.c.bf16 %v57_v60, %v53_v59 }
  0x10   :  { %v66_v63 = vld [vmem:[%s2917_s1 + $0x1a8] sm:$0xff]  ;;  %1631 = vmatprep.subr.bf16.mxu1 %v2395_v52  ;;  %v51_v2 = vld [vmem:[%s2917_s1 + $0x130] sm:$0xff]  ;;  %v60_v6 = vld [vmem:[%s2917_s1 + $0x178] sm:$0xff] }
  0x11   :  { %v2449_v10 = vpack.c.bf16 %v66_v63, %v62_v61  ;;  %v61_v11 = vld [vmem:[%s2917_s1 + $0x180] sm:$0xff]  ;;  %v70_v13 = vld [vmem:[%s2917_s1 + $0x1c8] sm:$0xff]  ;;  %v2461_v15 = vpack.c.bf16 %v51_v2, %v47_v1  ;;  %v2467_v18 = vpack.c.bf16 %v60_v6, %v56_v5  ;;  %v55_v19 = vld [vmem:[%s2917_s1 + $0x150] sm:$0xff] }
  0x12   :  { %1601 = vmatpush1.bf16.msra.mxu0 %v2366_v42  ;;  %v65_v12 = vld [vmem:[%s2917_s1 + $0x1a0] sm:$0xff]  ;;  %v74_v16 = vld [vmem:[%s2917_s1 + $0x1e8] sm:$0xff]  ;;  %v59_v20 = vld [vmem:[%s2917_s1 + $0x170] sm:$0xff] }
  0x13   :  { %1603 = vmatprep.subr.bf16.mxu0 %v2377_v46  ;;  %1633 = vmatpush1.bf16.msra.mxu1 %v2425_v62  ;;  %v64_v21 = vld [vmem:[%s2917_s1 + $0x198] sm:$0xff]  ;;  %v2482_v24 = vpack.c.bf16 %v65_v12, %v61_v11  ;;  %v2485_v27 = vpack.c.bf16 %v74_v16, %v70_v13  ;;  %v69_v28 = vld [vmem:[%s2917_s1 + $0x1c0] sm:$0xff]  ;;  %v2494_v31 = vpack.c.bf16 %v59_v20, %v55_v19  ;;  %v63_v34 = vld [vmem:[%s2917_s1 + $0x190] sm:$0xff] }
  0x14   :  { %1635 = vmatprep.subr.bf16.mxu1 %v2431_v0  ;;  %v68_v23 = vld [vmem:[%s2917_s1 + $0x1b8] sm:$0xff]  ;;  %v73_v29 = vld [vmem:[%s2917_s1 + $0x1e0] sm:$0xff]  ;;  %v67_v35 = vld [vmem:[%s2917_s1 + $0x1b0] sm:$0xff] }
  0x15   :  { %v2497_v32 = vpack.c.bf16 %v68_v23, %v64_v21  ;;  %v72_v36 = vld [vmem:[%s2917_s1 + $0x1d8] sm:$0xff]  ;;  %v2512_v39 = vpack.c.bf16 %v73_v29, %v69_v28  ;;  %v2516_v40 = vpack.c.bf16 %v67_v35, %v63_v34  ;;  %v71_v43 = vld [vmem:[%s2917_s1 + $0x1d0] sm:$0xff]  ;;  %v77_v49 = vld [vmem:[%s2918_s0] sm:$0xff] }
  0x16   :  { %1605 = vmatpush1.bf16.msra.mxu0 %v2404_v55  ;;  %v76_v38 = vld [vmem:[%s2917_s1 + $0x1f8] sm:$0xff]  ;;  %v75_v44 = vld [vmem:[%s2917_s1 + $0x1f0] sm:$0xff]  ;;  %v78_v50 = vld [vmem:[%s2918_s0 + $0x8] sm:$0xff] }
  0x17   :  { %1607 = vmatprep.subr.bf16.mxu0 %v2413_v58  ;;  %1637 = vmatpush1.bf16.msra.mxu1 %v2461_v15  ;;  %v2519_v41 = vpack.c.bf16 %v76_v38, %v72_v36  ;;  %v2529_v47 = vpack.c.bf16 %v75_v44, %v71_v43  ;;  %v80_v60 = vld [vmem:[%s2918_s0 + $0x18] sm:$0xff]  ;;  %v79_v2 = vld [vmem:[%s2918_s0 + $0x10] sm:$0xff]  ;;  %v1530_v44 = vld [vmem:[%s2918_s0 + $0x20] sm:$0xff] }
  0x18   :  { %1639 = vmatprep.subr.bf16.mxu1 %v2467_v18 }
  0x1a   :  { %1609 = vmatpush1.bf16.msra.mxu0 %v2446_v7 }
  0x1b   :  { %1611 = vmatprep.subr.bf16.mxu0 %v2449_v10  ;;  %1641 = vmatpush1.bf16.msra.mxu1 %v2494_v31 }
  0x1c   :  { %1643 = vmatprep.subr.bf16.mxu1 %v2497_v32 }
  0x1e   :  { %1613 = vmatpush1.bf16.msra.mxu0 %v2482_v24 }
  0x1f   :  { %1615 = vmatprep.subr.bf16.mxu0 %v2485_v27  ;;  %1645 = vmatpush1.bf16.msra.mxu1 %v2516_v40 }
  0x20   :  { %1647 = vmatprep.subr.bf16.mxu1 %v2519_v41 }
  0x22   :  { %1617 = vmatpush1.bf16.msra.mxu0 %v2512_v39 }
  0x23   :  { %1651 = vmatprep.subr.bf16.mxu0 %v2254_v4  ;;  %1649 = vmatpush1.bf16.msra.mxu1 %v2529_v47 }
  0x24   :  { %1683 = vmatprep.subr.bf16.mxu1 %v2306_v22 }
  0x25   :  { %147 = vmatmul.mubr.f32.vlgmr.msra.gmra.mrb[0].mxu0 %v2227_v3 }
  0x26   :  { %1653 = vmatpush1.bf16.msra.mxu0 %v2265_v8  ;;  %326 = vmatprep.mubr.f32.mxu0 %v2227_v3 }
  0x27   :  { %1655 = vmatprep.subr.bf16.mxu0 %v2267_v9  ;;  %218 = vmatmul.mubr.f32.vlgmr.msra.gmra.mrb[0].mxu1 %v2227_v3 }
  0x28   :  { %1685 = vmatpush1.bf16.msra.mxu1 %v2314_v25  ;;  %397 = vmatprep.mubr.f32.mxu1 %v2227_v3 }
  0x29   :  { %1687 = vmatprep.subr.bf16.mxu1 %v2339_v33 }
  0x2a   :  { %1657 = vmatpush1.bf16.msra.mxu0 %v2283_v14 }
  0x2b   :  { %1659 = vmatprep.subr.bf16.mxu0 %v2292_v17 }
  0x2c   :  { %1689 = vmatpush1.bf16.msra.mxu1 %v2350_v37 }
  0x2d   :  { %1691 = vmatprep.subr.bf16.mxu1 %v2374_v45 }
  0x2e   :  { %1661 = vmatpush1.bf16.msra.mxu0 %v2317_v26 }
  0x2f   :  { %1663 = vmatprep.subr.bf16.mxu0 %v2330_v30 }
  0x30   :  { %1693 = vmatpush1.bf16.msra.mxu1 %v2383_v48 }
  0x31   :  { %1695 = vmatprep.subr.bf16.mxu1 %v2395_v52 }
  0x32   :  { %1665 = vmatpush1.bf16.msra.mxu0 %v2366_v42 }
  0x33   :  { %1667 = vmatprep.subr.bf16.mxu0 %v2377_v46 }
  0x34   :  { %1697 = vmatpush1.bf16.msra.mxu1 %v2425_v62 }
  0x35   :  { %1699 = vmatprep.subr.bf16.mxu1 %v2431_v0 }
  0x36   :  { %1669 = vmatpush1.bf16.msra.mxu0 %v2404_v55 }
  0x37   :  { %1671 = vmatprep.subr.bf16.mxu0 %v2413_v58 }
  0x38   :  { %1701 = vmatpush1.bf16.msra.mxu1 %v2461_v15 }
  0x39   :  { %1703 = vmatprep.subr.bf16.mxu1 %v2467_v18 }
  0x3a   :  { %1673 = vmatpush1.bf16.msra.mxu0 %v2446_v7 }
  0x3b   :  { %1675 = vmatprep.subr.bf16.mxu0 %v2449_v10 }
  0x3c   :  { %1705 = vmatpush1.bf16.msra.mxu1 %v2494_v31 }
  0x3d   :  { %1707 = vmatprep.subr.bf16.mxu1 %v2497_v32 }
  0x3e   :  { %1677 = vmatpush1.bf16.msra.mxu0 %v2482_v24 }
  0x3f   :  { %1679 = vmatprep.subr.bf16.mxu0 %v2485_v27 }
  0x40   :  { %1709 = vmatpush1.bf16.msra.mxu1 %v2516_v40 }
  0x41   :  { %1711 = vmatprep.subr.bf16.mxu1 %v2519_v41 }
  0x42   :  { %1681 = vmatpush1.bf16.msra.mxu0 %v2512_v39 }
  0x43   :  { %1715 = vmatprep.subr.bf16.mxu0 %v2254_v4 }
  0x44   :  { %1713 = vmatpush1.bf16.msra.mxu1 %v2529_v47 }
  0x45   :  { %1747 = vmatprep.subr.bf16.mxu1 %v2306_v22 }
  0xf8   :  { %v148_v51 = vpop.f32.mrb[0].mxu0 }
  0xf9   :  { %v224_v53 = vadd.f32 %v148_v51, %v77_v49  ;;  %v150_v54 = vpop.f32.mrb[1].mxu0  ;;  %v1531_v49 = vld [vmem:[%s2918_s0 + $0x28] sm:$0xff] }
  0xfa   :  { %v225_v56 = vadd.f32 %v150_v54, %v78_v50  ;;  %v219_v61 = vpop.f32.mrb[0].mxu1 }
  0xfb   :  { %v1527_v57 = vmul.f32 -1.442695, %v224_v53  ;;  %v221_v63 = vpop.f32.mrb[1].mxu1  ;;  %v226_v6 = vadd.f32 %v219_v61, %v79_v2  ;;  %v1533_v61 = vld [vmem:[%s2918_s0 + $0x38] sm:$0xff] }
  0xfc   :  { %v1528_v59 = vmul.f32 -1.442695, %v225_v56  ;;  %v227_v1 = vadd.f32 %v221_v63, %v80_v60 }
  0xfd   :  { %2099 = vpow2.f32 %v1527_v57 }
  0xfe   :  { %2101 = vpow2.f32 %v1528_v59  ;;  %v1529_v5 = vmul.f32 -1.442695, %v227_v1  ;;  %v1532_v1 = vld [vmem:[%s2918_s0 + $0x30] sm:$0xff] }
 0x100   :  { %2103 = vpow2.f32 %v1529_v5 }
 0x101   :  { %2105 = vtanh.f32 %v226_v6 }
 0x107   :  { %v2100_v11 = vpop.eup %2099 }
 0x108   :  { %v2102_v12 = vpop.eup %2101  ;;  %v231_v13 = vadd.f32 1.0, %v2100_v11 }
 0x109   :  { %v237_v16 = vadd.f32 1.0, %v2102_v12 }
 0x10a   :  { %2107 = vrcp.f32 %v231_v13  ;;  %v2104_v19 = vpop.eup %2103 }
 0x10b   :  { %2109 = vrcp.f32 %v237_v16  ;;  %v2106_v20 = vpop.eup %2105  ;;  %v244_v23 = vadd.f32 1.0, %v2104_v19 }
 0x10d   :  { %2111 = vrcp.f32 %v244_v23 }
 0x114   :  { %v2108_v21 = vpop.eup %2107 }
 0x115   :  { %v2110_v28 = vpop.eup %2109  ;;  %v249_v29 = vmul.f32 %v2108_v21, %v2106_v20 }
 0x116   :  { %v248_v34 = vmul.f32 0.0, %v2110_v28 }
 0x117   :  { %v2112_v36 = vpop.eup %2111 }
 0x118   :  { %v2583_v35 = vadd.f32 %v249_v29, %v248_v34 }
 0x11a   :  { %2113 = vtanh.f32 %v2583_v35 }
 0x124   :  { %v2114_v38 = vpop.eup %2113 }
 0x125   :  { %v252_v43 = vmul.f32 %v2114_v38, %v2112_v36 }
 0x127   :  { %255 = vst [vmem:[%s2919_s2] sm:$0xff] %v252_v43  ;;  %327 = vmatmul.mubr.f32.vlgmr.msra.gmra.mrb[2].mxu0 %v252_v43  ;;  %398 = vmatmul.mubr.f32.vlgmr.msra.gmra.mrb[2].mxu1 %v252_v43 }
 0x128   :  { %1717 = vmatpush1.bf16.msra.mxu0 %v2265_v8  ;;  %1749 = vmatpush1.bf16.msra.mxu1 %v2314_v25 }
 0x129   :  { %1719 = vmatprep.subr.bf16.mxu0 %v2267_v9  ;;  %1751 = vmatprep.subr.bf16.mxu1 %v2339_v33 }
 0x12a   :  { %507 = vmatprep.mubr.f32.mxu0 %v2227_v3  ;;  %578 = vmatprep.mubr.f32.mxu1 %v2227_v3 }
 0x12c   :  { %1721 = vmatpush1.bf16.msra.mxu0 %v2283_v14  ;;  %1753 = vmatpush1.bf16.msra.mxu1 %v2350_v37 }
 0x12d   :  { %1723 = vmatprep.subr.bf16.mxu0 %v2292_v17  ;;  %1755 = vmatprep.subr.bf16.mxu1 %v2374_v45 }
 0x130   :  { %1725 = vmatpush1.bf16.msra.mxu0 %v2317_v26  ;;  %1757 = vmatpush1.bf16.msra.mxu1 %v2383_v48 }
 0x131   :  { %1727 = vmatprep.subr.bf16.mxu0 %v2330_v30  ;;  %1759 = vmatprep.subr.bf16.mxu1 %v2395_v52 }
 0x134   :  { %1729 = vmatpush1.bf16.msra.mxu0 %v2366_v42  ;;  %1761 = vmatpush1.bf16.msra.mxu1 %v2425_v62 }
 0x135   :  { %1731 = vmatprep.subr.bf16.mxu0 %v2377_v46  ;;  %1763 = vmatprep.subr.bf16.mxu1 %v2431_v0 }
 0x138   :  { %1733 = vmatpush1.bf16.msra.mxu0 %v2404_v55  ;;  %1765 = vmatpush1.bf16.msra.mxu1 %v2461_v15 }
 0x139   :  { %1735 = vmatprep.subr.bf16.mxu0 %v2413_v58  ;;  %1767 = vmatprep.subr.bf16.mxu1 %v2467_v18 }
 0x13c   :  { %1737 = vmatpush1.bf16.msra.mxu0 %v2446_v7  ;;  %1769 = vmatpush1.bf16.msra.mxu1 %v2494_v31 }
 0x13d   :  { %1739 = vmatprep.subr.bf16.mxu0 %v2449_v10  ;;  %1771 = vmatprep.subr.bf16.mxu1 %v2497_v32 }
 0x140   :  { %1741 = vmatpush1.bf16.msra.mxu0 %v2482_v24  ;;  %1773 = vmatpush1.bf16.msra.mxu1 %v2516_v40 }
 0x141   :  { %1743 = vmatprep.subr.bf16.mxu0 %v2485_v27  ;;  %1775 = vmatprep.subr.bf16.mxu1 %v2519_v41 }
 0x144   :  { %1745 = vmatpush1.bf16.msra.mxu0 %v2512_v39  ;;  %1777 = vmatpush1.bf16.msra.mxu1 %v2529_v47 }
 0x145   :  { %1779 = vmatprep.subr.bf16.mxu0 %v2254_v4  ;;  %1811 = vmatprep.subr.bf16.mxu1 %v2306_v22 }
 0x1fa   :  { %v328_v50 = vpop.f32.mrb[2].mxu0  ;;  %v399_v51 = vpop.f32.mrb[2].mxu1 }
 0x1fb   :  { %v404_v53 = vadd.f32 %v1530_v44, %v328_v50  ;;  %v330_v54 = vpop.f32.mrb[3].mxu0  ;;  %v401_v56 = vpop.f32.mrb[3].mxu1  ;;  %v406_v5 = vadd.f32 %v1532_v1, %v399_v51  ;;  %v1539_v44 = vld [vmem:[%s2918_s0 + $0x48] sm:$0xff] }
 0x1fc   :  { %v405_v57 = vadd.f32 %v1531_v49, %v330_v54  ;;  %v407_v63 = vadd.f32 %v1533_v61, %v401_v56 }
 0x1fd   :  { %v1534_v59 = vmul.f32 -1.442695, %v404_v53 }
 0x1fe   :  { %v1535_v60 = vmul.f32 -1.442695, %v405_v57  ;;  %v1536_v2 = vmul.f32 -1.442695, %v407_v63  ;;  %v1540_v63 = vld [vmem:[%s2918_s0 + $0x50] sm:$0xff] }
 0x1ff   :  { %2115 = vpow2.f32 %v1534_v59 }
 0x200   :  { %2117 = vpow2.f32 %v1535_v60  ;;  %v1541_v60 = vld [vmem:[%s2918_s0 + $0x58] sm:$0xff] }
 0x201   :  { %2119 = vpow2.f32 %v1536_v2 }
 0x202   :  { %2121 = vtanh.f32 %v406_v5 }
 0x209   :  { %v2116_v6 = vpop.eup %2115 }
 0x20a   :  { %v2118_v11 = vpop.eup %2117  ;;  %v411_v12 = vadd.f32 1.0, %v2116_v6 }
 0x20b   :  { %v417_v13 = vadd.f32 1.0, %v2118_v11  ;;  %v2120_v16 = vpop.eup %2119 }
 0x20c   :  { %2123 = vrcp.f32 %v411_v12  ;;  %v2122_v19 = vpop.eup %2121  ;;  %v424_v28 = vadd.f32 1.0, %v2120_v16 }
 0x20d   :  { %2125 = vrcp.f32 %v417_v13 }
 0x20e   :  { %2127 = vrcp.f32 %v424_v28 }
 0x216   :  { %v2124_v20 = vpop.eup %2123 }
 0x217   :  { %v2126_v21 = vpop.eup %2125  ;;  %v429_v23 = vmul.f32 %v2124_v20, %v2122_v19 }
 0x218   :  { %v428_v29 = vmul.f32 %v2126_v21, %v2583_v35  ;;  %v2128_v36 = vpop.eup %2127  ;;  %v1538_v35 = vld [vmem:[%s2918_s0 + $0x40] sm:$0xff] }
 0x21a   :  { %v2636_v34 = vadd.f32 %v429_v23, %v428_v29 }
 0x21c   :  { %2129 = vtanh.f32 %v2636_v34 }
 0x226   :  { %v2130_v38 = vpop.eup %2129 }
 0x227   :  { %v432_v43 = vmul.f32 %v2130_v38, %v2128_v36 }
 0x229   :  { %1537 = vst [vmem:[%s2919_s2 + $0x8] sm:$0xff] %v432_v43  ;;  %508 = vmatmul.mubr.f32.vlgmr.msra.gmra.mrb[4].mxu0 %v432_v43  ;;  %579 = vmatmul.mubr.f32.vlgmr.msra.gmra.mrb[4].mxu1 %v432_v43 }
 0x22a   :  { %1781 = vmatpush1.bf16.msra.mxu0 %v2265_v8  ;;  %1813 = vmatpush1.bf16.msra.mxu1 %v2314_v25 }
 0x22b   :  { %1783 = vmatprep.subr.bf16.mxu0 %v2267_v9  ;;  %1815 = vmatprep.subr.bf16.mxu1 %v2339_v33 }
 0x22c   :  { %688 = vmatprep.mubr.f32.mxu0 %v2227_v3  ;;  %759 = vmatprep.mubr.f32.mxu1 %v2227_v3 }
 0x22e   :  { %1785 = vmatpush1.bf16.msra.mxu0 %v2283_v14  ;;  %1817 = vmatpush1.bf16.msra.mxu1 %v2350_v37 }
 0x22f   :  { %1787 = vmatprep.subr.bf16.mxu0 %v2292_v17  ;;  %1819 = vmatprep.subr.bf16.mxu1 %v2374_v45 }
 0x232   :  { %1789 = vmatpush1.bf16.msra.mxu0 %v2317_v26  ;;  %1821 = vmatpush1.bf16.msra.mxu1 %v2383_v48 }
 0x233   :  { %1791 = vmatprep.subr.bf16.mxu0 %v2330_v30  ;;  %1823 = vmatprep.subr.bf16.mxu1 %v2395_v52 }
 0x236   :  { %1793 = vmatpush1.bf16.msra.mxu0 %v2366_v42  ;;  %1825 = vmatpush1.bf16.msra.mxu1 %v2425_v62 }
 0x237   :  { %1795 = vmatprep.subr.bf16.mxu0 %v2377_v46  ;;  %1827 = vmatprep.subr.bf16.mxu1 %v2431_v0 }
 0x23a   :  { %1797 = vmatpush1.bf16.msra.mxu0 %v2404_v55  ;;  %1829 = vmatpush1.bf16.msra.mxu1 %v2461_v15 }
 0x23b   :  { %1799 = vmatprep.subr.bf16.mxu0 %v2413_v58  ;;  %1831 = vmatprep.subr.bf16.mxu1 %v2467_v18 }
 0x23e   :  { %1801 = vmatpush1.bf16.msra.mxu0 %v2446_v7  ;;  %1833 = vmatpush1.bf16.msra.mxu1 %v2494_v31 }
 0x23f   :  { %1803 = vmatprep.subr.bf16.mxu0 %v2449_v10  ;;  %1835 = vmatprep.subr.bf16.mxu1 %v2497_v32 }
 0x242   :  { %1805 = vmatpush1.bf16.msra.mxu0 %v2482_v24  ;;  %1837 = vmatpush1.bf16.msra.mxu1 %v2516_v40 }
 0x243   :  { %1807 = vmatprep.subr.bf16.mxu0 %v2485_v27  ;;  %1839 = vmatprep.subr.bf16.mxu1 %v2519_v41 }
 0x246   :  { %1809 = vmatpush1.bf16.msra.mxu0 %v2512_v39  ;;  %1841 = vmatpush1.bf16.msra.mxu1 %v2529_v47 }
 0x247   :  { %1843 = vmatprep.subr.bf16.mxu0 %v2254_v4  ;;  %1875 = vmatprep.subr.bf16.mxu1 %v2306_v22 }
 0x2fc   :  { %v509_v49 = vpop.f32.mrb[4].mxu0  ;;  %v580_v50 = vpop.f32.mrb[4].mxu1 }
 0x2fd   :  { %v585_v51 = vadd.f32 %v1538_v35, %v509_v49  ;;  %v511_v53 = vpop.f32.mrb[5].mxu0  ;;  %v582_v54 = vpop.f32.mrb[5].mxu1  ;;  %v587_v2 = vadd.f32 %v1540_v63, %v580_v50  ;;  %v1547_v35 = vld [vmem:[%s2918_s0 + $0x68] sm:$0xff] }
 0x2fe   :  { %v586_v56 = vadd.f32 %v1539_v44, %v511_v53  ;;  %v588_v61 = vadd.f32 %v1541_v60, %v582_v54 }
 0x2ff   :  { %v1542_v57 = vmul.f32 -1.442695, %v585_v51 }
 0x300   :  { %v1543_v59 = vmul.f32 -1.442695, %v586_v56  ;;  %v1544_v1 = vmul.f32 -1.442695, %v588_v61  ;;  %v1548_v61 = vld [vmem:[%s2918_s0 + $0x70] sm:$0xff] }
 0x301   :  { %2131 = vpow2.f32 %v1542_v57 }
 0x302   :  { %2133 = vpow2.f32 %v1543_v59  ;;  %v1549_v59 = vld [vmem:[%s2918_s0 + $0x78] sm:$0xff] }
 0x303   :  { %2135 = vpow2.f32 %v1544_v1 }
 0x304   :  { %2137 = vtanh.f32 %v587_v2 }
 0x30b   :  { %v2132_v5 = vpop.eup %2131 }
 0x30c   :  { %v2134_v6 = vpop.eup %2133  ;;  %v592_v11 = vadd.f32 1.0, %v2132_v5 }
 0x30d   :  { %v598_v12 = vadd.f32 1.0, %v2134_v6  ;;  %v2136_v13 = vpop.eup %2135 }
 0x30e   :  { %2139 = vrcp.f32 %v592_v11  ;;  %v2138_v16 = vpop.eup %2137  ;;  %v605_v23 = vadd.f32 1.0, %v2136_v13 }
 0x30f   :  { %2141 = vrcp.f32 %v598_v12 }
 0x310   :  { %2143 = vrcp.f32 %v605_v23 }
 0x318   :  { %v2140_v19 = vpop.eup %2139 }
 0x319   :  { %v2142_v20 = vpop.eup %2141  ;;  %v610_v21 = vmul.f32 %v2140_v19, %v2138_v16 }
 0x31a   :  { %v609_v28 = vmul.f32 %v2142_v20, %v2636_v34  ;;  %v2144_v36 = vpop.eup %2143  ;;  %v1546_v34 = vld [vmem:[%s2918_s0 + $0x60] sm:$0xff] }
 0x31c   :  { %v2689_v29 = vadd.f32 %v610_v21, %v609_v28 }
 0x31e   :  { %2145 = vtanh.f32 %v2689_v29 }
 0x328   :  { %v2146_v38 = vpop.eup %2145 }
 0x329   :  { %v613_v43 = vmul.f32 %v2146_v38, %v2144_v36 }
 0x32b   :  { %1545 = vst [vmem:[%s2919_s2 + $0x10] sm:$0xff] %v613_v43  ;;  %689 = vmatmul.mubr.f32.vlgmr.msra.gmra.mrb[6].mxu0 %v613_v43  ;;  %760 = vmatmul.mubr.f32.vlgmr.msra.gmra.mrb[6].mxu1 %v613_v43 }
 0x32c   :  { %1845 = vmatpush1.bf16.msra.mxu0 %v2265_v8  ;;  %1877 = vmatpush1.bf16.msra.mxu1 %v2314_v25 }
 0x32d   :  { %1847 = vmatprep.subr.bf16.mxu0 %v2267_v9  ;;  %1879 = vmatprep.subr.bf16.mxu1 %v2339_v33 }
 0x32e   :  { %869 = vmatprep.mubr.f32.mxu0 %v2227_v3  ;;  %940 = vmatprep.mubr.f32.mxu1 %v2227_v3 }
 0x330   :  { %1849 = vmatpush1.bf16.msra.mxu0 %v2283_v14  ;;  %1881 = vmatpush1.bf16.msra.mxu1 %v2350_v37 }
 0x331   :  { %1851 = vmatprep.subr.bf16.mxu0 %v2292_v17  ;;  %1883 = vmatprep.subr.bf16.mxu1 %v2374_v45 }
 0x334   :  { %1853 = vmatpush1.bf16.msra.mxu0 %v2317_v26  ;;  %1885 = vmatpush1.bf16.msra.mxu1 %v2383_v48 }
 0x335   :  { %1855 = vmatprep.subr.bf16.mxu0 %v2330_v30  ;;  %1887 = vmatprep.subr.bf16.mxu1 %v2395_v52 }
 0x338   :  { %1857 = vmatpush1.bf16.msra.mxu0 %v2366_v42  ;;  %1889 = vmatpush1.bf16.msra.mxu1 %v2425_v62 }
 0x339   :  { %1859 = vmatprep.subr.bf16.mxu0 %v2377_v46  ;;  %1891 = vmatprep.subr.bf16.mxu1 %v2431_v0 }
 0x33c   :  { %1861 = vmatpush1.bf16.msra.mxu0 %v2404_v55  ;;  %1893 = vmatpush1.bf16.msra.mxu1 %v2461_v15 }
 0x33d   :  { %1863 = vmatprep.subr.bf16.mxu0 %v2413_v58  ;;  %1895 = vmatprep.subr.bf16.mxu1 %v2467_v18 }
 0x340   :  { %1865 = vmatpush1.bf16.msra.mxu0 %v2446_v7  ;;  %1897 = vmatpush1.bf16.msra.mxu1 %v2494_v31 }
 0x341   :  { %1867 = vmatprep.subr.bf16.mxu0 %v2449_v10  ;;  %1899 = vmatprep.subr.bf16.mxu1 %v2497_v32 }
 0x344   :  { %1869 = vmatpush1.bf16.msra.mxu0 %v2482_v24  ;;  %1901 = vmatpush1.bf16.msra.mxu1 %v2516_v40 }
 0x345   :  { %1871 = vmatprep.subr.bf16.mxu0 %v2485_v27  ;;  %1903 = vmatprep.subr.bf16.mxu1 %v2519_v41 }
 0x348   :  { %1873 = vmatpush1.bf16.msra.mxu0 %v2512_v39  ;;  %1905 = vmatpush1.bf16.msra.mxu1 %v2529_v47 }
 0x349   :  { %1907 = vmatprep.subr.bf16.mxu0 %v2254_v4  ;;  %1939 = vmatprep.subr.bf16.mxu1 %v2306_v22 }
 0x3fe   :  { %v690_v44 = vpop.f32.mrb[6].mxu0  ;;  %v761_v49 = vpop.f32.mrb[6].mxu1 }
 0x3ff   :  { %v766_v50 = vadd.f32 %v1546_v34, %v690_v44  ;;  %v692_v51 = vpop.f32.mrb[7].mxu0  ;;  %v763_v53 = vpop.f32.mrb[7].mxu1  ;;  %v768_v1 = vadd.f32 %v1548_v61, %v761_v49  ;;  %v1555_v34 = vld [vmem:[%s2918_s0 + $0x88] sm:$0xff] }
 0x400   :  { %v767_v54 = vadd.f32 %v1547_v35, %v692_v51  ;;  %v769_v60 = vadd.f32 %v1549_v59, %v763_v53 }
 0x401   :  { %v1550_v56 = vmul.f32 -1.442695, %v766_v50 }
 0x402   :  { %v1551_v57 = vmul.f32 -1.442695, %v767_v54  ;;  %v1552_v63 = vmul.f32 -1.442695, %v769_v60  ;;  %v1556_v60 = vld [vmem:[%s2918_s0 + $0x90] sm:$0xff] }
 0x403   :  { %2147 = vpow2.f32 %v1550_v56 }
 0x404   :  { %2149 = vpow2.f32 %v1551_v57  ;;  %v1557_v57 = vld [vmem:[%s2918_s0 + $0x98] sm:$0xff] }
 0x405   :  { %2151 = vpow2.f32 %v1552_v63 }
 0x406   :  { %2153 = vtanh.f32 %v768_v1 }
 0x40d   :  { %v2148_v2 = vpop.eup %2147 }
 0x40e   :  { %v2150_v5 = vpop.eup %2149  ;;  %v773_v6 = vadd.f32 1.0, %v2148_v2 }
 0x40f   :  { %v779_v11 = vadd.f32 1.0, %v2150_v5  ;;  %v2152_v12 = vpop.eup %2151 }
 0x410   :  { %2155 = vrcp.f32 %v773_v6  ;;  %v2154_v13 = vpop.eup %2153  ;;  %v786_v21 = vadd.f32 1.0, %v2152_v12 }
 0x411   :  { %2157 = vrcp.f32 %v779_v11 }
 0x412   :  { %2159 = vrcp.f32 %v786_v21 }
 0x41a   :  { %v2156_v16 = vpop.eup %2155 }
 0x41b   :  { %v2158_v19 = vpop.eup %2157  ;;  %v791_v20 = vmul.f32 %v2156_v16, %v2154_v13 }
 0x41c   :  { %v790_v23 = vmul.f32 %v2158_v19, %v2689_v29  ;;  %v2160_v36 = vpop.eup %2159  ;;  %v1554_v29 = vld [vmem:[%s2918_s0 + $0x80] sm:$0xff] }
 0x41e   :  { %v2742_v28 = vadd.f32 %v791_v20, %v790_v23 }
 0x420   :  { %2161 = vtanh.f32 %v2742_v28 }
 0x42a   :  { %v2162_v38 = vpop.eup %2161 }
 0x42b   :  { %v794_v43 = vmul.f32 %v2162_v38, %v2160_v36 }
 0x42d   :  { %1553 = vst [vmem:[%s2919_s2 + $0x18] sm:$0xff] %v794_v43  ;;  %870 = vmatmul.mubr.f32.vlgmr.msra.gmra.mrb[8].mxu0 %v794_v43  ;;  %941 = vmatmul.mubr.f32.vlgmr.msra.gmra.mrb[8].mxu1 %v794_v43 }
 0x42e   :  { %1909 = vmatpush1.bf16.msra.mxu0 %v2265_v8  ;;  %1941 = vmatpush1.bf16.msra.mxu1 %v2314_v25 }
 0x42f   :  { %1911 = vmatprep.subr.bf16.mxu0 %v2267_v9  ;;  %1943 = vmatprep.subr.bf16.mxu1 %v2339_v33 }
 0x430   :  { %1050 = vmatprep.mubr.f32.mxu0 %v2227_v3  ;;  %1121 = vmatprep.mubr.f32.mxu1 %v2227_v3 }
 0x432   :  { %1913 = vmatpush1.bf16.msra.mxu0 %v2283_v14  ;;  %1945 = vmatpush1.bf16.msra.mxu1 %v2350_v37 }
 0x433   :  { %1915 = vmatprep.subr.bf16.mxu0 %v2292_v17  ;;  %1947 = vmatprep.subr.bf16.mxu1 %v2374_v45 }
 0x436   :  { %1917 = vmatpush1.bf16.msra.mxu0 %v2317_v26  ;;  %1949 = vmatpush1.bf16.msra.mxu1 %v2383_v48 }
 0x437   :  { %1919 = vmatprep.subr.bf16.mxu0 %v2330_v30  ;;  %1951 = vmatprep.subr.bf16.mxu1 %v2395_v52 }
 0x43a   :  { %1921 = vmatpush1.bf16.msra.mxu0 %v2366_v42  ;;  %1953 = vmatpush1.bf16.msra.mxu1 %v2425_v62 }
 0x43b   :  { %1923 = vmatprep.subr.bf16.mxu0 %v2377_v46  ;;  %1955 = vmatprep.subr.bf16.mxu1 %v2431_v0 }
 0x43e   :  { %1925 = vmatpush1.bf16.msra.mxu0 %v2404_v55  ;;  %1957 = vmatpush1.bf16.msra.mxu1 %v2461_v15 }
 0x43f   :  { %1927 = vmatprep.subr.bf16.mxu0 %v2413_v58  ;;  %1959 = vmatprep.subr.bf16.mxu1 %v2467_v18 }
 0x442   :  { %1929 = vmatpush1.bf16.msra.mxu0 %v2446_v7  ;;  %1961 = vmatpush1.bf16.msra.mxu1 %v2494_v31 }
 0x443   :  { %1931 = vmatprep.subr.bf16.mxu0 %v2449_v10  ;;  %1963 = vmatprep.subr.bf16.mxu1 %v2497_v32 }
 0x446   :  { %1933 = vmatpush1.bf16.msra.mxu0 %v2482_v24  ;;  %1965 = vmatpush1.bf16.msra.mxu1 %v2516_v40 }
 0x447   :  { %1935 = vmatprep.subr.bf16.mxu0 %v2485_v27  ;;  %1967 = vmatprep.subr.bf16.mxu1 %v2519_v41 }
 0x44a   :  { %1937 = vmatpush1.bf16.msra.mxu0 %v2512_v39  ;;  %1969 = vmatpush1.bf16.msra.mxu1 %v2529_v47 }
 0x44b   :  { %1971 = vmatprep.subr.bf16.mxu0 %v2254_v4  ;;  %2003 = vmatprep.subr.bf16.mxu1 %v2306_v22 }
 0x500   :  { %v871_v35 = vpop.f32.mrb[8].mxu0  ;;  %v942_v44 = vpop.f32.mrb[8].mxu1 }
 0x501   :  { %v947_v49 = vadd.f32 %v1554_v29, %v871_v35  ;;  %v873_v50 = vpop.f32.mrb[9].mxu0  ;;  %v944_v51 = vpop.f32.mrb[9].mxu1  ;;  %v949_v63 = vadd.f32 %v1556_v60, %v942_v44  ;;  %v1563_v29 = vld [vmem:[%s2918_s0 + $0xa8] sm:$0xff] }
 0x502   :  { %v948_v53 = vadd.f32 %v1555_v34, %v873_v50  ;;  %v950_v59 = vadd.f32 %v1557_v57, %v944_v51 }
 0x503   :  { %v1558_v54 = vmul.f32 -1.442695, %v947_v49 }
 0x504   :  { %v1559_v56 = vmul.f32 -1.442695, %v948_v53  ;;  %v1560_v61 = vmul.f32 -1.442695, %v950_v59 }
 0x505   :  { %2163 = vpow2.f32 %v1558_v54 }
 0x506   :  { %2165 = vpow2.f32 %v1559_v56  ;;  %v1564_v56 = vld [vmem:[%s2918_s0 + $0xb0] sm:$0xff] }
 0x507   :  { %2167 = vpow2.f32 %v1560_v61 }
 0x508   :  { %2169 = vtanh.f32 %v949_v63 }
 0x50f   :  { %v2164_v1 = vpop.eup %2163 }
 0x510   :  { %v2166_v2 = vpop.eup %2165  ;;  %v954_v5 = vadd.f32 1.0, %v2164_v1 }
 0x511   :  { %v960_v6 = vadd.f32 1.0, %v2166_v2  ;;  %v2168_v11 = vpop.eup %2167 }
 0x512   :  { %2171 = vrcp.f32 %v954_v5  ;;  %v2170_v12 = vpop.eup %2169  ;;  %v967_v20 = vadd.f32 1.0, %v2168_v11 }
 0x513   :  { %2173 = vrcp.f32 %v960_v6 }
 0x514   :  { %2175 = vrcp.f32 %v967_v20 }
 0x51c   :  { %v2172_v13 = vpop.eup %2171 }
 0x51d   :  { %v2174_v16 = vpop.eup %2173  ;;  %v972_v19 = vmul.f32 %v2172_v13, %v2170_v12 }
 0x51e   :  { %v971_v21 = vmul.f32 %v2174_v16, %v2742_v28  ;;  %v2176_v36 = vpop.eup %2175  ;;  %v1562_v28 = vld [vmem:[%s2918_s0 + $0xa0] sm:$0xff] }
 0x520   :  { %v2795_v23 = vadd.f32 %v972_v19, %v971_v21 }
 0x522   :  { %2177 = vtanh.f32 %v2795_v23 }
 0x52c   :  { %v2178_v38 = vpop.eup %2177 }
 0x52d   :  { %v975_v43 = vmul.f32 %v2178_v38, %v2176_v36 }
 0x52f   :  { %1561 = vst [vmem:[%s2919_s2 + $0x20] sm:$0xff] %v975_v43  ;;  %1051 = vmatmul.mubr.f32.vlgmr.msra.gmra.mrb[10].mxu0 %v975_v43  ;;  %1122 = vmatmul.mubr.f32.vlgmr.msra.gmra.mrb[10].mxu1 %v975_v43 }
 0x530   :  { %1973 = vmatpush1.bf16.msra.mxu0 %v2265_v8  ;;  %2005 = vmatpush1.bf16.msra.mxu1 %v2314_v25 }
 0x531   :  { %1975 = vmatprep.subr.bf16.mxu0 %v2267_v9  ;;  %2007 = vmatprep.subr.bf16.mxu1 %v2339_v33 }
 0x532   :  { %1231 = vmatprep.mubr.f32.mxu0 %v2227_v3  ;;  %1302 = vmatprep.mubr.f32.mxu1 %v2227_v3 }
 0x534   :  { %1977 = vmatpush1.bf16.msra.mxu0 %v2283_v14  ;;  %2009 = vmatpush1.bf16.msra.mxu1 %v2350_v37 }
 0x535   :  { %1979 = vmatprep.subr.bf16.mxu0 %v2292_v17  ;;  %2011 = vmatprep.subr.bf16.mxu1 %v2374_v45 }
 0x538   :  { %1981 = vmatpush1.bf16.msra.mxu0 %v2317_v26  ;;  %2013 = vmatpush1.bf16.msra.mxu1 %v2383_v48 }
 0x539   :  { %1983 = vmatprep.subr.bf16.mxu0 %v2330_v30  ;;  %2015 = vmatprep.subr.bf16.mxu1 %v2395_v52 }
 0x53c   :  { %1985 = vmatpush1.bf16.msra.mxu0 %v2366_v42  ;;  %2017 = vmatpush1.bf16.msra.mxu1 %v2425_v62 }
 0x53d   :  { %1987 = vmatprep.subr.bf16.mxu0 %v2377_v46  ;;  %2019 = vmatprep.subr.bf16.mxu1 %v2431_v0 }
 0x540   :  { %1989 = vmatpush1.bf16.msra.mxu0 %v2404_v55  ;;  %2021 = vmatpush1.bf16.msra.mxu1 %v2461_v15 }
 0x541   :  { %1991 = vmatprep.subr.bf16.mxu0 %v2413_v58  ;;  %2023 = vmatprep.subr.bf16.mxu1 %v2467_v18 }
 0x544   :  { %1993 = vmatpush1.bf16.msra.mxu0 %v2446_v7  ;;  %2025 = vmatpush1.bf16.msra.mxu1 %v2494_v31 }
 0x545   :  { %1995 = vmatprep.subr.bf16.mxu0 %v2449_v10  ;;  %2027 = vmatprep.subr.bf16.mxu1 %v2497_v32 }
 0x548   :  { %1997 = vmatpush1.bf16.msra.mxu0 %v2482_v24  ;;  %2029 = vmatpush1.bf16.msra.mxu1 %v2516_v40 }
 0x549   :  { %1999 = vmatprep.subr.bf16.mxu0 %v2485_v27  ;;  %2031 = vmatprep.subr.bf16.mxu1 %v2519_v41 }
 0x54c   :  { %2001 = vmatpush1.bf16.msra.mxu0 %v2512_v39  ;;  %2033 = vmatpush1.bf16.msra.mxu1 %v2529_v47 }
 0x54d   :  { %2035 = vmatprep.subr.bf16.mxu0 %v2254_v4  ;;  %2067 = vmatprep.subr.bf16.mxu1 %v2306_v22  ;;  %v1565_v4 = vld [vmem:[%s2918_s0 + $0xb8] sm:$0xff] }
 0x602   :  { %v1052_v34 = vpop.f32.mrb[10].mxu0  ;;  %v1123_v35 = vpop.f32.mrb[10].mxu1 }
 0x603   :  { %v1128_v44 = vadd.f32 %v1562_v28, %v1052_v34  ;;  %v1054_v49 = vpop.f32.mrb[11].mxu0  ;;  %v1125_v50 = vpop.f32.mrb[11].mxu1  ;;  %v1130_v59 = vadd.f32 %v1564_v56, %v1123_v35 }
 0x604   :  { %v1129_v51 = vadd.f32 %v1563_v29, %v1054_v49  ;;  %v1131_v22 = vadd.f32 %v1565_v4, %v1125_v50  ;;  %v1581_v50 = vld [vmem:[%s2918_s0 + $0xf8] sm:$0xff] }
 0x605   :  { %v1566_v53 = vmul.f32 -1.442695, %v1128_v44 }
 0x606   :  { %v1567_v54 = vmul.f32 -1.442695, %v1129_v51  ;;  %v1568_v57 = vmul.f32 -1.442695, %v1131_v22 }
 0x607   :  { %2179 = vpow2.f32 %v1566_v53  ;;  %v1580_v53 = vld [vmem:[%s2918_s0 + $0xf0] sm:$0xff] }
 0x608   :  { %2181 = vpow2.f32 %v1567_v54 }
 0x609   :  { %2183 = vpow2.f32 %v1568_v57 }
 0x60a   :  { %2185 = vtanh.f32 %v1130_v59 }
 0x611   :  { %v2180_v60 = vpop.eup %2179 }
 0x612   :  { %v2182_v61 = vpop.eup %2181  ;;  %v1135_v63 = vadd.f32 1.0, %v2180_v60 }
 0x613   :  { %v1141_v1 = vadd.f32 1.0, %v2182_v61  ;;  %v2184_v2 = vpop.eup %2183 }
 0x614   :  { %2187 = vrcp.f32 %v1135_v63  ;;  %v2186_v5 = vpop.eup %2185  ;;  %v1148_v13 = vadd.f32 1.0, %v2184_v2 }
 0x615   :  { %2189 = vrcp.f32 %v1141_v1 }
 0x616   :  { %2191 = vrcp.f32 %v1148_v13 }
 0x61e   :  { %v2188_v6 = vpop.eup %2187 }
 0x61f   :  { %v2190_v11 = vpop.eup %2189  ;;  %v1153_v12 = vmul.f32 %v2188_v6, %v2186_v5 }
 0x620   :  { %v1152_v16 = vmul.f32 %v2190_v11, %v2795_v23  ;;  %v2192_v20 = vpop.eup %2191  ;;  %v1579_v23 = vld [vmem:[%s2918_s0 + $0xe8] sm:$0xff] }
 0x622   :  { %v2848_v19 = vadd.f32 %v1153_v12, %v1152_v16 }
 0x624   :  { %2193 = vtanh.f32 %v2848_v19 }
 0x62e   :  { %v2194_v21 = vpop.eup %2193 }
 0x62f   :  { %v1156_v36 = vmul.f32 %v2194_v21, %v2192_v20 }
 0x631   :  { %1569 = vst [vmem:[%s2919_s2 + $0x28] sm:$0xff] %v1156_v36  ;;  %1232 = vmatmul.mubr.f32.vlgmr.msra.gmra.mrb[12].mxu0 %v1156_v36  ;;  %1303 = vmatmul.mubr.f32.vlgmr.msra.gmra.mrb[12].mxu1 %v1156_v36 }
 0x632   :  { %2037 = vmatpush1.bf16.msra.mxu0 %v2265_v8  ;;  %2069 = vmatpush1.bf16.msra.mxu1 %v2314_v25  ;;  %v1571_v8 = vld [vmem:[%s2918_s0 + $0xc8] sm:$0xff] }
 0x633   :  { %2039 = vmatprep.subr.bf16.mxu0 %v2267_v9  ;;  %2071 = vmatprep.subr.bf16.mxu1 %v2339_v33 }
 0x634   :  { %1412 = vmatprep.mubr.f32.mxu0 %v2227_v3  ;;  %1483 = vmatprep.mubr.f32.mxu1 %v2227_v3  ;;  %v1570_v3 = vld [vmem:[%s2918_s0 + $0xc0] sm:$0xff] }
 0x636   :  { %2041 = vmatpush1.bf16.msra.mxu0 %v2283_v14  ;;  %2073 = vmatpush1.bf16.msra.mxu1 %v2350_v37 }
 0x637   :  { %2043 = vmatprep.subr.bf16.mxu0 %v2292_v17  ;;  %2075 = vmatprep.subr.bf16.mxu1 %v2374_v45 }
 0x63a   :  { %2045 = vmatpush1.bf16.msra.mxu0 %v2317_v26  ;;  %2077 = vmatpush1.bf16.msra.mxu1 %v2383_v48 }
 0x63b   :  { %2047 = vmatprep.subr.bf16.mxu0 %v2330_v30  ;;  %2079 = vmatprep.subr.bf16.mxu1 %v2395_v52 }
 0x63e   :  { %2049 = vmatpush1.bf16.msra.mxu0 %v2366_v42  ;;  %2081 = vmatpush1.bf16.msra.mxu1 %v2425_v62  ;;  %v1573_v42 = vld [vmem:[%s2918_s0 + $0xd8] sm:$0xff] }
 0x63f   :  { %2051 = vmatprep.subr.bf16.mxu0 %v2377_v46  ;;  %2083 = vmatprep.subr.bf16.mxu1 %v2431_v0  ;;  %v1572_v46 = vld [vmem:[%s2918_s0 + $0xd0] sm:$0xff] }
 0x642   :  { %2053 = vmatpush1.bf16.msra.mxu0 %v2404_v55  ;;  %2085 = vmatpush1.bf16.msra.mxu1 %v2461_v15 }
 0x643   :  { %2055 = vmatprep.subr.bf16.mxu0 %v2413_v58  ;;  %2087 = vmatprep.subr.bf16.mxu1 %v2467_v18 }
 0x646   :  { %2057 = vmatpush1.bf16.msra.mxu0 %v2446_v7  ;;  %2089 = vmatpush1.bf16.msra.mxu1 %v2494_v31 }
 0x647   :  { %2059 = vmatprep.subr.bf16.mxu0 %v2449_v10  ;;  %2091 = vmatprep.subr.bf16.mxu1 %v2497_v32 }
 0x64a   :  { %2061 = vmatpush1.bf16.msra.mxu0 %v2482_v24  ;;  %2093 = vmatpush1.bf16.msra.mxu1 %v2516_v40 }
 0x64b   :  { %2063 = vmatprep.subr.bf16.mxu0 %v2485_v27  ;;  %2095 = vmatprep.subr.bf16.mxu1 %v2519_v41 }
 0x64e   :  { %2065 = vmatpush1.bf16.msra.mxu0 %v2512_v39  ;;  %2097 = vmatpush1.bf16.msra.mxu1 %v2529_v47  ;;  %v1578_v47 = vld [vmem:[%s2918_s0 + $0xe0] sm:$0xff] }
 0x704   :  { %v1233_v9 = vpop.f32.mrb[12].mxu0  ;;  %v1304_v14 = vpop.f32.mrb[12].mxu1 }
 0x705   :  { %v1309_v17 = vadd.f32 %v1570_v3, %v1233_v9  ;;  %v1235_v25 = vpop.f32.mrb[13].mxu0  ;;  %v1306_v26 = vpop.f32.mrb[13].mxu1  ;;  %v1311_v52 = vadd.f32 %v1572_v46, %v1304_v14 }
 0x706   :  { %v1310_v30 = vadd.f32 %v1571_v8, %v1235_v25  ;;  %v1312_v45 = vadd.f32 %v1573_v42, %v1306_v26 }
 0x707   :  { %v1574_v33 = vmul.f32 -1.442695, %v1309_v17 }
 0x708   :  { %v1575_v37 = vmul.f32 -1.442695, %v1310_v30  ;;  %v1576_v48 = vmul.f32 -1.442695, %v1312_v45 }
 0x709   :  { %2195 = vpow2.f32 %v1574_v33 }
 0x70a   :  { %2197 = vpow2.f32 %v1575_v37 }
 0x70b   :  { %2199 = vpow2.f32 %v1576_v48 }
 0x70c   :  { %2201 = vtanh.f32 %v1311_v52 }
 0x713   :  { %v2196_v55 = vpop.eup %2195 }
 0x714   :  { %v2198_v58 = vpop.eup %2197  ;;  %v1316_v62 = vadd.f32 1.0, %v2196_v55 }
 0x715   :  { %v1322_v0 = vadd.f32 1.0, %v2198_v58  ;;  %v2200_v7 = vpop.eup %2199 }
 0x716   :  { %2203 = vrcp.f32 %v1316_v62  ;;  %v2202_v10 = vpop.eup %2201  ;;  %v1329_v27 = vadd.f32 1.0, %v2200_v7 }
 0x717   :  { %2205 = vrcp.f32 %v1322_v0 }
 0x718   :  { %2207 = vrcp.f32 %v1329_v27 }
 0x720   :  { %v2204_v15 = vpop.eup %2203 }
 0x721   :  { %v2206_v18 = vpop.eup %2205  ;;  %v1334_v24 = vmul.f32 %v2204_v15, %v2202_v10 }
 0x722   :  { %v1333_v31 = vmul.f32 %v2206_v18, %v2848_v19  ;;  %v2208_v39 = vpop.eup %2207 }
 0x724   :  { %v1335_v32 = vadd.f32 %v1334_v24, %v1333_v31 }
 0x726   :  { %2209 = vtanh.f32 %v1335_v32 }
 0x730   :  { %v2210_v40 = vpop.eup %2209 }
 0x731   :  { %v1337_v41 = vmul.f32 %v2210_v40, %v2208_v39 }
 0x733   :  { %1577 = vst [vmem:[%s2919_s2 + $0x30] sm:$0xff] %v1337_v41  ;;  %1413 = vmatmul.mubr.f32.vlgmr.msra.gmra.mrb[14].mxu0 %v1337_v41  ;;  %1484 = vmatmul.mubr.f32.vlgmr.msra.gmra.mrb[14].mxu1 %v1337_v41 }
 0x806   :  { %v1414_v38 = vpop.f32.mrb[14].mxu0  ;;  %v1485_v43 = vpop.f32.mrb[14].mxu1 }
 0x807   :  { %v1490_v28 = vadd.f32 %v1578_v47, %v1414_v38  ;;  %v1416_v29 = vpop.f32.mrb[15].mxu0  ;;  %v1487_v34 = vpop.f32.mrb[15].mxu1  ;;  %v1492_v4 = vadd.f32 %v1580_v53, %v1485_v43 }
 0x808   :  { %v1491_v35 = vadd.f32 %v1579_v23, %v1416_v29  ;;  %v1493_v51 = vadd.f32 %v1581_v50, %v1487_v34 }
 0x809   :  { %v1582_v44 = vmul.f32 -1.442695, %v1490_v28 }
 0x80a   :  { %v1583_v49 = vmul.f32 -1.442695, %v1491_v35  ;;  %v1584_v54 = vmul.f32 -1.442695, %v1493_v51 }
 0x80b   :  { %2211 = vpow2.f32 %v1582_v44 }
 0x80c   :  { %2213 = vpow2.f32 %v1583_v49 }
 0x80d   :  { %2215 = vpow2.f32 %v1584_v54 }
 0x80e   :  { %2217 = vtanh.f32 %v1492_v4 }
 0x815   :  { %v2212_v22 = vpop.eup %2211 }
 0x816   :  { %v2214_v56 = vpop.eup %2213  ;;  %v1497_v57 = vadd.f32 1.0, %v2212_v22 }
 0x817   :  { %v1503_v59 = vadd.f32 1.0, %v2214_v56  ;;  %v2216_v60 = vpop.eup %2215 }
 0x818   :  { %2219 = vrcp.f32 %v1497_v57  ;;  %v2218_v61 = vpop.eup %2217  ;;  %v1510_v5 = vadd.f32 1.0, %v2216_v60 }
 0x819   :  { %2221 = vrcp.f32 %v1503_v59 }
 0x81a   :  { %2223 = vrcp.f32 %v1510_v5 }
 0x822   :  { %v2220_v63 = vpop.eup %2219 }
 0x823   :  { %v2222_v1 = vpop.eup %2221  ;;  %v1515_v2 = vmul.f32 %v2220_v63, %v2218_v61 }
 0x824   :  { %v1514_v6 = vmul.f32 %v2222_v1, %v1335_v32  ;;  %v2224_v12 = vpop.eup %2223 }
 0x826   :  { %v1516_v11 = vadd.f32 %v1515_v2, %v1514_v6 }
 0x828   :  { %2225 = vtanh.f32 %v1516_v11 }
 0x832   :  { %v2226_v13 = vpop.eup %2225 }
 0x833   :  { %v1518_v16 = vmul.f32 %v2226_v13, %v2224_v12 }
 0x835   :  { %1585 = vst [vmem:[%s2919_s2 + $0x38] sm:$0xff] %v1518_v16 }

// kernel: autoencoder_rnn_forward.3
= control target key start
LH: loop header
LB: loop body
LE: loop exit
PB: predicated region body
PF: predicated region fallthrough
CT: control target
= control target key end

     0   :  { %v2164_v3 = vmov 0.0   ;;  %s2810_s1 = inlined_call_operand.vmem [shape: f32[128,512], index: 1, kind: input, shape index: {}]   ;;  %s2811_s0 = inlined_call_operand.vmem [shape: f32[8,512], index: 0, kind: input, shape index: {}]   ;;  %s2812_s2 = inlined_call_operand.vmem [shape: f32[8,8,128], index: 2, kind: output, shape index: {}]  }
   0x1   :  { %v14_v0 = vld [vmem:[%s2810_s1 + $0x8] sm:$0xff]  ;;  %v13_v2 = vld [vmem:[%s2810_s1] sm:$0xff]  ;;  %146 = vmatprep.mubr.f32.mxu0 %v2164_v3  ;;  %217 = vmatprep.mubr.f32.mxu1 %v2164_v3  ;;  %v16_v19 = vld [vmem:[%s2810_s1 + $0x18] sm:$0xff] }
   0x2   :  { %v18_v1 = vld [vmem:[%s2810_s1 + $0x28] sm:$0xff]  ;;  %v17_v5 = vld [vmem:[%s2810_s1 + $0x20] sm:$0xff]  ;;  %v20_v20 = vld [vmem:[%s2810_s1 + $0x38] sm:$0xff] }
   0x3   :  { %v2191_v4 = vpack.c.bf16 %v18_v1, %v14_v0  ;;  %v22_v6 = vld [vmem:[%s2810_s1 + $0x48] sm:$0xff]  ;;  %v2202_v8 = vpack.c.bf16 %v17_v5, %v13_v2  ;;  %v21_v10 = vld [vmem:[%s2810_s1 + $0x40] sm:$0xff]  ;;  %v2243_v22 = vpack.c.bf16 %v20_v20, %v16_v19  ;;  %v15_v23 = vld [vmem:[%s2810_s1 + $0x10] sm:$0xff] }
   0x4   :  { %v26_v7 = vld [vmem:[%s2810_s1 + $0x68] sm:$0xff]  ;;  %v25_v11 = vld [vmem:[%s2810_s1 + $0x60] sm:$0xff]  ;;  %v19_v24 = vld [vmem:[%s2810_s1 + $0x30] sm:$0xff] }
   0x5   :  { %v2204_v9 = vpack.c.bf16 %v26_v7, %v22_v6  ;;  %v30_v12 = vld [vmem:[%s2810_s1 + $0x88] sm:$0xff]  ;;  %1524 = vmatprep.subr.bf16.mxu0 %v2191_v4  ;;  %v2220_v14 = vpack.c.bf16 %v25_v11, %v21_v10  ;;  %v29_v15 = vld [vmem:[%s2810_s1 + $0x80] sm:$0xff]  ;;  %v2251_v25 = vpack.c.bf16 %v19_v24, %v15_v23  ;;  %1556 = vmatprep.subr.bf16.mxu1 %v2243_v22  ;;  %v24_v27 = vld [vmem:[%s2810_s1 + $0x58] sm:$0xff] }
   0x6   :  { %v34_v13 = vld [vmem:[%s2810_s1 + $0xa8] sm:$0xff]  ;;  %1526 = vmatpush1.bf16.msra.mxu0 %v2202_v8  ;;  %v33_v16 = vld [vmem:[%s2810_s1 + $0xa0] sm:$0xff]  ;;  %v28_v28 = vld [vmem:[%s2810_s1 + $0x78] sm:$0xff] }
   0x7   :  { %1528 = vmatprep.subr.bf16.mxu0 %v2204_v9  ;;  %v2229_v17 = vpack.c.bf16 %v34_v13, %v30_v12  ;;  %v38_v18 = vld [vmem:[%s2810_s1 + $0xc8] sm:$0xff]  ;;  %v2254_v26 = vpack.c.bf16 %v33_v16, %v29_v15  ;;  %v23_v29 = vld [vmem:[%s2810_s1 + $0x50] sm:$0xff]  ;;  %v37_v31 = vld [vmem:[%s2810_s1 + $0xc0] sm:$0xff]  ;;  %1558 = vmatpush1.bf16.msra.mxu1 %v2251_v25  ;;  %v2276_v33 = vpack.c.bf16 %v28_v28, %v24_v27 }
   0x8   :  { %v42_v21 = vld [vmem:[%s2810_s1 + $0xe8] sm:$0xff]  ;;  %v41_v32 = vld [vmem:[%s2810_s1 + $0xe0] sm:$0xff]  ;;  %v27_v34 = vld [vmem:[%s2810_s1 + $0x70] sm:$0xff] }
   0x9   :  { %v2267_v30 = vpack.c.bf16 %v42_v21, %v38_v18  ;;  %v46_v35 = vld [vmem:[%s2810_s1 + $0x108] sm:$0xff]  ;;  %v2287_v37 = vpack.c.bf16 %v27_v34, %v23_v29  ;;  %v32_v38 = vld [vmem:[%s2810_s1 + $0x98] sm:$0xff]  ;;  %1560 = vmatprep.subr.bf16.mxu1 %v2276_v33  ;;  %v31_v40 = vld [vmem:[%s2810_s1 + $0x90] sm:$0xff]  ;;  %v2303_v42 = vpack.c.bf16 %v41_v32, %v37_v31 }
   0xa   :  { %1530 = vmatpush1.bf16.msra.mxu0 %v2220_v14  ;;  %v50_v36 = vld [vmem:[%s2810_s1 + $0x128] sm:$0xff]  ;;  %v36_v39 = vld [vmem:[%s2810_s1 + $0xb8] sm:$0xff]  ;;  %v35_v41 = vld [vmem:[%s2810_s1 + $0xb0] sm:$0xff] }
   0xb   :  { %1532 = vmatprep.subr.bf16.mxu0 %v2229_v17  ;;  %v45_v43 = vld [vmem:[%s2810_s1 + $0x100] sm:$0xff]  ;;  %v2311_v45 = vpack.c.bf16 %v36_v39, %v32_v38  ;;  %v2314_v46 = vpack.c.bf16 %v50_v36, %v46_v35  ;;  %1562 = vmatpush1.bf16.msra.mxu1 %v2287_v37  ;;  %v54_v47 = vld [vmem:[%s2810_s1 + $0x148] sm:$0xff]  ;;  %v2320_v48 = vpack.c.bf16 %v35_v41, %v31_v40  ;;  %v40_v49 = vld [vmem:[%s2810_s1 + $0xd8] sm:$0xff] }
   0xc   :  { %v49_v44 = vld [vmem:[%s2810_s1 + $0x120] sm:$0xff]  ;;  %v44_v50 = vld [vmem:[%s2810_s1 + $0xf8] sm:$0xff]  ;;  %v58_v51 = vld [vmem:[%s2810_s1 + $0x168] sm:$0xff] }
   0xd   :  { %1564 = vmatprep.subr.bf16.mxu1 %v2311_v45  ;;  %v2332_v52 = vpack.c.bf16 %v44_v50, %v40_v49  ;;  %v39_v53 = vld [vmem:[%s2810_s1 + $0xd0] sm:$0xff]  ;;  %v2341_v55 = vpack.c.bf16 %v49_v44, %v45_v43  ;;  %v48_v56 = vld [vmem:[%s2810_s1 + $0x118] sm:$0xff]  ;;  %v2350_v58 = vpack.c.bf16 %v58_v51, %v54_v47  ;;  %v53_v59 = vld [vmem:[%s2810_s1 + $0x140] sm:$0xff] }
   0xe   :  { %1534 = vmatpush1.bf16.msra.mxu0 %v2254_v26  ;;  %v43_v54 = vld [vmem:[%s2810_s1 + $0xf0] sm:$0xff]  ;;  %v52_v57 = vld [vmem:[%s2810_s1 + $0x138] sm:$0xff]  ;;  %v57_v60 = vld [vmem:[%s2810_s1 + $0x160] sm:$0xff] }
   0xf   :  { %1536 = vmatprep.subr.bf16.mxu0 %v2267_v30  ;;  %1566 = vmatpush1.bf16.msra.mxu1 %v2320_v48  ;;  %v62_v61 = vld [vmem:[%s2810_s1 + $0x188] sm:$0xff]  ;;  %v2362_v62 = vpack.c.bf16 %v43_v54, %v39_v53  ;;  %v2368_v0 = vpack.c.bf16 %v52_v57, %v48_v56  ;;  %v47_v1 = vld [vmem:[%s2810_s1 + $0x110] sm:$0xff]  ;;  %v56_v5 = vld [vmem:[%s2810_s1 + $0x158] sm:$0xff]  ;;  %v2383_v7 = vpack.c.bf16 %v57_v60, %v53_v59 }
  0x10   :  { %v66_v63 = vld [vmem:[%s2810_s1 + $0x1a8] sm:$0xff]  ;;  %1568 = vmatprep.subr.bf16.mxu1 %v2332_v52  ;;  %v51_v2 = vld [vmem:[%s2810_s1 + $0x130] sm:$0xff]  ;;  %v60_v6 = vld [vmem:[%s2810_s1 + $0x178] sm:$0xff] }
  0x11   :  { %v2386_v10 = vpack.c.bf16 %v66_v63, %v62_v61  ;;  %v61_v11 = vld [vmem:[%s2810_s1 + $0x180] sm:$0xff]  ;;  %v70_v13 = vld [vmem:[%s2810_s1 + $0x1c8] sm:$0xff]  ;;  %v2398_v15 = vpack.c.bf16 %v51_v2, %v47_v1  ;;  %v2404_v18 = vpack.c.bf16 %v60_v6, %v56_v5  ;;  %v55_v19 = vld [vmem:[%s2810_s1 + $0x150] sm:$0xff] }
  0x12   :  { %1538 = vmatpush1.bf16.msra.mxu0 %v2303_v42  ;;  %v65_v12 = vld [vmem:[%s2810_s1 + $0x1a0] sm:$0xff]  ;;  %v74_v16 = vld [vmem:[%s2810_s1 + $0x1e8] sm:$0xff]  ;;  %v59_v20 = vld [vmem:[%s2810_s1 + $0x170] sm:$0xff] }
  0x13   :  { %1540 = vmatprep.subr.bf16.mxu0 %v2314_v46  ;;  %1570 = vmatpush1.bf16.msra.mxu1 %v2362_v62  ;;  %v64_v21 = vld [vmem:[%s2810_s1 + $0x198] sm:$0xff]  ;;  %v2419_v24 = vpack.c.bf16 %v65_v12, %v61_v11  ;;  %v2422_v27 = vpack.c.bf16 %v74_v16, %v70_v13  ;;  %v69_v28 = vld [vmem:[%s2810_s1 + $0x1c0] sm:$0xff]  ;;  %v2431_v31 = vpack.c.bf16 %v59_v20, %v55_v19  ;;  %v63_v34 = vld [vmem:[%s2810_s1 + $0x190] sm:$0xff] }
  0x14   :  { %1572 = vmatprep.subr.bf16.mxu1 %v2368_v0  ;;  %v68_v23 = vld [vmem:[%s2810_s1 + $0x1b8] sm:$0xff]  ;;  %v73_v29 = vld [vmem:[%s2810_s1 + $0x1e0] sm:$0xff]  ;;  %v67_v35 = vld [vmem:[%s2810_s1 + $0x1b0] sm:$0xff] }
  0x15   :  { %v2434_v32 = vpack.c.bf16 %v68_v23, %v64_v21  ;;  %v72_v36 = vld [vmem:[%s2810_s1 + $0x1d8] sm:$0xff]  ;;  %v2449_v39 = vpack.c.bf16 %v73_v29, %v69_v28  ;;  %v2453_v40 = vpack.c.bf16 %v67_v35, %v63_v34  ;;  %v71_v43 = vld [vmem:[%s2810_s1 + $0x1d0] sm:$0xff]  ;;  %v2511_v49 = vld [vmem:[%s2811_s0] sm:$0xff] }
  0x16   :  { %1542 = vmatpush1.bf16.msra.mxu0 %v2341_v55  ;;  %v76_v38 = vld [vmem:[%s2810_s1 + $0x1f8] sm:$0xff]  ;;  %v75_v44 = vld [vmem:[%s2810_s1 + $0x1f0] sm:$0xff]  ;;  %v2516_v50 = vld [vmem:[%s2811_s0 + $0x8] sm:$0xff] }
  0x17   :  { %1544 = vmatprep.subr.bf16.mxu0 %v2350_v58  ;;  %1574 = vmatpush1.bf16.msra.mxu1 %v2398_v15  ;;  %v2456_v41 = vpack.c.bf16 %v76_v38, %v72_v36  ;;  %v2466_v47 = vpack.c.bf16 %v75_v44, %v71_v43  ;;  %v2523_v60 = vld [vmem:[%s2811_s0 + $0x18] sm:$0xff]  ;;  %v2529_v2 = vld [vmem:[%s2811_s0 + $0x10] sm:$0xff] }
  0x18   :  { %1576 = vmatprep.subr.bf16.mxu1 %v2404_v18 }
  0x1a   :  { %1546 = vmatpush1.bf16.msra.mxu0 %v2383_v7 }
  0x1b   :  { %1548 = vmatprep.subr.bf16.mxu0 %v2386_v10  ;;  %1578 = vmatpush1.bf16.msra.mxu1 %v2431_v31 }
  0x1c   :  { %1580 = vmatprep.subr.bf16.mxu1 %v2434_v32 }
  0x1e   :  { %1550 = vmatpush1.bf16.msra.mxu0 %v2419_v24 }
  0x1f   :  { %1552 = vmatprep.subr.bf16.mxu0 %v2422_v27  ;;  %1582 = vmatpush1.bf16.msra.mxu1 %v2453_v40 }
  0x20   :  { %1584 = vmatprep.subr.bf16.mxu1 %v2456_v41 }
  0x22   :  { %1554 = vmatpush1.bf16.msra.mxu0 %v2449_v39 }
  0x23   :  { %1588 = vmatprep.subr.bf16.mxu0 %v2191_v4  ;;  %1586 = vmatpush1.bf16.msra.mxu1 %v2466_v47 }
  0x24   :  { %1620 = vmatprep.subr.bf16.mxu1 %v2243_v22 }
  0x25   :  { %147 = vmatmul.mubr.f32.vlgmr.msra.gmra.mrb[0].mxu0 %v2164_v3 }
  0x26   :  { %1590 = vmatpush1.bf16.msra.mxu0 %v2202_v8  ;;  %321 = vmatprep.mubr.f32.mxu0 %v2164_v3 }
  0x27   :  { %1592 = vmatprep.subr.bf16.mxu0 %v2204_v9  ;;  %218 = vmatmul.mubr.f32.vlgmr.msra.gmra.mrb[0].mxu1 %v2164_v3 }
  0x28   :  { %1622 = vmatpush1.bf16.msra.mxu1 %v2251_v25  ;;  %392 = vmatprep.mubr.f32.mxu1 %v2164_v3 }
  0x29   :  { %1624 = vmatprep.subr.bf16.mxu1 %v2276_v33 }
  0x2a   :  { %1594 = vmatpush1.bf16.msra.mxu0 %v2220_v14 }
  0x2b   :  { %1596 = vmatprep.subr.bf16.mxu0 %v2229_v17 }
  0x2c   :  { %1626 = vmatpush1.bf16.msra.mxu1 %v2287_v37 }
  0x2d   :  { %1628 = vmatprep.subr.bf16.mxu1 %v2311_v45 }
  0x2e   :  { %1598 = vmatpush1.bf16.msra.mxu0 %v2254_v26 }
  0x2f   :  { %1600 = vmatprep.subr.bf16.mxu0 %v2267_v30 }
  0x30   :  { %1630 = vmatpush1.bf16.msra.mxu1 %v2320_v48 }
  0x31   :  { %1632 = vmatprep.subr.bf16.mxu1 %v2332_v52 }
  0x32   :  { %1602 = vmatpush1.bf16.msra.mxu0 %v2303_v42 }
  0x33   :  { %1604 = vmatprep.subr.bf16.mxu0 %v2314_v46 }
  0x34   :  { %1634 = vmatpush1.bf16.msra.mxu1 %v2362_v62 }
  0x35   :  { %1636 = vmatprep.subr.bf16.mxu1 %v2368_v0 }
  0x36   :  { %1606 = vmatpush1.bf16.msra.mxu0 %v2341_v55 }
  0x37   :  { %1608 = vmatprep.subr.bf16.mxu0 %v2350_v58 }
  0x38   :  { %1638 = vmatpush1.bf16.msra.mxu1 %v2398_v15 }
  0x39   :  { %1640 = vmatprep.subr.bf16.mxu1 %v2404_v18 }
  0x3a   :  { %1610 = vmatpush1.bf16.msra.mxu0 %v2383_v7 }
  0x3b   :  { %1612 = vmatprep.subr.bf16.mxu0 %v2386_v10 }
  0x3c   :  { %1642 = vmatpush1.bf16.msra.mxu1 %v2431_v31 }
  0x3d   :  { %1644 = vmatprep.subr.bf16.mxu1 %v2434_v32 }
  0x3e   :  { %1614 = vmatpush1.bf16.msra.mxu0 %v2419_v24 }
  0x3f   :  { %1616 = vmatprep.subr.bf16.mxu0 %v2422_v27 }
  0x40   :  { %1646 = vmatpush1.bf16.msra.mxu1 %v2453_v40 }
  0x41   :  { %1648 = vmatprep.subr.bf16.mxu1 %v2456_v41 }
  0x42   :  { %1618 = vmatpush1.bf16.msra.mxu0 %v2449_v39 }
  0x43   :  { %1652 = vmatprep.subr.bf16.mxu0 %v2191_v4 }
  0x44   :  { %1650 = vmatpush1.bf16.msra.mxu1 %v2466_v47 }
  0x45   :  { %1684 = vmatprep.subr.bf16.mxu1 %v2243_v22 }
  0xf8   :  { %v148_v51 = vpop.f32.mrb[0].mxu0 }
  0xf9   :  { %v224_v53 = vadd.f32 %v148_v51, %v2511_v49  ;;  %v150_v54 = vpop.f32.mrb[1].mxu0 }
  0xfa   :  { %v225_v56 = vadd.f32 %v150_v54, %v2516_v50  ;;  %v219_v61 = vpop.f32.mrb[0].mxu1 }
  0xfb   :  { %v1492_v57 = vmul.f32 -1.442695, %v224_v53  ;;  %v221_v63 = vpop.f32.mrb[1].mxu1  ;;  %v226_v6 = vadd.f32 %v219_v61, %v2529_v2 }
  0xfc   :  { %v1493_v59 = vmul.f32 -1.442695, %v225_v56  ;;  %v227_v1 = vadd.f32 %v221_v63, %v2523_v60 }
  0xfd   :  { %2036 = vpow2.f32 %v1492_v57 }
  0xfe   :  { %2038 = vpow2.f32 %v1493_v59  ;;  %v1494_v5 = vmul.f32 -1.442695, %v227_v1 }
 0x100   :  { %2040 = vpow2.f32 %v1494_v5 }
 0x101   :  { %2042 = vtanh.f32 %v226_v6 }
 0x107   :  { %v2037_v11 = vpop.eup %2036 }
 0x108   :  { %v2039_v12 = vpop.eup %2038  ;;  %v231_v13 = vadd.f32 1.0, %v2037_v11 }
 0x109   :  { %v237_v16 = vadd.f32 1.0, %v2039_v12 }
 0x10a   :  { %2044 = vrcp.f32 %v231_v13  ;;  %v2041_v19 = vpop.eup %2040 }
 0x10b   :  { %2046 = vrcp.f32 %v237_v16  ;;  %v2043_v20 = vpop.eup %2042  ;;  %v244_v23 = vadd.f32 1.0, %v2041_v19 }
 0x10d   :  { %2048 = vrcp.f32 %v244_v23 }
 0x114   :  { %v2045_v21 = vpop.eup %2044 }
 0x115   :  { %v2047_v28 = vpop.eup %2046  ;;  %v249_v29 = vmul.f32 %v2045_v21, %v2043_v20 }
 0x116   :  { %v248_v34 = vmul.f32 0.0, %v2047_v28 }
 0x117   :  { %v2049_v36 = vpop.eup %2048 }
 0x118   :  { %v2532_v35 = vadd.f32 %v249_v29, %v248_v34 }
 0x11a   :  { %2050 = vtanh.f32 %v2532_v35 }
 0x124   :  { %v2051_v38 = vpop.eup %2050 }
 0x125   :  { %v252_v43 = vmul.f32 %v2051_v38, %v2049_v36 }
 0x127   :  { %255 = vst [vmem:[%s2812_s2] sm:$0xff] %v252_v43  ;;  %322 = vmatmul.mubr.f32.vlgmr.msra.gmra.mrb[2].mxu0 %v252_v43  ;;  %393 = vmatmul.mubr.f32.vlgmr.msra.gmra.mrb[2].mxu1 %v252_v43 }
 0x128   :  { %1654 = vmatpush1.bf16.msra.mxu0 %v2202_v8  ;;  %1686 = vmatpush1.bf16.msra.mxu1 %v2251_v25 }
 0x129   :  { %1656 = vmatprep.subr.bf16.mxu0 %v2204_v9  ;;  %1688 = vmatprep.subr.bf16.mxu1 %v2276_v33 }
 0x12a   :  { %497 = vmatprep.mubr.f32.mxu0 %v2164_v3  ;;  %568 = vmatprep.mubr.f32.mxu1 %v2164_v3 }
 0x12c   :  { %1658 = vmatpush1.bf16.msra.mxu0 %v2220_v14  ;;  %1690 = vmatpush1.bf16.msra.mxu1 %v2287_v37 }
 0x12d   :  { %1660 = vmatprep.subr.bf16.mxu0 %v2229_v17  ;;  %1692 = vmatprep.subr.bf16.mxu1 %v2311_v45 }
 0x130   :  { %1662 = vmatpush1.bf16.msra.mxu0 %v2254_v26  ;;  %1694 = vmatpush1.bf16.msra.mxu1 %v2320_v48 }
 0x131   :  { %1664 = vmatprep.subr.bf16.mxu0 %v2267_v30  ;;  %1696 = vmatprep.subr.bf16.mxu1 %v2332_v52 }
 0x134   :  { %1666 = vmatpush1.bf16.msra.mxu0 %v2303_v42  ;;  %1698 = vmatpush1.bf16.msra.mxu1 %v2362_v62 }
 0x135   :  { %1668 = vmatprep.subr.bf16.mxu0 %v2314_v46  ;;  %1700 = vmatprep.subr.bf16.mxu1 %v2368_v0 }
 0x138   :  { %1670 = vmatpush1.bf16.msra.mxu0 %v2341_v55  ;;  %1702 = vmatpush1.bf16.msra.mxu1 %v2398_v15 }
 0x139   :  { %1672 = vmatprep.subr.bf16.mxu0 %v2350_v58  ;;  %1704 = vmatprep.subr.bf16.mxu1 %v2404_v18 }
 0x13c   :  { %1674 = vmatpush1.bf16.msra.mxu0 %v2383_v7  ;;  %1706 = vmatpush1.bf16.msra.mxu1 %v2431_v31 }
 0x13d   :  { %1676 = vmatprep.subr.bf16.mxu0 %v2386_v10  ;;  %1708 = vmatprep.subr.bf16.mxu1 %v2434_v32 }
 0x140   :  { %1678 = vmatpush1.bf16.msra.mxu0 %v2419_v24  ;;  %1710 = vmatpush1.bf16.msra.mxu1 %v2453_v40 }
 0x141   :  { %1680 = vmatprep.subr.bf16.mxu0 %v2422_v27  ;;  %1712 = vmatprep.subr.bf16.mxu1 %v2456_v41 }
 0x144   :  { %1682 = vmatpush1.bf16.msra.mxu0 %v2449_v39  ;;  %1714 = vmatpush1.bf16.msra.mxu1 %v2466_v47 }
 0x145   :  { %1716 = vmatprep.subr.bf16.mxu0 %v2191_v4  ;;  %1748 = vmatprep.subr.bf16.mxu1 %v2243_v22 }
 0x1fa   :  { %v323_v44 = vpop.f32.mrb[2].mxu0  ;;  %v394_v51 = vpop.f32.mrb[2].mxu1 }
 0x1fb   :  { %v399_v53 = vadd.f32 %v323_v44, %v2511_v49  ;;  %v325_v54 = vpop.f32.mrb[3].mxu0  ;;  %v396_v56 = vpop.f32.mrb[3].mxu1  ;;  %v401_v5 = vadd.f32 %v394_v51, %v2529_v2 }
 0x1fc   :  { %v400_v57 = vadd.f32 %v325_v54, %v2516_v50  ;;  %v402_v63 = vadd.f32 %v396_v56, %v2523_v60 }
 0x1fd   :  { %v1495_v59 = vmul.f32 -1.442695, %v399_v53 }
 0x1fe   :  { %v1496_v61 = vmul.f32 -1.442695, %v400_v57  ;;  %v1497_v1 = vmul.f32 -1.442695, %v402_v63 }
 0x1ff   :  { %2052 = vpow2.f32 %v1495_v59 }
 0x200   :  { %2054 = vpow2.f32 %v1496_v61 }
 0x201   :  { %2056 = vpow2.f32 %v1497_v1 }
 0x202   :  { %2058 = vtanh.f32 %v401_v5 }
 0x209   :  { %v2053_v6 = vpop.eup %2052 }
 0x20a   :  { %v2055_v11 = vpop.eup %2054  ;;  %v406_v12 = vadd.f32 1.0, %v2053_v6 }
 0x20b   :  { %v412_v13 = vadd.f32 1.0, %v2055_v11  ;;  %v2057_v16 = vpop.eup %2056 }
 0x20c   :  { %2060 = vrcp.f32 %v406_v12  ;;  %v2059_v19 = vpop.eup %2058  ;;  %v419_v28 = vadd.f32 1.0, %v2057_v16 }
 0x20d   :  { %2062 = vrcp.f32 %v412_v13 }
 0x20e   :  { %2064 = vrcp.f32 %v419_v28 }
 0x216   :  { %v2061_v20 = vpop.eup %2060 }
 0x217   :  { %v2063_v21 = vpop.eup %2062  ;;  %v424_v23 = vmul.f32 %v2061_v20, %v2059_v19 }
 0x218   :  { %v423_v29 = vmul.f32 %v2063_v21, %v2532_v35  ;;  %v2065_v36 = vpop.eup %2064 }
 0x21a   :  { %v2577_v34 = vadd.f32 %v424_v23, %v423_v29 }
 0x21c   :  { %2066 = vtanh.f32 %v2577_v34 }
 0x226   :  { %v2067_v38 = vpop.eup %2066 }
 0x227   :  { %v427_v43 = vmul.f32 %v2067_v38, %v2065_v36 }
 0x229   :  { %1498 = vst [vmem:[%s2812_s2 + $0x8] sm:$0xff] %v427_v43  ;;  %498 = vmatmul.mubr.f32.vlgmr.msra.gmra.mrb[4].mxu0 %v427_v43  ;;  %569 = vmatmul.mubr.f32.vlgmr.msra.gmra.mrb[4].mxu1 %v427_v43 }
 0x22a   :  { %1718 = vmatpush1.bf16.msra.mxu0 %v2202_v8  ;;  %1750 = vmatpush1.bf16.msra.mxu1 %v2251_v25 }
 0x22b   :  { %1720 = vmatprep.subr.bf16.mxu0 %v2204_v9  ;;  %1752 = vmatprep.subr.bf16.mxu1 %v2276_v33 }
 0x22c   :  { %673 = vmatprep.mubr.f32.mxu0 %v2164_v3  ;;  %744 = vmatprep.mubr.f32.mxu1 %v2164_v3 }
 0x22e   :  { %1722 = vmatpush1.bf16.msra.mxu0 %v2220_v14  ;;  %1754 = vmatpush1.bf16.msra.mxu1 %v2287_v37 }
 0x22f   :  { %1724 = vmatprep.subr.bf16.mxu0 %v2229_v17  ;;  %1756 = vmatprep.subr.bf16.mxu1 %v2311_v45 }
 0x232   :  { %1726 = vmatpush1.bf16.msra.mxu0 %v2254_v26  ;;  %1758 = vmatpush1.bf16.msra.mxu1 %v2320_v48 }
 0x233   :  { %1728 = vmatprep.subr.bf16.mxu0 %v2267_v30  ;;  %1760 = vmatprep.subr.bf16.mxu1 %v2332_v52 }
 0x236   :  { %1730 = vmatpush1.bf16.msra.mxu0 %v2303_v42  ;;  %1762 = vmatpush1.bf16.msra.mxu1 %v2362_v62 }
 0x237   :  { %1732 = vmatprep.subr.bf16.mxu0 %v2314_v46  ;;  %1764 = vmatprep.subr.bf16.mxu1 %v2368_v0 }
 0x23a   :  { %1734 = vmatpush1.bf16.msra.mxu0 %v2341_v55  ;;  %1766 = vmatpush1.bf16.msra.mxu1 %v2398_v15 }
 0x23b   :  { %1736 = vmatprep.subr.bf16.mxu0 %v2350_v58  ;;  %1768 = vmatprep.subr.bf16.mxu1 %v2404_v18 }
 0x23e   :  { %1738 = vmatpush1.bf16.msra.mxu0 %v2383_v7  ;;  %1770 = vmatpush1.bf16.msra.mxu1 %v2431_v31 }
 0x23f   :  { %1740 = vmatprep.subr.bf16.mxu0 %v2386_v10  ;;  %1772 = vmatprep.subr.bf16.mxu1 %v2434_v32 }
 0x242   :  { %1742 = vmatpush1.bf16.msra.mxu0 %v2419_v24  ;;  %1774 = vmatpush1.bf16.msra.mxu1 %v2453_v40 }
 0x243   :  { %1744 = vmatprep.subr.bf16.mxu0 %v2422_v27  ;;  %1776 = vmatprep.subr.bf16.mxu1 %v2456_v41 }
 0x246   :  { %1746 = vmatpush1.bf16.msra.mxu0 %v2449_v39  ;;  %1778 = vmatpush1.bf16.msra.mxu1 %v2466_v47 }
 0x247   :  { %1780 = vmatprep.subr.bf16.mxu0 %v2191_v4  ;;  %1812 = vmatprep.subr.bf16.mxu1 %v2243_v22 }
 0x2fc   :  { %v499_v35 = vpop.f32.mrb[4].mxu0  ;;  %v570_v44 = vpop.f32.mrb[4].mxu1 }
 0x2fd   :  { %v575_v51 = vadd.f32 %v499_v35, %v2511_v49  ;;  %v501_v53 = vpop.f32.mrb[5].mxu0  ;;  %v572_v54 = vpop.f32.mrb[5].mxu1  ;;  %v577_v1 = vadd.f32 %v570_v44, %v2529_v2 }
 0x2fe   :  { %v576_v56 = vadd.f32 %v501_v53, %v2516_v50  ;;  %v578_v61 = vadd.f32 %v572_v54, %v2523_v60 }
 0x2ff   :  { %v1499_v57 = vmul.f32 -1.442695, %v575_v51 }
 0x300   :  { %v1500_v59 = vmul.f32 -1.442695, %v576_v56  ;;  %v1501_v63 = vmul.f32 -1.442695, %v578_v61 }
 0x301   :  { %2068 = vpow2.f32 %v1499_v57 }
 0x302   :  { %2070 = vpow2.f32 %v1500_v59 }
 0x303   :  { %2072 = vpow2.f32 %v1501_v63 }
 0x304   :  { %2074 = vtanh.f32 %v577_v1 }
 0x30b   :  { %v2069_v5 = vpop.eup %2068 }
 0x30c   :  { %v2071_v6 = vpop.eup %2070  ;;  %v582_v11 = vadd.f32 1.0, %v2069_v5 }
 0x30d   :  { %v588_v12 = vadd.f32 1.0, %v2071_v6  ;;  %v2073_v13 = vpop.eup %2072 }
 0x30e   :  { %2076 = vrcp.f32 %v582_v11  ;;  %v2075_v16 = vpop.eup %2074  ;;  %v595_v23 = vadd.f32 1.0, %v2073_v13 }
 0x30f   :  { %2078 = vrcp.f32 %v588_v12 }
 0x310   :  { %2080 = vrcp.f32 %v595_v23 }
 0x318   :  { %v2077_v19 = vpop.eup %2076 }
 0x319   :  { %v2079_v20 = vpop.eup %2078  ;;  %v600_v21 = vmul.f32 %v2077_v19, %v2075_v16 }
 0x31a   :  { %v599_v28 = vmul.f32 %v2079_v20, %v2577_v34  ;;  %v2081_v36 = vpop.eup %2080 }
 0x31c   :  { %v2622_v29 = vadd.f32 %v600_v21, %v599_v28 }
 0x31e   :  { %2082 = vtanh.f32 %v2622_v29 }
 0x328   :  { %v2083_v38 = vpop.eup %2082 }
 0x329   :  { %v603_v43 = vmul.f32 %v2083_v38, %v2081_v36 }
 0x32b   :  { %1502 = vst [vmem:[%s2812_s2 + $0x10] sm:$0xff] %v603_v43  ;;  %674 = vmatmul.mubr.f32.vlgmr.msra.gmra.mrb[6].mxu0 %v603_v43  ;;  %745 = vmatmul.mubr.f32.vlgmr.msra.gmra.mrb[6].mxu1 %v603_v43 }
 0x32c   :  { %1782 = vmatpush1.bf16.msra.mxu0 %v2202_v8  ;;  %1814 = vmatpush1.bf16.msra.mxu1 %v2251_v25 }
 0x32d   :  { %1784 = vmatprep.subr.bf16.mxu0 %v2204_v9  ;;  %1816 = vmatprep.subr.bf16.mxu1 %v2276_v33 }
 0x32e   :  { %849 = vmatprep.mubr.f32.mxu0 %v2164_v3  ;;  %920 = vmatprep.mubr.f32.mxu1 %v2164_v3 }
 0x330   :  { %1786 = vmatpush1.bf16.msra.mxu0 %v2220_v14  ;;  %1818 = vmatpush1.bf16.msra.mxu1 %v2287_v37 }
 0x331   :  { %1788 = vmatprep.subr.bf16.mxu0 %v2229_v17  ;;  %1820 = vmatprep.subr.bf16.mxu1 %v2311_v45 }
 0x334   :  { %1790 = vmatpush1.bf16.msra.mxu0 %v2254_v26  ;;  %1822 = vmatpush1.bf16.msra.mxu1 %v2320_v48 }
 0x335   :  { %1792 = vmatprep.subr.bf16.mxu0 %v2267_v30  ;;  %1824 = vmatprep.subr.bf16.mxu1 %v2332_v52 }
 0x338   :  { %1794 = vmatpush1.bf16.msra.mxu0 %v2303_v42  ;;  %1826 = vmatpush1.bf16.msra.mxu1 %v2362_v62 }
 0x339   :  { %1796 = vmatprep.subr.bf16.mxu0 %v2314_v46  ;;  %1828 = vmatprep.subr.bf16.mxu1 %v2368_v0 }
 0x33c   :  { %1798 = vmatpush1.bf16.msra.mxu0 %v2341_v55  ;;  %1830 = vmatpush1.bf16.msra.mxu1 %v2398_v15 }
 0x33d   :  { %1800 = vmatprep.subr.bf16.mxu0 %v2350_v58  ;;  %1832 = vmatprep.subr.bf16.mxu1 %v2404_v18 }
 0x340   :  { %1802 = vmatpush1.bf16.msra.mxu0 %v2383_v7  ;;  %1834 = vmatpush1.bf16.msra.mxu1 %v2431_v31 }
 0x341   :  { %1804 = vmatprep.subr.bf16.mxu0 %v2386_v10  ;;  %1836 = vmatprep.subr.bf16.mxu1 %v2434_v32 }
 0x344   :  { %1806 = vmatpush1.bf16.msra.mxu0 %v2419_v24  ;;  %1838 = vmatpush1.bf16.msra.mxu1 %v2453_v40 }
 0x345   :  { %1808 = vmatprep.subr.bf16.mxu0 %v2422_v27  ;;  %1840 = vmatprep.subr.bf16.mxu1 %v2456_v41 }
 0x348   :  { %1810 = vmatpush1.bf16.msra.mxu0 %v2449_v39  ;;  %1842 = vmatpush1.bf16.msra.mxu1 %v2466_v47 }
 0x349   :  { %1844 = vmatprep.subr.bf16.mxu0 %v2191_v4  ;;  %1876 = vmatprep.subr.bf16.mxu1 %v2243_v22 }
 0x3fe   :  { %v675_v34 = vpop.f32.mrb[6].mxu0  ;;  %v746_v35 = vpop.f32.mrb[6].mxu1 }
 0x3ff   :  { %v751_v44 = vadd.f32 %v675_v34, %v2511_v49  ;;  %v677_v51 = vpop.f32.mrb[7].mxu0  ;;  %v748_v53 = vpop.f32.mrb[7].mxu1  ;;  %v753_v63 = vadd.f32 %v746_v35, %v2529_v2 }
 0x400   :  { %v752_v54 = vadd.f32 %v677_v51, %v2516_v50  ;;  %v754_v59 = vadd.f32 %v748_v53, %v2523_v60 }
 0x401   :  { %v1503_v56 = vmul.f32 -1.442695, %v751_v44 }
 0x402   :  { %v1504_v57 = vmul.f32 -1.442695, %v752_v54  ;;  %v1505_v61 = vmul.f32 -1.442695, %v754_v59 }
 0x403   :  { %2084 = vpow2.f32 %v1503_v56 }
 0x404   :  { %2086 = vpow2.f32 %v1504_v57 }
 0x405   :  { %2088 = vpow2.f32 %v1505_v61 }
 0x406   :  { %2090 = vtanh.f32 %v753_v63 }
 0x40d   :  { %v2085_v1 = vpop.eup %2084 }
 0x40e   :  { %v2087_v5 = vpop.eup %2086  ;;  %v758_v6 = vadd.f32 1.0, %v2085_v1 }
 0x40f   :  { %v764_v11 = vadd.f32 1.0, %v2087_v5  ;;  %v2089_v12 = vpop.eup %2088 }
 0x410   :  { %2092 = vrcp.f32 %v758_v6  ;;  %v2091_v13 = vpop.eup %2090  ;;  %v771_v21 = vadd.f32 1.0, %v2089_v12 }
 0x411   :  { %2094 = vrcp.f32 %v764_v11 }
 0x412   :  { %2096 = vrcp.f32 %v771_v21 }
 0x41a   :  { %v2093_v16 = vpop.eup %2092 }
 0x41b   :  { %v2095_v19 = vpop.eup %2094  ;;  %v776_v20 = vmul.f32 %v2093_v16, %v2091_v13 }
 0x41c   :  { %v775_v23 = vmul.f32 %v2095_v19, %v2622_v29  ;;  %v2097_v36 = vpop.eup %2096 }
 0x41e   :  { %v2667_v28 = vadd.f32 %v776_v20, %v775_v23 }
 0x420   :  { %2098 = vtanh.f32 %v2667_v28 }
 0x42a   :  { %v2099_v38 = vpop.eup %2098 }
 0x42b   :  { %v779_v43 = vmul.f32 %v2099_v38, %v2097_v36 }
 0x42d   :  { %1506 = vst [vmem:[%s2812_s2 + $0x18] sm:$0xff] %v779_v43  ;;  %850 = vmatmul.mubr.f32.vlgmr.msra.gmra.mrb[8].mxu0 %v779_v43  ;;  %921 = vmatmul.mubr.f32.vlgmr.msra.gmra.mrb[8].mxu1 %v779_v43 }
 0x42e   :  { %1846 = vmatpush1.bf16.msra.mxu0 %v2202_v8  ;;  %1878 = vmatpush1.bf16.msra.mxu1 %v2251_v25 }
 0x42f   :  { %1848 = vmatprep.subr.bf16.mxu0 %v2204_v9  ;;  %1880 = vmatprep.subr.bf16.mxu1 %v2276_v33 }
 0x430   :  { %1025 = vmatprep.mubr.f32.mxu0 %v2164_v3  ;;  %1096 = vmatprep.mubr.f32.mxu1 %v2164_v3 }
 0x432   :  { %1850 = vmatpush1.bf16.msra.mxu0 %v2220_v14  ;;  %1882 = vmatpush1.bf16.msra.mxu1 %v2287_v37 }
 0x433   :  { %1852 = vmatprep.subr.bf16.mxu0 %v2229_v17  ;;  %1884 = vmatprep.subr.bf16.mxu1 %v2311_v45 }
 0x436   :  { %1854 = vmatpush1.bf16.msra.mxu0 %v2254_v26  ;;  %1886 = vmatpush1.bf16.msra.mxu1 %v2320_v48 }
 0x437   :  { %1856 = vmatprep.subr.bf16.mxu0 %v2267_v30  ;;  %1888 = vmatprep.subr.bf16.mxu1 %v2332_v52 }
 0x43a   :  { %1858 = vmatpush1.bf16.msra.mxu0 %v2303_v42  ;;  %1890 = vmatpush1.bf16.msra.mxu1 %v2362_v62 }
 0x43b   :  { %1860 = vmatprep.subr.bf16.mxu0 %v2314_v46  ;;  %1892 = vmatprep.subr.bf16.mxu1 %v2368_v0 }
 0x43e   :  { %1862 = vmatpush1.bf16.msra.mxu0 %v2341_v55  ;;  %1894 = vmatpush1.bf16.msra.mxu1 %v2398_v15 }
 0x43f   :  { %1864 = vmatprep.subr.bf16.mxu0 %v2350_v58  ;;  %1896 = vmatprep.subr.bf16.mxu1 %v2404_v18 }
 0x442   :  { %1866 = vmatpush1.bf16.msra.mxu0 %v2383_v7  ;;  %1898 = vmatpush1.bf16.msra.mxu1 %v2431_v31 }
 0x443   :  { %1868 = vmatprep.subr.bf16.mxu0 %v2386_v10  ;;  %1900 = vmatprep.subr.bf16.mxu1 %v2434_v32 }
 0x446   :  { %1870 = vmatpush1.bf16.msra.mxu0 %v2419_v24  ;;  %1902 = vmatpush1.bf16.msra.mxu1 %v2453_v40 }
 0x447   :  { %1872 = vmatprep.subr.bf16.mxu0 %v2422_v27  ;;  %1904 = vmatprep.subr.bf16.mxu1 %v2456_v41 }
 0x44a   :  { %1874 = vmatpush1.bf16.msra.mxu0 %v2449_v39  ;;  %1906 = vmatpush1.bf16.msra.mxu1 %v2466_v47 }
 0x44b   :  { %1908 = vmatprep.subr.bf16.mxu0 %v2191_v4  ;;  %1940 = vmatprep.subr.bf16.mxu1 %v2243_v22 }
 0x500   :  { %v851_v29 = vpop.f32.mrb[8].mxu0  ;;  %v922_v34 = vpop.f32.mrb[8].mxu1 }
 0x501   :  { %v927_v35 = vadd.f32 %v851_v29, %v2511_v49  ;;  %v853_v44 = vpop.f32.mrb[9].mxu0  ;;  %v924_v51 = vpop.f32.mrb[9].mxu1  ;;  %v929_v61 = vadd.f32 %v922_v34, %v2529_v2 }
 0x502   :  { %v928_v53 = vadd.f32 %v853_v44, %v2516_v50  ;;  %v930_v57 = vadd.f32 %v924_v51, %v2523_v60 }
 0x503   :  { %v1507_v54 = vmul.f32 -1.442695, %v927_v35 }
 0x504   :  { %v1508_v56 = vmul.f32 -1.442695, %v928_v53  ;;  %v1509_v59 = vmul.f32 -1.442695, %v930_v57 }
 0x505   :  { %2100 = vpow2.f32 %v1507_v54 }
 0x506   :  { %2102 = vpow2.f32 %v1508_v56 }
 0x507   :  { %2104 = vpow2.f32 %v1509_v59 }
 0x508   :  { %2106 = vtanh.f32 %v929_v61 }
 0x50f   :  { %v2101_v63 = vpop.eup %2100 }
 0x510   :  { %v2103_v1 = vpop.eup %2102  ;;  %v934_v5 = vadd.f32 1.0, %v2101_v63 }
 0x511   :  { %v940_v6 = vadd.f32 1.0, %v2103_v1  ;;  %v2105_v11 = vpop.eup %2104 }
 0x512   :  { %2108 = vrcp.f32 %v934_v5  ;;  %v2107_v12 = vpop.eup %2106  ;;  %v947_v20 = vadd.f32 1.0, %v2105_v11 }
 0x513   :  { %2110 = vrcp.f32 %v940_v6 }
 0x514   :  { %2112 = vrcp.f32 %v947_v20 }
 0x51c   :  { %v2109_v13 = vpop.eup %2108 }
 0x51d   :  { %v2111_v16 = vpop.eup %2110  ;;  %v952_v19 = vmul.f32 %v2109_v13, %v2107_v12 }
 0x51e   :  { %v951_v21 = vmul.f32 %v2111_v16, %v2667_v28  ;;  %v2113_v36 = vpop.eup %2112 }
 0x520   :  { %v2712_v23 = vadd.f32 %v952_v19, %v951_v21 }
 0x522   :  { %2114 = vtanh.f32 %v2712_v23 }
 0x52c   :  { %v2115_v38 = vpop.eup %2114 }
 0x52d   :  { %v955_v43 = vmul.f32 %v2115_v38, %v2113_v36 }
 0x52f   :  { %1510 = vst [vmem:[%s2812_s2 + $0x20] sm:$0xff] %v955_v43  ;;  %1026 = vmatmul.mubr.f32.vlgmr.msra.gmra.mrb[10].mxu0 %v955_v43  ;;  %1097 = vmatmul.mubr.f32.vlgmr.msra.gmra.mrb[10].mxu1 %v955_v43 }
 0x530   :  { %1910 = vmatpush1.bf16.msra.mxu0 %v2202_v8  ;;  %1942 = vmatpush1.bf16.msra.mxu1 %v2251_v25 }
 0x531   :  { %1912 = vmatprep.subr.bf16.mxu0 %v2204_v9  ;;  %1944 = vmatprep.subr.bf16.mxu1 %v2276_v33 }
 0x532   :  { %1201 = vmatprep.mubr.f32.mxu0 %v2164_v3  ;;  %1272 = vmatprep.mubr.f32.mxu1 %v2164_v3 }
 0x534   :  { %1914 = vmatpush1.bf16.msra.mxu0 %v2220_v14  ;;  %1946 = vmatpush1.bf16.msra.mxu1 %v2287_v37 }
 0x535   :  { %1916 = vmatprep.subr.bf16.mxu0 %v2229_v17  ;;  %1948 = vmatprep.subr.bf16.mxu1 %v2311_v45 }
 0x538   :  { %1918 = vmatpush1.bf16.msra.mxu0 %v2254_v26  ;;  %1950 = vmatpush1.bf16.msra.mxu1 %v2320_v48 }
 0x539   :  { %1920 = vmatprep.subr.bf16.mxu0 %v2267_v30  ;;  %1952 = vmatprep.subr.bf16.mxu1 %v2332_v52 }
 0x53c   :  { %1922 = vmatpush1.bf16.msra.mxu0 %v2303_v42  ;;  %1954 = vmatpush1.bf16.msra.mxu1 %v2362_v62 }
 0x53d   :  { %1924 = vmatprep.subr.bf16.mxu0 %v2314_v46  ;;  %1956 = vmatprep.subr.bf16.mxu1 %v2368_v0 }
 0x540   :  { %1926 = vmatpush1.bf16.msra.mxu0 %v2341_v55  ;;  %1958 = vmatpush1.bf16.msra.mxu1 %v2398_v15 }
 0x541   :  { %1928 = vmatprep.subr.bf16.mxu0 %v2350_v58  ;;  %1960 = vmatprep.subr.bf16.mxu1 %v2404_v18 }
 0x544   :  { %1930 = vmatpush1.bf16.msra.mxu0 %v2383_v7  ;;  %1962 = vmatpush1.bf16.msra.mxu1 %v2431_v31 }
 0x545   :  { %1932 = vmatprep.subr.bf16.mxu0 %v2386_v10  ;;  %1964 = vmatprep.subr.bf16.mxu1 %v2434_v32 }
 0x548   :  { %1934 = vmatpush1.bf16.msra.mxu0 %v2419_v24  ;;  %1966 = vmatpush1.bf16.msra.mxu1 %v2453_v40 }
 0x549   :  { %1936 = vmatprep.subr.bf16.mxu0 %v2422_v27  ;;  %1968 = vmatprep.subr.bf16.mxu1 %v2456_v41 }
 0x54c   :  { %1938 = vmatpush1.bf16.msra.mxu0 %v2449_v39  ;;  %1970 = vmatpush1.bf16.msra.mxu1 %v2466_v47 }
 0x54d   :  { %1972 = vmatprep.subr.bf16.mxu0 %v2191_v4  ;;  %2004 = vmatprep.subr.bf16.mxu1 %v2243_v22 }
 0x602   :  { %v1027_v28 = vpop.f32.mrb[10].mxu0  ;;  %v1098_v29 = vpop.f32.mrb[10].mxu1 }
 0x603   :  { %v1103_v34 = vadd.f32 %v1027_v28, %v2511_v49  ;;  %v1029_v35 = vpop.f32.mrb[11].mxu0  ;;  %v1100_v44 = vpop.f32.mrb[11].mxu1  ;;  %v1105_v59 = vadd.f32 %v1098_v29, %v2529_v2 }
 0x604   :  { %v1104_v51 = vadd.f32 %v1029_v35, %v2516_v50  ;;  %v1106_v56 = vadd.f32 %v1100_v44, %v2523_v60 }
 0x605   :  { %v1511_v53 = vmul.f32 -1.442695, %v1103_v34 }
 0x606   :  { %v1512_v54 = vmul.f32 -1.442695, %v1104_v51  ;;  %v1513_v57 = vmul.f32 -1.442695, %v1106_v56 }
 0x607   :  { %2116 = vpow2.f32 %v1511_v53 }
 0x608   :  { %2118 = vpow2.f32 %v1512_v54 }
 0x609   :  { %2120 = vpow2.f32 %v1513_v57 }
 0x60a   :  { %2122 = vtanh.f32 %v1105_v59 }
 0x611   :  { %v2117_v4 = vpop.eup %2116 }
 0x612   :  { %v2119_v61 = vpop.eup %2118  ;;  %v1110_v22 = vadd.f32 1.0, %v2117_v4 }
 0x613   :  { %v1116_v63 = vadd.f32 1.0, %v2119_v61  ;;  %v2121_v1 = vpop.eup %2120 }
 0x614   :  { %2124 = vrcp.f32 %v1110_v22  ;;  %v2123_v5 = vpop.eup %2122  ;;  %v1123_v13 = vadd.f32 1.0, %v2121_v1 }
 0x615   :  { %2126 = vrcp.f32 %v1116_v63 }
 0x616   :  { %2128 = vrcp.f32 %v1123_v13 }
 0x61e   :  { %v2125_v6 = vpop.eup %2124 }
 0x61f   :  { %v2127_v11 = vpop.eup %2126  ;;  %v1128_v12 = vmul.f32 %v2125_v6, %v2123_v5 }
 0x620   :  { %v1127_v16 = vmul.f32 %v2127_v11, %v2712_v23  ;;  %v2129_v20 = vpop.eup %2128 }
 0x622   :  { %v2757_v19 = vadd.f32 %v1128_v12, %v1127_v16 }
 0x624   :  { %2130 = vtanh.f32 %v2757_v19 }
 0x62e   :  { %v2131_v21 = vpop.eup %2130 }
 0x62f   :  { %v1131_v36 = vmul.f32 %v2131_v21, %v2129_v20 }
 0x631   :  { %1514 = vst [vmem:[%s2812_s2 + $0x28] sm:$0xff] %v1131_v36  ;;  %1202 = vmatmul.mubr.f32.vlgmr.msra.gmra.mrb[12].mxu0 %v1131_v36  ;;  %1273 = vmatmul.mubr.f32.vlgmr.msra.gmra.mrb[12].mxu1 %v1131_v36 }
 0x632   :  { %1974 = vmatpush1.bf16.msra.mxu0 %v2202_v8  ;;  %2006 = vmatpush1.bf16.msra.mxu1 %v2251_v25 }
 0x633   :  { %1976 = vmatprep.subr.bf16.mxu0 %v2204_v9  ;;  %2008 = vmatprep.subr.bf16.mxu1 %v2276_v33 }
 0x634   :  { %1377 = vmatprep.mubr.f32.mxu0 %v2164_v3  ;;  %1448 = vmatprep.mubr.f32.mxu1 %v2164_v3 }
 0x636   :  { %1978 = vmatpush1.bf16.msra.mxu0 %v2220_v14  ;;  %2010 = vmatpush1.bf16.msra.mxu1 %v2287_v37 }
 0x637   :  { %1980 = vmatprep.subr.bf16.mxu0 %v2229_v17  ;;  %2012 = vmatprep.subr.bf16.mxu1 %v2311_v45 }
 0x63a   :  { %1982 = vmatpush1.bf16.msra.mxu0 %v2254_v26  ;;  %2014 = vmatpush1.bf16.msra.mxu1 %v2320_v48 }
 0x63b   :  { %1984 = vmatprep.subr.bf16.mxu0 %v2267_v30  ;;  %2016 = vmatprep.subr.bf16.mxu1 %v2332_v52 }
 0x63e   :  { %1986 = vmatpush1.bf16.msra.mxu0 %v2303_v42  ;;  %2018 = vmatpush1.bf16.msra.mxu1 %v2362_v62 }
 0x63f   :  { %1988 = vmatprep.subr.bf16.mxu0 %v2314_v46  ;;  %2020 = vmatprep.subr.bf16.mxu1 %v2368_v0 }
 0x642   :  { %1990 = vmatpush1.bf16.msra.mxu0 %v2341_v55  ;;  %2022 = vmatpush1.bf16.msra.mxu1 %v2398_v15 }
 0x643   :  { %1992 = vmatprep.subr.bf16.mxu0 %v2350_v58  ;;  %2024 = vmatprep.subr.bf16.mxu1 %v2404_v18 }
 0x646   :  { %1994 = vmatpush1.bf16.msra.mxu0 %v2383_v7  ;;  %2026 = vmatpush1.bf16.msra.mxu1 %v2431_v31 }
 0x647   :  { %1996 = vmatprep.subr.bf16.mxu0 %v2386_v10  ;;  %2028 = vmatprep.subr.bf16.mxu1 %v2434_v32 }
 0x64a   :  { %1998 = vmatpush1.bf16.msra.mxu0 %v2419_v24  ;;  %2030 = vmatpush1.bf16.msra.mxu1 %v2453_v40 }
 0x64b   :  { %2000 = vmatprep.subr.bf16.mxu0 %v2422_v27  ;;  %2032 = vmatprep.subr.bf16.mxu1 %v2456_v41 }
 0x64e   :  { %2002 = vmatpush1.bf16.msra.mxu0 %v2449_v39  ;;  %2034 = vmatpush1.bf16.msra.mxu1 %v2466_v47 }
 0x704   :  { %v1203_v3 = vpop.f32.mrb[12].mxu0  ;;  %v1274_v8 = vpop.f32.mrb[12].mxu1 }
 0x705   :  { %v1279_v9 = vadd.f32 %v1203_v3, %v2511_v49  ;;  %v1205_v14 = vpop.f32.mrb[13].mxu0  ;;  %v1276_v17 = vpop.f32.mrb[13].mxu1  ;;  %v1281_v42 = vadd.f32 %v1274_v8, %v2529_v2 }
 0x706   :  { %v1280_v25 = vadd.f32 %v1205_v14, %v2516_v50  ;;  %v1282_v33 = vadd.f32 %v1276_v17, %v2523_v60 }
 0x707   :  { %v1515_v26 = vmul.f32 -1.442695, %v1279_v9 }
 0x708   :  { %v1516_v30 = vmul.f32 -1.442695, %v1280_v25  ;;  %v1517_v37 = vmul.f32 -1.442695, %v1282_v33 }
 0x709   :  { %2132 = vpow2.f32 %v1515_v26 }
 0x70a   :  { %2134 = vpow2.f32 %v1516_v30 }
 0x70b   :  { %2136 = vpow2.f32 %v1517_v37 }
 0x70c   :  { %2138 = vtanh.f32 %v1281_v42 }
 0x713   :  { %v2133_v45 = vpop.eup %2132 }
 0x714   :  { %v2135_v46 = vpop.eup %2134  ;;  %v1286_v48 = vadd.f32 1.0, %v2133_v45 }
 0x715   :  { %v1292_v52 = vadd.f32 1.0, %v2135_v46  ;;  %v2137_v55 = vpop.eup %2136 }
 0x716   :  { %2140 = vrcp.f32 %v1286_v48  ;;  %v2139_v58 = vpop.eup %2138  ;;  %v1299_v10 = vadd.f32 1.0, %v2137_v55 }
 0x717   :  { %2142 = vrcp.f32 %v1292_v52 }
 0x718   :  { %2144 = vrcp.f32 %v1299_v10 }
 0x720   :  { %v2141_v62 = vpop.eup %2140 }
 0x721   :  { %v2143_v0 = vpop.eup %2142  ;;  %v1304_v7 = vmul.f32 %v2141_v62, %v2139_v58 }
 0x722   :  { %v1303_v15 = vmul.f32 %v2143_v0, %v2757_v19  ;;  %v2145_v24 = vpop.eup %2144 }
 0x724   :  { %v1305_v18 = vadd.f32 %v1304_v7, %v1303_v15 }
 0x726   :  { %2146 = vtanh.f32 %v1305_v18 }
 0x730   :  { %v2147_v27 = vpop.eup %2146 }
 0x731   :  { %v1307_v31 = vmul.f32 %v2147_v27, %v2145_v24 }
 0x733   :  { %1518 = vst [vmem:[%s2812_s2 + $0x30] sm:$0xff] %v1307_v31  ;;  %1378 = vmatmul.mubr.f32.vlgmr.msra.gmra.mrb[14].mxu0 %v1307_v31  ;;  %1449 = vmatmul.mubr.f32.vlgmr.msra.gmra.mrb[14].mxu1 %v1307_v31 }
 0x806   :  { %v1379_v32 = vpop.f32.mrb[14].mxu0  ;;  %v1450_v39 = vpop.f32.mrb[14].mxu1 }
 0x807   :  { %v1455_v40 = vadd.f32 %v1379_v32, %v2511_v49  ;;  %v1381_v41 = vpop.f32.mrb[15].mxu0  ;;  %v1452_v47 = vpop.f32.mrb[15].mxu1  ;;  %v1457_v34 = vadd.f32 %v1450_v39, %v2529_v2 }
 0x808   :  { %v1456_v23 = vadd.f32 %v1381_v41, %v2516_v50  ;;  %v1458_v28 = vadd.f32 %v1452_v47, %v2523_v60 }
 0x809   :  { %v1519_v38 = vmul.f32 -1.442695, %v1455_v40 }
 0x80a   :  { %v1520_v43 = vmul.f32 -1.442695, %v1456_v23  ;;  %v1521_v29 = vmul.f32 -1.442695, %v1458_v28 }
 0x80b   :  { %2148 = vpow2.f32 %v1519_v38 }
 0x80c   :  { %2150 = vpow2.f32 %v1520_v43 }
 0x80d   :  { %2152 = vpow2.f32 %v1521_v29 }
 0x80e   :  { %2154 = vtanh.f32 %v1457_v34 }
 0x815   :  { %v2149_v35 = vpop.eup %2148 }
 0x816   :  { %v2151_v44 = vpop.eup %2150  ;;  %v1462_v51 = vadd.f32 1.0, %v2149_v35 }
 0x817   :  { %v1468_v53 = vadd.f32 1.0, %v2151_v44  ;;  %v2153_v49 = vpop.eup %2152 }
 0x818   :  { %2156 = vrcp.f32 %v1462_v51  ;;  %v2155_v54 = vpop.eup %2154  ;;  %v1475_v59 = vadd.f32 1.0, %v2153_v49 }
 0x819   :  { %2158 = vrcp.f32 %v1468_v53 }
 0x81a   :  { %2160 = vrcp.f32 %v1475_v59 }
 0x822   :  { %v2157_v50 = vpop.eup %2156 }
 0x823   :  { %v2159_v56 = vpop.eup %2158  ;;  %v1480_v57 = vmul.f32 %v2157_v50, %v2155_v54 }
 0x824   :  { %v1479_v4 = vmul.f32 %v2159_v56, %v1305_v18  ;;  %v2161_v60 = vpop.eup %2160 }
 0x826   :  { %v1481_v61 = vadd.f32 %v1480_v57, %v1479_v4 }
 0x828   :  { %2162 = vtanh.f32 %v1481_v61 }
 0x832   :  { %v2163_v2 = vpop.eup %2162 }
 0x833   :  { %v1483_v22 = vmul.f32 %v2163_v2, %v2161_v60 }
 0x835   :  { %1522 = vst [vmem:[%s2812_s2 + $0x38] sm:$0xff] %v1483_v22 }

</bundles_post_ra>
